<compile_context>
chip_gen: v5e
topology: v5e:2x2
jax: 0.10.0
libtpu: 0.0.40
codegen_flags: <defaults>
</compile_context>

<pallas_src>
import functools

import jax
import jax.numpy as jnp
from jax.experimental import pallas as pl
from jax.experimental.pallas import tpu as pltpu


# ----------------------------------------------------------------------------
# In-kernel helpers
# ----------------------------------------------------------------------------

def _vspec():
    return pl.BlockSpec(memory_space=pltpu.MemorySpace.VMEM)


def _layernorm(x, eps=1e-5):
    mu = jnp.mean(x, axis=-1, keepdims=True)
    var = jnp.mean((x - mu) ** 2, axis=-1, keepdims=True)
    return (x - mu) * jax.lax.rsqrt(var + eps)


def _attn_core(hn, h_resid, wq_ref, wk_ref, wv_ref, wo_ref, bo, rid, cid,
               out_dtype):
    """Masked MHA + out-projection + residual, fully resident in VMEM.

    hn, h_resid : (N, D) f32
    wq/wk/wv    : (H, D, Dh) bf16 refs (per-head column blocks)
    wo          : (H, Dh, D) bf16 ref  (per-head row blocks of the out-proj)
    rid/cid     : (N, 1) / (1, N) int32 segment ids (mask built in-kernel)
    """
    N, D = hn.shape
    H, _, Dh = wq_ref.shape
    scale = 1.0 / (Dh ** 0.5)
    hn_b = hn.astype(jnp.bfloat16)
    mask = rid == cid                      # (N, N); never materialized in HBM
    y = jnp.zeros((N, D), jnp.float32)
    for hh in range(H):
        q = jnp.dot(hn_b, wq_ref[hh], preferred_element_type=jnp.float32)
        k = jnp.dot(hn_b, wk_ref[hh], preferred_element_type=jnp.float32)
        v = jnp.dot(hn_b, wv_ref[hh], preferred_element_type=jnp.float32)
        s = jax.lax.dot_general(
            q.astype(jnp.bfloat16), k.astype(jnp.bfloat16),
            (((1,), (1,)), ((), ())),
            preferred_element_type=jnp.float32) * scale
        s = jnp.where(mask, s, jnp.float32(-1e9))
        s = s - jnp.max(s, axis=-1, keepdims=True)
        p = jnp.exp(s)
        p = p * pl.reciprocal(jnp.sum(p, axis=-1, keepdims=True), approx=True)
        o_h = jnp.dot(p.astype(jnp.bfloat16), v.astype(jnp.bfloat16),
                      preferred_element_type=jnp.float32)
        # concat-heads + Wo  ==  sum_h (o_h @ Wo[h*Dh:(h+1)*Dh, :])
        y = y + jnp.dot(o_h.astype(jnp.bfloat16), wo_ref[hh],
                        preferred_element_type=jnp.float32)
    return (y + bo + h_resid).astype(out_dtype)


# ----------------------------------------------------------------------------
# Fused Pallas kernels
# ----------------------------------------------------------------------------

def _attn_ada_kernel(h_ref, temb_ref, wsc_ref, bsc_ref, wsh_ref, bsh_ref,
                     onehot_ref, wq_ref, wk_ref, wv_ref, wo_ref, bo_ref,
                     rid_ref, cid_ref, o_ref):
    """AdaLayerNorm(timestep) -> masked self-attn -> out-proj -> +residual."""
    h = h_ref[...]
    # Scale/shift for only the B unique timesteps (SiLU fused), then scattered
    # to tokens with a tiny one-hot matmul.
    temb = temb_ref[...]
    temb = temb * jax.nn.sigmoid(temb)                       # SiLU in f32
    tb = temb.astype(jnp.bfloat16)
    sc = jnp.dot(tb, wsc_ref[...], preferred_element_type=jnp.float32) + bsc_ref[...]
    sh = jnp.dot(tb, wsh_ref[...], preferred_element_type=jnp.float32) + bsh_ref[...]
    oneh = onehot_ref[...]                                   # (Npad, B) f32
    sc = jnp.dot(oneh, sc, preferred_element_type=jnp.float32)
    sh = jnp.dot(oneh, sh, preferred_element_type=jnp.float32)
    hn = _layernorm(h) * (1.0 + sc) + sh
    o_ref[...] = _attn_core(hn, h, wq_ref, wk_ref, wv_ref, wo_ref, bo_ref[...],
                            rid_ref[...], cid_ref[...], o_ref.dtype)


def _attn_ln_kernel(h_ref, g_ref, b_ref, wq_ref, wk_ref, wv_ref, wo_ref,
                    bo_ref, rid_ref, cid_ref, o_ref):
    """Affine LayerNorm -> masked attn -> out-proj -> +residual."""
    h = h_ref[...]
    hn = _layernorm(h) * g_ref[...] + b_ref[...]
    o_ref[...] = _attn_core(hn, h, wq_ref, wk_ref, wv_ref, wo_ref, bo_ref[...],
                            rid_ref[...], cid_ref[...], o_ref.dtype)


def _ff_kernel(h_ref, g_ref, b_ref, wv_ref, bv_ref, wg_ref, bg_ref,
               w2_ref, b2_ref, o_ref):
    """Affine LayerNorm -> GEGLU feed-forward -> +residual."""
    h = h_ref[...]
    hn = (_layernorm(h) * g_ref[...] + b_ref[...]).astype(jnp.bfloat16)
    val = jnp.dot(hn, wv_ref[...], preferred_element_type=jnp.float32) + bv_ref[...]
    gate = jnp.dot(hn, wg_ref[...], preferred_element_type=jnp.float32) + bg_ref[...]
    # TODO(synk): diffusers GEGLU uses exact (erf) GELU; tanh-approx used here.
    mid = (val * jax.nn.gelu(gate)).astype(jnp.bfloat16)
    y = jnp.dot(mid, w2_ref[...], preferred_element_type=jnp.float32) + b2_ref[...]
    o_ref[...] = (y + h).astype(o_ref.dtype)


def _linear_kernel(x_ref, w_ref, b_ref, o_ref, *, act):
    y = jnp.dot(x_ref[...].astype(jnp.bfloat16), w_ref[...],
                preferred_element_type=jnp.float32) + b_ref[...]
    if act == "silu":
        y = y * jax.nn.sigmoid(y)
    o_ref[...] = y.astype(o_ref.dtype)


def _pool_heads_kernel(seg_ref, h_ref,
                       tw1, tb1, tw2, tb2, tw3, tb3,
                       rw1, rb1, rw2, rb2, rw3, rb3,
                       t_ref, r_ref):
    """segment-mean pooling (as matmul) + both 3-layer SiLU MLP heads."""
    pooled = jnp.dot(seg_ref[...], h_ref[...], preferred_element_type=jnp.float32)

    def head(z, w1, b1, w2, b2, w3, b3):
        z = jnp.dot(z.astype(jnp.bfloat16), w1[...],
                    preferred_element_type=jnp.float32) + b1[...]
        z = z * jax.nn.sigmoid(z)
        z = jnp.dot(z.astype(jnp.bfloat16), w2[...],
                    preferred_element_type=jnp.float32) + b2[...]
        z = z * jax.nn.sigmoid(z)
        return jnp.dot(z.astype(jnp.bfloat16), w3[...],
                       preferred_element_type=jnp.float32) + b3[...]

    t_ref[...] = head(pooled, tw1, tb1, tw2, tb2, tw3, tb3).astype(t_ref.dtype)
    r_ref[...] = head(pooled, rw1, rb1, rw2, rb2, rw3, rb3).astype(r_ref.dtype)


# ----------------------------------------------------------------------------
# pallas_call wrappers
# ----------------------------------------------------------------------------

_BF16 = jnp.bfloat16


def _split_heads_cols(w, H):
    """(D, D) -> (H, D, Dh): per-head output-column blocks of Wq/Wk/Wv."""
    D = w.shape[0]
    Dh = D // H
    return w.reshape(D, H, Dh).transpose(1, 0, 2)


def _split_heads_rows(w, H):
    """(D, D) -> (H, Dh, D): per-head input-row blocks of the out projection."""
    D = w.shape[0]
    Dh = D // H
    return w.reshape(H, Dh, D)


def pallas_linear(x, w, b, act="none"):
    M = x.shape[0]
    N = w.shape[1]
    return pl.pallas_call(
        functools.partial(_linear_kernel, act=act),
        out_shape=jax.ShapeDtypeStruct((M, N), jnp.float32),
        in_specs=[_vspec()] * 3,
        out_specs=_vspec(),
    )(x, w.astype(_BF16), b.reshape(1, N).astype(jnp.float32))


def pallas_attn_ada(h, temb, ada_W, ada_b, onehot, ap, rid, cid, H):
    Npad, D = h.shape
    wsc = ada_W[:, :D].astype(_BF16)
    wsh = ada_W[:, D:].astype(_BF16)
    bsc = ada_b[:D].reshape(1, D)
    bsh = ada_b[D:].reshape(1, D)
    return pl.pallas_call(
        _attn_ada_kernel,
        out_shape=jax.ShapeDtypeStruct((Npad, D), jnp.float32),
        in_specs=[_vspec()] * 14,
        out_specs=_vspec(),
    )(h, temb, wsc, bsc, wsh, bsh, onehot,
      _split_heads_cols(ap["Wq"], H).astype(_BF16),
      _split_heads_cols(ap["Wk"], H).astype(_BF16),
      _split_heads_cols(ap["Wv"], H).astype(_BF16),
      _split_heads_rows(ap["Wo"], H).astype(_BF16),
      ap["bo"].reshape(1, D), rid, cid)


def pallas_attn_ln(h, gamma, beta, ap, rid, cid, H):
    Npad, D = h.shape
    return pl.pallas_call(
        _attn_ln_kernel,
        out_shape=jax.ShapeDtypeStruct((Npad, D), jnp.float32),
        in_specs=[_vspec()] * 10,
        out_specs=_vspec(),
    )(h, gamma.reshape(1, D), beta.reshape(1, D),
      _split_heads_cols(ap["Wq"], H).astype(_BF16),
      _split_heads_cols(ap["Wk"], H).astype(_BF16),
      _split_heads_cols(ap["Wv"], H).astype(_BF16),
      _split_heads_rows(ap["Wo"], H).astype(_BF16),
      ap["bo"].reshape(1, D), rid, cid)


def pallas_ff(h, gamma, beta, wv, bv, wg, bg, w2, b2):
    Npad, D = h.shape
    return pl.pallas_call(
        _ff_kernel,
        out_shape=jax.ShapeDtypeStruct((Npad, D), jnp.float32),
        in_specs=[_vspec()] * 9,
        out_specs=_vspec(),
    )(h, gamma.reshape(1, D), beta.reshape(1, D),
      wv.astype(_BF16), bv.reshape(1, -1),
      wg.astype(_BF16), bg.reshape(1, -1),
      w2.astype(_BF16), b2.reshape(1, D))


def pallas_pool_heads(seg_mat, h, pt, pr):
    P = seg_mat.shape[0]

    def args(p):
        return (p["W1"].astype(_BF16), p["b1"].reshape(1, -1),
                p["W2"].astype(_BF16), p["b2"].reshape(1, -1),
                p["W3"].astype(_BF16), p["b3"].reshape(1, -1))

    t_dim = pt["W3"].shape[1]
    r_dim = pr["W3"].shape[1]
    return pl.pallas_call(
        _pool_heads_kernel,
        out_shape=(jax.ShapeDtypeStruct((P, t_dim), jnp.float32),
                   jax.ShapeDtypeStruct((P, r_dim), jnp.float32)),
        in_specs=[_vspec()] * 14,
        out_specs=(_vspec(), _vspec()),
    )(seg_mat, h, *args(pt), *args(pr))


# ----------------------------------------------------------------------------
# Plain-JAX glue: quaternions, NeRF embedding
# ----------------------------------------------------------------------------

def _quat_mul(a, b):
    aw, ax, ay, az = a[..., 0], a[..., 1], a[..., 2], a[..., 3]
    bw, bx, by, bz = b[..., 0], b[..., 1], b[..., 2], b[..., 3]
    ow = aw * bw - ax * bx - ay * by - az * bz
    ox = aw * bx + ax * bw + ay * bz - az * by
    oy = aw * by - ax * bz + ay * bw + az * bx
    oz = aw * bz + ax * by - ay * bx + az * bw
    return jnp.stack([ow, ox, oy, oz], axis=-1)


def quaternion_apply(q, point):
    """pytorch3d convention: q is real-first (w, x, y, z)."""
    zeros = jnp.zeros_like(point[..., :1])
    pq = jnp.concatenate([zeros, point], axis=-1)
    q_conj = q * jnp.array([1.0, -1.0, -1.0, -1.0], q.dtype)
    out = _quat_mul(_quat_mul(q, pq), q_conj)
    return out[..., 1:]


def nerf_embed(x, num_freqs=10):
    """include_input + [sin(x*2^k), cos(x*2^k)] for k=0..num_freqs-1."""
    freqs = 2.0 ** jnp.arange(num_freqs, dtype=jnp.float32)
    outs = [x]
    for i in range(num_freqs):
        outs.append(jnp.sin(x * freqs[i]))
        outs.append(jnp.cos(x * freqs[i]))
    return jnp.concatenate(outs, axis=-1)


# ----------------------------------------------------------------------------
# Parameters
# ----------------------------------------------------------------------------

class _KeyIter:
    def __init__(self, key):
        self._key = key

    def next(self):
        self._key, sub = jax.random.split(self._key)
        return sub


def init_params(key, cfg):
    D = cfg["embed_dim"]
    L = cfg["num_layers"]
    in_dim = cfg["in_dim"]
    nerf7, nerf3, nerf1 = 7 * 21, 3 * 21, 1 * 21
    kit = _KeyIter(key)

    def dense(fan_in, fan_out):
        lim = 1.0 / (fan_in ** 0.5)
        w = jax.random.uniform(kit.next(), (fan_in, fan_out), jnp.float32, -lim, lim)
        b = jax.random.uniform(kit.next(), (fan_out,), jnp.float32, -lim, lim)
        return w, b

    params = {}
    params["ref_part_emb"] = jax.random.normal(kit.next(), (2, D), jnp.float32) * 0.02
    params["shape_W"], params["shape_b"] = dense(in_dim + nerf1 + nerf3 + nerf3, D)
    params["param_W"], params["param_b"] = dense(nerf7, D)

    layers = []
    for _ in range(L):
        lp = {}
        lp["ada_table"] = jax.random.normal(kit.next(), (6 * D, D), jnp.float32) * 0.02
        lp["ada_W"], lp["ada_b"] = dense(D, 2 * D)
        for name in ("attn1", "attn2"):
            ap = {}
            ap["Wq"], _ = dense(D, D)          # attention_bias=False
            ap["Wk"], _ = dense(D, D)
            ap["Wv"], _ = dense(D, D)
            ap["Wo"], ap["bo"] = dense(D, D)
            lp[name] = ap
        lp["norm2_g"], lp["norm2_b"] = jnp.ones((D,), jnp.float32), jnp.zeros((D,), jnp.float32)
        lp["norm3_g"], lp["norm3_b"] = jnp.ones((D,), jnp.float32), jnp.zeros((D,), jnp.float32)
        inner = 4 * D
        lp["ff_Wv"], lp["ff_bv"] = dense(D, inner)   # GEGLU value half
        lp["ff_Wg"], lp["ff_bg"] = dense(D, inner)   # GEGLU gate half
        lp["ff_W2"], lp["ff_b2"] = dense(inner, D)
        layers.append(lp)
    params["layers"] = layers

    def head(out_dim):
        w1, b1 = dense(D, D)
        w2, b2 = dense(D, D // 2)
        w3, b3 = dense(D // 2, out_dim)
        return dict(W1=w1, b1=b1, W2=w2, b2=b2, W3=w3, b3=b3)

    params["mlp_trans"] = head(cfg["trans_out_dim"])
    params["mlp_rot"] = head(cfg["rot_out_dim"])
    return params


# ----------------------------------------------------------------------------
# Forward pass
# ----------------------------------------------------------------------------

def denoiser_forward(params, x, timesteps, latent, part_valids, scale, ref_part,
                     part_to_sample, cfg):
    D = cfg["embed_dim"]
    H = cfg["num_heads"]
    Npad = cfg["Npad"]

    batch = latent["batch"]                       # (N,) point -> valid-part idx
    N = batch.shape[0]
    P_valid = x.shape[0]
    B = part_valids.shape[0]
    pad = Npad - N

    # ---------------- _gen_cond ----------------
    rot = x[:, 3:7]
    rot_b = rot[batch]
    xyz_pos_emb = nerf_embed(quaternion_apply(rot_b, latent["coord"]))   # (N, 63)
    normal_emb = nerf_embed(quaternion_apply(rot_b, latent["normal"]))   # (N, 63)
    scale_emb = nerf_embed(scale)[batch]                                 # (N, 21)
    concat_emb = jnp.concatenate(
        [latent["feat"], xyz_pos_emb, normal_emb, scale_emb], -1)
    shape_emb = pallas_linear(concat_emb, params["shape_W"], params["shape_b"])
    x_emb = pallas_linear(nerf_embed(x), params["param_W"], params["param_b"])

    # ---------------- _add_ref_part_emb ----------------
    ref_emb = jnp.where(ref_part[:, None],
                        params["ref_part_emb"][1][None, :],
                        params["ref_part_emb"][0][None, :])
    x_emb = x_emb + ref_emb
    data_emb = x_emb[batch] + shape_emb                                  # (N, D)

    # ------------- pad + segment ids (replaces varlen cu_seqlens) -------------
    data_emb = jnp.pad(data_emb, ((0, pad), (0, 0)))
    batch_pad = jnp.concatenate(
        [batch.astype(jnp.int32), P_valid + jnp.arange(pad, dtype=jnp.int32)])
    sample = part_to_sample[batch].astype(jnp.int32)
    sample_pad = jnp.concatenate(
        [sample, B + jnp.arange(pad, dtype=jnp.int32)])

    self_rid = batch_pad.reshape(Npad, 1)
    self_cid = batch_pad.reshape(1, Npad)
    glob_rid = sample_pad.reshape(Npad, 1)
    glob_cid = sample_pad.reshape(1, Npad)
    onehot_sample = (sample_pad[:, None] ==
                     jnp.arange(B, dtype=jnp.int32)[None, :]).astype(jnp.float32)

    # ---------------- transformer layers (3 fused kernels per layer) ----------
    h = data_emb
    for lp in params["layers"]:
        temb = lp["ada_table"][timesteps]          # (B, D): one row per sample
        h = pallas_attn_ada(h, temb, lp["ada_W"], lp["ada_b"], onehot_sample,
                            lp["attn1"], self_rid, self_cid, H)
        h = pallas_attn_ln(h, lp["norm2_g"], lp["norm2_b"], lp["attn2"],
                           glob_rid, glob_cid, H)
        h = pallas_ff(h, lp["norm3_g"], lp["norm3_b"],
                      lp["ff_Wv"], lp["ff_bv"], lp["ff_Wg"], lp["ff_bg"],
                      lp["ff_W2"], lp["ff_b2"])

    # -------- segment_csr mean + both output heads (one fused kernel) ---------
    one_hot = (batch_pad[None, :] ==
               jnp.arange(P_valid, dtype=jnp.int32)[:, None]).astype(jnp.float32)
    seg_mat = one_hot / jnp.sum(one_hot, axis=-1, keepdims=True)   # (P_valid, Npad)
    out_trans, out_rot = pallas_pool_heads(seg_mat, h,
                                           params["mlp_trans"], params["mlp_rot"])
    pred = jnp.concatenate([out_trans, out_rot], axis=-1)
    return {"pred": pred, "graph_pred": None}


# ----------------------------------------------------------------------------
# Main
# ----------------------------------------------------------------------------

if __name__ == "__main__":
    cfg = dict(in_dim=8, embed_dim=128, num_layers=2, num_heads=4,
               trans_out_dim=3, rot_out_dim=6, Npad=16)

    B, P = 2, 3
    part_valids = jnp.array([[True, True, False], [True, True, True]])
    part_to_sample = jnp.array([0, 0, 1, 1, 1], jnp.int32)    # valid part -> sample
    P_valid = 5
    batch = jnp.array([0, 0, 0, 1, 1, 2, 2, 2, 2, 3, 3, 4, 4, 4], jnp.int32)
    N = int(batch.shape[0])

    root = jax.random.PRNGKey(0)
    kq, kt, kc, kn, kf, ks, kp = jax.random.split(root, 7)
    quat = jax.random.normal(kq, (P_valid, 4), jnp.float32)
    quat = quat / jnp.linalg.norm(quat, axis=-1, keepdims=True)
    trans = jax.random.normal(kt, (P_valid, 3), jnp.float32) * 0.1
    x = jnp.concatenate([trans, quat], axis=-1)               # (P_valid, 7)

    latent = dict(
        coord=jax.random.normal(kc, (N, 3), jnp.float32),
        normal=jax.random.normal(kn, (N, 3), jnp.float32),
        feat=jax.random.normal(kf, (N, cfg["in_dim"]), jnp.float32),
        batch=batch,
    )
    scale = jax.random.uniform(ks, (P_valid, 1), jnp.float32, 0.5, 1.5)
    ref_part = jnp.array([True, False, True, False, False])
    timesteps = jnp.array([17, 53], jnp.int32)                # < 6 * embed_dim

    params = init_params(kp, cfg)

    fwd = jax.jit(functools.partial(denoiser_forward, cfg=cfg))
    out = fwd(params, x, timesteps, latent, part_valids, scale, ref_part,
              part_to_sample)
    jax.block_until_ready(out["pred"])
    assert out["pred"].shape == (P_valid, cfg["trans_out_dim"] + cfg["rot_out_dim"])
    assert bool(jnp.all(jnp.isfinite(out["pred"])))
    print("KERNEL_OK")
</pallas_src>

<mosaic_0001>
module attributes {stable_mosaic.version = 11 : i64} {
  func.func @_linear_kernel(%arg0: memref<14x155xf32, #tpu.memory_space<vmem>>, %arg1: memref<155x128xbf16, #tpu.memory_space<vmem>>, %arg2: memref<1x128xf32, #tpu.memory_space<vmem>>, %arg3: memref<14x128xf32, #tpu.memory_space<vmem>>) attributes {dimension_semantics = [], scalar_prefetch = 0 : i64, scratch_operands = 0 : i64, tpu.core_type = #tpu.core_type<tc>} {
    %c0 = arith.constant 0 : index
    %c0_0 = arith.constant 0 : index
    %0 = vector.load %arg0[%c0, %c0_0] : memref<14x155xf32, #tpu.memory_space<vmem>>, vector<14x155xf32>
    %1 = arith.truncf %0 : vector<14x155xf32> to vector<14x155xbf16>
    %c0_1 = arith.constant 0 : index
    %c0_2 = arith.constant 0 : index
    %2 = vector.load %arg1[%c0_1, %c0_2] : memref<155x128xbf16, #tpu.memory_space<vmem>>, vector<155x128xbf16>
    %cst = arith.constant dense<0.000000e+00> : vector<14x128xf32>
    %3 = tpu.matmul %1, %2, %cst {dimension_numbers = #tpu.dot_dimension_numbers<[1], [0], [0], [1], [0, 0, 1, 1], [], []>} : vector<14x155xbf16>, vector<155x128xbf16>, vector<14x128xf32> -> vector<14x128xf32>
    %c0_3 = arith.constant 0 : index
    %c0_4 = arith.constant 0 : index
    %4 = vector.load %arg2[%c0_3, %c0_4] : memref<1x128xf32, #tpu.memory_space<vmem>>, vector<1x128xf32>
    %5 = vector.broadcast %4 : vector<1x128xf32> to vector<14x128xf32>
    %6 = arith.addf %3, %5 : vector<14x128xf32>
    %c0_5 = arith.constant 0 : index
    %c0_6 = arith.constant 0 : index
    %7 = vector.load %arg3[%c0_5, %c0_6] : memref<14x128xf32, #tpu.memory_space<vmem>>, vector<14x128xf32>
    tpu.vector_store %arg3[%c0_5, %c0_6], %6 {strides = array<i32>} : memref<14x128xf32, #tpu.memory_space<vmem>>, vector<14x128xf32>,
    return
  }
}

module attributes {stable_mosaic.version = 11 : i64} {
  func.func @_linear_kernel(%arg0: memref<5x147xf32, #tpu.memory_space<vmem>>, %arg1: memref<147x128xbf16, #tpu.memory_space<vmem>>, %arg2: memref<1x128xf32, #tpu.memory_space<vmem>>, %arg3: memref<5x128xf32, #tpu.memory_space<vmem>>) attributes {dimension_semantics = [], scalar_prefetch = 0 : i64, scratch_operands = 0 : i64, tpu.core_type = #tpu.core_type<tc>} {
    %c0 = arith.constant 0 : index
    %c0_0 = arith.constant 0 : index
    %0 = vector.load %arg0[%c0, %c0_0] : memref<5x147xf32, #tpu.memory_space<vmem>>, vector<5x147xf32>
    %1 = arith.truncf %0 : vector<5x147xf32> to vector<5x147xbf16>
    %c0_1 = arith.constant 0 : index
    %c0_2 = arith.constant 0 : index
    %2 = vector.load %arg1[%c0_1, %c0_2] : memref<147x128xbf16, #tpu.memory_space<vmem>>, vector<147x128xbf16>
    %cst = arith.constant dense<0.000000e+00> : vector<5x128xf32>
    %3 = tpu.matmul %1, %2, %cst {dimension_numbers = #tpu.dot_dimension_numbers<[1], [0], [0], [1], [0, 0, 1, 1], [], []>} : vector<5x147xbf16>, vector<147x128xbf16>, vector<5x128xf32> -> vector<5x128xf32>
    %c0_3 = arith.constant 0 : index
    %c0_4 = arith.constant 0 : index
    %4 = vector.load %arg2[%c0_3, %c0_4] : memref<1x128xf32, #tpu.memory_space<vmem>>, vector<1x128xf32>
    %5 = vector.broadcast %4 : vector<1x128xf32> to vector<5x128xf32>
    %6 = arith.addf %3, %5 : vector<5x128xf32>
    %c0_5 = arith.constant 0 : index
    %c0_6 = arith.constant 0 : index
    %7 = vector.load %arg3[%c0_5, %c0_6] : memref<5x128xf32, #tpu.memory_space<vmem>>, vector<5x128xf32>
    tpu.vector_store %arg3[%c0_5, %c0_6], %6 {strides = array<i32>} : memref<5x128xf32, #tpu.memory_space<vmem>>, vector<5x128xf32>,
    return
  }
}

module attributes {stable_mosaic.version = 11 : i64} {
  func.func @_attn_ln_kernel(%arg0: memref<16x128xf32, #tpu.memory_space<vmem>>, %arg1: memref<1x128xf32, #tpu.memory_space<vmem>>, %arg2: memref<1x128xf32, #tpu.memory_space<vmem>>, %arg3: memref<4x128x32xbf16, #tpu.memory_space<vmem>>, %arg4: memref<4x128x32xbf16, #tpu.memory_space<vmem>>, %arg5: memref<4x128x32xbf16, #tpu.memory_space<vmem>>, %arg6: memref<4x32x128xbf16, #tpu.memory_space<vmem>>, %arg7: memref<1x128xf32, #tpu.memory_space<vmem>>, %arg8: memref<16x1xi32, #tpu.memory_space<vmem>>, %arg9: memref<1x16xi32, #tpu.memory_space<vmem>>, %arg10: memref<16x128xf32, #tpu.memory_space<vmem>>) attributes {dimension_semantics = [], scalar_prefetch = 0 : i64, scratch_operands = 0 : i64, tpu.core_type = #tpu.core_type<tc>} {
    %c0 = arith.constant 0 : index
    %c0_0 = arith.constant 0 : index
    %0 = vector.load %arg0[%c0, %c0_0] : memref<16x128xf32, #tpu.memory_space<vmem>>, vector<16x128xf32>
    %cst = arith.constant dense<0.000000e+00> : vector<16xf32>
    %1 = vector.multi_reduction <add>, %0, %cst [1] : vector<16x128xf32> to vector<16xf32>
    %2 = vector.shape_cast %1 : vector<16xf32> to vector<16x1xf32>
    %cst_1 = arith.constant 1.280000e+02 : f32
    %3 = vector.broadcast %cst_1 : f32 to vector<16x1xf32>
    %4 = arith.divf %2, %3 : vector<16x1xf32>
    %5 = vector.broadcast %4 : vector<16x1xf32> to vector<16x128xf32>
    %6 = arith.subf %0, %5 : vector<16x128xf32>
    %7 = arith.mulf %6, %6 : vector<16x128xf32>
    %cst_2 = arith.constant dense<0.000000e+00> : vector<16xf32>
    %8 = vector.multi_reduction <add>, %7, %cst_2 [1] : vector<16x128xf32> to vector<16xf32>
    %9 = vector.shape_cast %8 : vector<16xf32> to vector<16x1xf32>
    %cst_3 = arith.constant 1.280000e+02 : f32
    %10 = vector.broadcast %cst_3 : f32 to vector<16x1xf32>
    %11 = arith.divf %9, %10 : vector<16x1xf32>
    %12 = vector.broadcast %4 : vector<16x1xf32> to vector<16x128xf32>
    %13 = arith.subf %0, %12 : vector<16x128xf32>
    %cst_4 = arith.constant 9.99999974E-6 : f32
    %14 = vector.broadcast %cst_4 : f32 to vector<16x1xf32>
    %15 = arith.addf %11, %14 : vector<16x1xf32>
    %16 = math.rsqrt %15 : vector<16x1xf32>
    %17 = vector.broadcast %16 : vector<16x1xf32> to vector<16x128xf32>
    %18 = arith.mulf %13, %17 : vector<16x128xf32>
    %c0_5 = arith.constant 0 : index
    %c0_6 = arith.constant 0 : index
    %19 = vector.load %arg1[%c0_5, %c0_6] : memref<1x128xf32, #tpu.memory_space<vmem>>, vector<1x128xf32>
    %20 = vector.broadcast %19 : vector<1x128xf32> to vector<16x128xf32>
    %21 = arith.mulf %18, %20 : vector<16x128xf32>
    %c0_7 = arith.constant 0 : index
    %c0_8 = arith.constant 0 : index
    %22 = vector.load %arg2[%c0_7, %c0_8] : memref<1x128xf32, #tpu.memory_space<vmem>>, vector<1x128xf32>
    %23 = vector.broadcast %22 : vector<1x128xf32> to vector<16x128xf32>
    %24 = arith.addf %21, %23 : vector<16x128xf32>
    %c0_9 = arith.constant 0 : index
    %c0_10 = arith.constant 0 : index
    %25 = vector.load %arg7[%c0_9, %c0_10] : memref<1x128xf32, #tpu.memory_space<vmem>>, vector<1x128xf32>
    %c0_11 = arith.constant 0 : index
    %c0_12 = arith.constant 0 : index
    %26 = vector.load %arg8[%c0_11, %c0_12] : memref<16x1xi32, #tpu.memory_space<vmem>>, vector<16x1xi32>
    %c0_13 = arith.constant 0 : index
    %c0_14 = arith.constant 0 : index
    %27 = vector.load %arg9[%c0_13, %c0_14] : memref<1x16xi32, #tpu.memory_space<vmem>>, vector<1x16xi32>
    %28 = arith.truncf %24 : vector<16x128xf32> to vector<16x128xbf16>
    %29 = vector.broadcast %26 : vector<16x1xi32> to vector<16x16xi32>
    %30 = vector.broadcast %27 : vector<1x16xi32> to vector<16x16xi32>
    %31 = arith.cmpi eq, %29, %30 : vector<16x16xi32>
    %cst_15 = arith.constant 0.000000e+00 : f32
    %32 = vector.broadcast %cst_15 : f32 to vector<16x128xf32>
    %c0_16 = arith.constant 0 : index
    %c0_17 = arith.constant 0 : index
    %c0_18 = arith.constant 0 : index
    %33 = vector.load %arg3[%c0_16, %c0_17, %c0_18] : memref<4x128x32xbf16, #tpu.memory_space<vmem>>, vector<1x128x32xbf16>
    %34 = vector.shape_cast %33 : vector<1x128x32xbf16> to vector<128x32xbf16>
    %cst_19 = arith.constant dense<0.000000e+00> : vector<16x32xf32>
    %35 = tpu.matmul %28, %34, %cst_19 {dimension_numbers = #tpu.dot_dimension_numbers<[1], [0], [0], [1], [0, 0, 1, 1], [], []>} : vector<16x128xbf16>, vector<128x32xbf16>, vector<16x32xf32> -> vector<16x32xf32>
    %c0_20 = arith.constant 0 : index
    %c0_21 = arith.constant 0 : index
    %c0_22 = arith.constant 0 : index
    %36 = vector.load %arg4[%c0_20, %c0_21, %c0_22] : memref<4x128x32xbf16, #tpu.memory_space<vmem>>, vector<1x128x32xbf16>
    %37 = vector.shape_cast %36 : vector<1x128x32xbf16> to vector<128x32xbf16>
    %cst_23 = arith.constant dense<0.000000e+00> : vector<16x32xf32>
    %38 = tpu.matmul %28, %37, %cst_23 {dimension_numbers = #tpu.dot_dimension_numbers<[1], [0], [0], [1], [0, 0, 1, 1], [], []>} : vector<16x128xbf16>, vector<128x32xbf16>, vector<16x32xf32> -> vector<16x32xf32>
    %c0_24 = arith.constant 0 : index
    %c0_25 = arith.constant 0 : index
    %c0_26 = arith.constant 0 : index
    %39 = vector.load %arg5[%c0_24, %c0_25, %c0_26] : memref<4x128x32xbf16, #tpu.memory_space<vmem>>, vector<1x128x32xbf16>
    %40 = vector.shape_cast %39 : vector<1x128x32xbf16> to vector<128x32xbf16>
    %cst_27 = arith.constant dense<0.000000e+00> : vector<16x32xf32>
    %41 = tpu.matmul %28, %40, %cst_27 {dimension_numbers = #tpu.dot_dimension_numbers<[1], [0], [0], [1], [0, 0, 1, 1], [], []>} : vector<16x128xbf16>, vector<128x32xbf16>, vector<16x32xf32> -> vector<16x32xf32>
    %42 = arith.truncf %35 : vector<16x32xf32> to vector<16x32xbf16>
    %43 = arith.truncf %38 : vector<16x32xf32> to vector<16x32xbf16>
    %cst_28 = arith.constant dense<0.000000e+00> : vector<16x16xf32>
    %44 = tpu.matmul %42, %43, %cst_28 {dimension_numbers = #tpu.dot_dimension_numbers<[1], [1], [0], [0], [0, 0, 1, 0], [], []>} : vector<16x32xbf16>, vector<16x32xbf16>, vector<16x16xf32> -> vector<16x16xf32>
    %cst_29 = arith.constant 0.176776692 : f32
    %45 = vector.broadcast %cst_29 : f32 to vector<16x16xf32>
    %46 = arith.mulf %44, %45 : vector<16x16xf32>
    %cst_30 = arith.constant -1.000000e+09 : f32
    %47 = vector.broadcast %cst_30 : f32 to vector<16x16xf32>
    %48 = arith.select %31, %46, %47 : vector<16x16xi1>, vector<16x16xf32>
    %cst_31 = arith.constant dense<0xFF800000> : vector<16xf32>
    %49 = vector.multi_reduction <maximumf>, %48, %cst_31 [1] : vector<16x16xf32> to vector<16xf32>
    %50 = vector.shape_cast %49 : vector<16xf32> to vector<16x1xf32>
    %51 = vector.broadcast %50 : vector<16x1xf32> to vector<16x16xf32>
    %52 = arith.subf %48, %51 : vector<16x16xf32>
    %53 = math.exp %52 : vector<16x16xf32>
    %cst_32 = arith.constant dense<0.000000e+00> : vector<16xf32>
    %54 = vector.multi_reduction <add>, %53, %cst_32 [1] : vector<16x16xf32> to vector<16xf32>
    %55 = vector.shape_cast %54 : vector<16xf32> to vector<16x1xf32>
    %56 = tpu.reciprocal %55 {approx = true} : vector<16x1xf32> -> vector<16x1xf32>
    %57 = vector.broadcast %56 : vector<16x1xf32> to vector<16x16xf32>
    %58 = arith.mulf %53, %57 : vector<16x16xf32>
    %59 = arith.truncf %58 : vector<16x16xf32> to vector<16x16xbf16>
    %60 = arith.truncf %41 : vector<16x32xf32> to vector<16x32xbf16>
    %cst_33 = arith.constant dense<0.000000e+00> : vector<16x32xf32>
    %61 = tpu.matmul %59, %60, %cst_33 {dimension_numbers = #tpu.dot_dimension_numbers<[1], [0], [0], [1], [0, 0, 1, 1], [], []>} : vector<16x16xbf16>, vector<16x32xbf16>, vector<16x32xf32> -> vector<16x32xf32>
    %62 = arith.truncf %61 : vector<16x32xf32> to vector<16x32xbf16>
    %c0_34 = arith.constant 0 : index
    %c0_35 = arith.constant 0 : index
    %c0_36 = arith.constant 0 : index
    %63 = vector.load %arg6[%c0_34, %c0_35, %c0_36] : memref<4x32x128xbf16, #tpu.memory_space<vmem>>, vector<1x32x128xbf16>
    %64 = vector.shape_cast %63 : vector<1x32x128xbf16> to vector<32x128xbf16>
    %cst_37 = arith.constant dense<0.000000e+00> : vector<16x128xf32>
    %65 = tpu.matmul %62, %64, %cst_37 {dimension_numbers = #tpu.dot_dimension_numbers<[1], [0], [0], [1], [0, 0, 1, 1], [], []>} : vector<16x32xbf16>, vector<32x128xbf16>, vector<16x128xf32> -> vector<16x128xf32>
    %66 = arith.addf %32, %65 : vector<16x128xf32>
    %c1 = arith.constant 1 : index
    %c0_38 = arith.constant 0 : index
    %c0_39 = arith.constant 0 : index
    %67 = vector.load %arg3[%c1, %c0_38, %c0_39] : memref<4x128x32xbf16, #tpu.memory_space<vmem>>, vector<1x128x32xbf16>
    %68 = vector.shape_cast %67 : vector<1x128x32xbf16> to vector<128x32xbf16>
    %cst_40 = arith.constant dense<0.000000e+00> : vector<16x32xf32>
    %69 = tpu.matmul %28, %68, %cst_40 {dimension_numbers = #tpu.dot_dimension_numbers<[1], [0], [0], [1], [0, 0, 1, 1], [], []>} : vector<16x128xbf16>, vector<128x32xbf16>, vector<16x32xf32> -> vector<16x32xf32>
    %c1_41 = arith.constant 1 : index
    %c0_42 = arith.constant 0 : index
    %c0_43 = arith.constant 0 : index
    %70 = vector.load %arg4[%c1_41, %c0_42, %c0_43] : memref<4x128x32xbf16, #tpu.memory_space<vmem>>, vector<1x128x32xbf16>
    %71 = vector.shape_cast %70 : vector<1x128x32xbf16> to vector<128x32xbf16>
    %cst_44 = arith.constant dense<0.000000e+00> : vector<16x32xf32>
    %72 = tpu.matmul %28, %71, %cst_44 {dimension_numbers = #tpu.dot_dimension_numbers<[1], [0], [0], [1], [0, 0, 1, 1], [], []>} : vector<16x128xbf16>, vector<128x32xbf16>, vector<16x32xf32> -> vector<16x32xf32>
    %c1_45 = arith.constant 1 : index
    %c0_46 = arith.constant 0 : index
    %c0_47 = arith.constant 0 : index
    %73 = vector.load %arg5[%c1_45, %c0_46, %c0_47] : memref<4x128x32xbf16, #tpu.memory_space<vmem>>, vector<1x128x32xbf16>
    %74 = vector.shape_cast %73 : vector<1x128x32xbf16> to vector<128x32xbf16>
    %cst_48 = arith.constant dense<0.000000e+00> : vector<16x32xf32>
    %75 = tpu.matmul %28, %74, %cst_48 {dimension_numbers = #tpu.dot_dimension_numbers<[1], [0], [0], [1], [0, 0, 1, 1], [], []>} : vector<16x128xbf16>, vector<128x32xbf16>, vector<16x32xf32> -> vector<16x32xf32>
    %76 = arith.truncf %69 : vector<16x32xf32> to vector<16x32xbf16>
    %77 = arith.truncf %72 : vector<16x32xf32> to vector<16x32xbf16>
    %cst_49 = arith.constant dense<0.000000e+00> : vector<16x16xf32>
    %78 = tpu.matmul %76, %77, %cst_49 {dimension_numbers = #tpu.dot_dimension_numbers<[1], [1], [0], [0], [0, 0, 1, 0], [], []>} : vector<16x32xbf16>, vector<16x32xbf16>, vector<16x16xf32> -> vector<16x16xf32>
    %cst_50 = arith.constant 0.176776692 : f32
    %79 = vector.broadcast %cst_50 : f32 to vector<16x16xf32>
    %80 = arith.mulf %78, %79 : vector<16x16xf32>
    %cst_51 = arith.constant -1.000000e+09 : f32
    %81 = vector.broadcast %cst_51 : f32 to vector<16x16xf32>
    %82 = arith.select %31, %80, %81 : vector<16x16xi1>, vector<16x16xf32>
    %cst_52 = arith.constant dense<0xFF800000> : vector<16xf32>
    %83 = vector.multi_reduction <maximumf>, %82, %cst_52 [1] : vector<16x16xf32> to vector<16xf32>
    %84 = vector.shape_cast %83 : vector<16xf32> to vector<16x1xf32>
    %85 = vector.broadcast %84 : vector<16x1xf32> to vector<16x16xf32>
    %86 = arith.subf %82, %85 : vector<16x16xf32>
    %87 = math.exp %86 : vector<16x16xf32>
    %cst_53 = arith.constant dense<0.000000e+00> : vector<16xf32>
    %88 = vector.multi_reduction <add>, %87, %cst_53 [1] : vector<16x16xf32> to vector<16xf32>
    %89 = vector.shape_cast %88 : vector<16xf32> to vector<16x1xf32>
    %90 = tpu.reciprocal %89 {approx = true} : vector<16x1xf32> -> vector<16x1xf32>
    %91 = vector.broadcast %90 : vector<16x1xf32> to vector<16x16xf32>
    %92 = arith.mulf %87, %91 : vector<16x16xf32>
    %93 = arith.truncf %92 : vector<16x16xf32> to vector<16x16xbf16>
    %94 = arith.truncf %75 : vector<16x32xf32> to vector<16x32xbf16>
    %cst_54 = arith.constant dense<0.000000e+00> : vector<16x32xf32>
    %95 = tpu.matmul %93, %94, %cst_54 {dimension_numbers = #tpu.dot_dimension_numbers<[1], [0], [0], [1], [0, 0, 1, 1], [], []>} : vector<16x16xbf16>, vector<16x32xbf16>, vector<16x32xf32> -> vector<16x32xf32>
    %96 = arith.truncf %95 : vector<16x32xf32> to vector<16x32xbf16>
    %c1_55 = arith.constant 1 : index
    %c0_56 = arith.constant 0 : index
    %c0_57 = arith.constant 0 : index
    %97 = vector.load %arg6[%c1_55, %c0_56, %c0_57] : memref<4x32x128xbf16, #tpu.memory_space<vmem>>, vector<1x32x128xbf16>
    %98 = vector.shape_cast %97 : vector<1x32x128xbf16> to vector<32x128xbf16>
    %cst_58 = arith.constant dense<0.000000e+00> : vector<16x128xf32>
    %99 = tpu.matmul %96, %98, %cst_58 {dimension_numbers = #tpu.dot_dimension_numbers<[1], [0], [0], [1], [0, 0, 1, 1], [], []>} : vector<16x32xbf16>, vector<32x128xbf16>, vector<16x128xf32> -> vector<16x128xf32>
    %100 = arith.addf %66, %99 : vector<16x128xf32>
    %c2 = arith.constant 2 : index
    %c0_59 = arith.constant 0 : index
    %c0_60 = arith.constant 0 : index
    %101 = vector.load %arg3[%c2, %c0_59, %c0_60] : memref<4x128x32xbf16, #tpu.memory_space<vmem>>, vector<1x128x32xbf16>
    %102 = vector.shape_cast %101 : vector<1x128x32xbf16> to vector<128x32xbf16>
    %cst_61 = arith.constant dense<0.000000e+00> : vector<16x32xf32>
    %103 = tpu.matmul %28, %102, %cst_61 {dimension_numbers = #tpu.dot_dimension_numbers<[1], [0], [0], [1], [0, 0, 1, 1], [], []>} : vector<16x128xbf16>, vector<128x32xbf16>, vector<16x32xf32> -> vector<16x32xf32>
    %c2_62 = arith.constant 2 : index
    %c0_63 = arith.constant 0 : index
    %c0_64 = arith.constant 0 : index
    %104 = vector.load %arg4[%c2_62, %c0_63, %c0_64] : memref<4x128x32xbf16, #tpu.memory_space<vmem>>, vector<1x128x32xbf16>
    %105 = vector.shape_cast %104 : vector<1x128x32xbf16> to vector<128x32xbf16>
    %cst_65 = arith.constant dense<0.000000e+00> : vector<16x32xf32>
    %106 = tpu.matmul %28, %105, %cst_65 {dimension_numbers = #tpu.dot_dimension_numbers<[1], [0], [0], [1], [0, 0, 1, 1], [], []>} : vector<16x128xbf16>, vector<128x32xbf16>, vector<16x32xf32> -> vector<16x32xf32>
    %c2_66 = arith.constant 2 : index
    %c0_67 = arith.constant 0 : index
    %c0_68 = arith.constant 0 : index
    %107 = vector.load %arg5[%c2_66, %c0_67, %c0_68] : memref<4x128x32xbf16, #tpu.memory_space<vmem>>, vector<1x128x32xbf16>
    %108 = vector.shape_cast %107 : vector<1x128x32xbf16> to vector<128x32xbf16>
    %cst_69 = arith.constant dense<0.000000e+00> : vector<16x32xf32>
    %109 = tpu.matmul %28, %108, %cst_69 {dimension_numbers = #tpu.dot_dimension_numbers<[1], [0], [0], [1], [0, 0, 1, 1], [], []>} : vector<16x128xbf16>, vector<128x32xbf16>, vector<16x32xf32> -> vector<16x32xf32>
    %110 = arith.truncf %103 : vector<16x32xf32> to vector<16x32xbf16>
    %111 = arith.truncf %106 : vector<16x32xf32> to vector<16x32xbf16>
    %cst_70 = arith.constant dense<0.000000e+00> : vector<16x16xf32>
    %112 = tpu.matmul %110, %111, %cst_70 {dimension_numbers = #tpu.dot_dimension_numbers<[1], [1], [0], [0], [0, 0, 1, 0], [], []>} : vector<16x32xbf16>, vector<16x32xbf16>, vector<16x16xf32> -> vector<16x16xf32>
    %cst_71 = arith.constant 0.176776692 : f32
    %113 = vector.broadcast %cst_71 : f32 to vector<16x16xf32>
    %114 = arith.mulf %112, %113 : vector<16x16xf32>
    %cst_72 = arith.constant -1.000000e+09 : f32
    %115 = vector.broadcast %cst_72 : f32 to vector<16x16xf32>
    %116 = arith.select %31, %114, %115 : vector<16x16xi1>, vector<16x16xf32>
    %cst_73 = arith.constant dense<0xFF800000> : vector<16xf32>
    %117 = vector.multi_reduction <maximumf>, %116, %cst_73 [1] : vector<16x16xf32> to vector<16xf32>
    %118 = vector.shape_cast %117 : vector<16xf32> to vector<16x1xf32>
    %119 = vector.broadcast %118 : vector<16x1xf32> to vector<16x16xf32>
    %120 = arith.subf %116, %119 : vector<16x16xf32>
    %121 = math.exp %120 : vector<16x16xf32>
    %cst_74 = arith.constant dense<0.000000e+00> : vector<16xf32>
    %122 = vector.multi_reduction <add>, %121, %cst_74 [1] : vector<16x16xf32> to vector<16xf32>
    %123 = vector.shape_cast %122 : vector<16xf32> to vector<16x1xf32>
    %124 = tpu.reciprocal %123 {approx = true} : vector<16x1xf32> -> vector<16x1xf32>
    %125 = vector.broadcast %124 : vector<16x1xf32> to vector<16x16xf32>
    %126 = arith.mulf %121, %125 : vector<16x16xf32>
    %127 = arith.truncf %126 : vector<16x16xf32> to vector<16x16xbf16>
    %128 = arith.truncf %109 : vector<16x32xf32> to vector<16x32xbf16>
    %cst_75 = arith.constant dense<0.000000e+00> : vector<16x32xf32>
    %129 = tpu.matmul %127, %128, %cst_75 {dimension_numbers = #tpu.dot_dimension_numbers<[1], [0], [0], [1], [0, 0, 1, 1], [], []>} : vector<16x16xbf16>, vector<16x32xbf16>, vector<16x32xf32> -> vector<16x32xf32>
    %130 = arith.truncf %129 : vector<16x32xf32> to vector<16x32xbf16>
    %c2_76 = arith.constant 2 : index
    %c0_77 = arith.constant 0 : index
    %c0_78 = arith.constant 0 : index
    %131 = vector.load %arg6[%c2_76, %c0_77, %c0_78] : memref<4x32x128xbf16, #tpu.memory_space<vmem>>, vector<1x32x128xbf16>
    %132 = vector.shape_cast %131 : vector<1x32x128xbf16> to vector<32x128xbf16>
    %cst_79 = arith.constant dense<0.000000e+00> : vector<16x128xf32>
    %133 = tpu.matmul %130, %132, %cst_79 {dimension_numbers = #tpu.dot_dimension_numbers<[1], [0], [0], [1], [0, 0, 1, 1], [], []>} : vector<16x32xbf16>, vector<32x128xbf16>, vector<16x128xf32> -> vector<16x128xf32>
    %134 = arith.addf %100, %133 : vector<16x128xf32>
    %c3 = arith.constant 3 : index
    %c0_80 = arith.constant 0 : index
    %c0_81 = arith.constant 0 : index
    %135 = vector.load %arg3[%c3, %c0_80, %c0_81] : memref<4x128x32xbf16, #tpu.memory_space<vmem>>, vector<1x128x32xbf16>
    %136 = vector.shape_cast %135 : vector<1x128x32xbf16> to vector<128x32xbf16>
    %cst_82 = arith.constant dense<0.000000e+00> : vector<16x32xf32>
    %137 = tpu.matmul %28, %136, %cst_82 {dimension_numbers = #tpu.dot_dimension_numbers<[1], [0], [0], [1], [0, 0, 1, 1], [], []>} : vector<16x128xbf16>, vector<128x32xbf16>, vector<16x32xf32> -> vector<16x32xf32>
    %c3_83 = arith.constant 3 : index
    %c0_84 = arith.constant 0 : index
    %c0_85 = arith.constant 0 : index
    %138 = vector.load %arg4[%c3_83, %c0_84, %c0_85] : memref<4x128x32xbf16, #tpu.memory_space<vmem>>, vector<1x128x32xbf16>
    %139 = vector.shape_cast %138 : vector<1x128x32xbf16> to vector<128x32xbf16>
    %cst_86 = arith.constant dense<0.000000e+00> : vector<16x32xf32>
    %140 = tpu.matmul %28, %139, %cst_86 {dimension_numbers = #tpu.dot_dimension_numbers<[1], [0], [0], [1], [0, 0, 1, 1], [], []>} : vector<16x128xbf16>, vector<128x32xbf16>, vector<16x32xf32> -> vector<16x32xf32>
    %c3_87 = arith.constant 3 : index
    %c0_88 = arith.constant 0 : index
    %c0_89 = arith.constant 0 : index
    %141 = vector.load %arg5[%c3_87, %c0_88, %c0_89] : memref<4x128x32xbf16, #tpu.memory_space<vmem>>, vector<1x128x32xbf16>
    %142 = vector.shape_cast %141 : vector<1x128x32xbf16> to vector<128x32xbf16>
    %cst_90 = arith.constant dense<0.000000e+00> : vector<16x32xf32>
    %143 = tpu.matmul %28, %142, %cst_90 {dimension_numbers = #tpu.dot_dimension_numbers<[1], [0], [0], [1], [0, 0, 1, 1], [], []>} : vector<16x128xbf16>, vector<128x32xbf16>, vector<16x32xf32> -> vector<16x32xf32>
    %144 = arith.truncf %137 : vector<16x32xf32> to vector<16x32xbf16>
    %145 = arith.truncf %140 : vector<16x32xf32> to vector<16x32xbf16>
    %cst_91 = arith.constant dense<0.000000e+00> : vector<16x16xf32>
    %146 = tpu.matmul %144, %145, %cst_91 {dimension_numbers = #tpu.dot_dimension_numbers<[1], [1], [0], [0], [0, 0, 1, 0], [], []>} : vector<16x32xbf16>, vector<16x32xbf16>, vector<16x16xf32> -> vector<16x16xf32>
    %cst_92 = arith.constant 0.176776692 : f32
    %147 = vector.broadcast %cst_92 : f32 to vector<16x16xf32>
    %148 = arith.mulf %146, %147 : vector<16x16xf32>
    %cst_93 = arith.constant -1.000000e+09 : f32
    %149 = vector.broadcast %cst_93 : f32 to vector<16x16xf32>
    %150 = arith.select %31, %148, %149 : vector<16x16xi1>, vector<16x16xf32>
    %cst_94 = arith.constant dense<0xFF800000> : vector<16xf32>
    %151 = vector.multi_reduction <maximumf>, %150, %cst_94 [1] : vector<16x16xf32> to vector<16xf32>
    %152 = vector.shape_cast %151 : vector<16xf32> to vector<16x1xf32>
    %153 = vector.broadcast %152 : vector<16x1xf32> to vector<16x16xf32>
    %154 = arith.subf %150, %153 : vector<16x16xf32>
    %155 = math.exp %154 : vector<16x16xf32>
    %cst_95 = arith.constant dense<0.000000e+00> : vector<16xf32>
    %156 = vector.multi_reduction <add>, %155, %cst_95 [1] : vector<16x16xf32> to vector<16xf32>
    %157 = vector.shape_cast %156 : vector<16xf32> to vector<16x1xf32>
    %158 = tpu.reciprocal %157 {approx = true} : vector<16x1xf32> -> vector<16x1xf32>
    %159 = vector.broadcast %158 : vector<16x1xf32> to vector<16x16xf32>
    %160 = arith.mulf %155, %159 : vector<16x16xf32>
    %161 = arith.truncf %160 : vector<16x16xf32> to vector<16x16xbf16>
    %162 = arith.truncf %143 : vector<16x32xf32> to vector<16x32xbf16>
    %cst_96 = arith.constant dense<0.000000e+00> : vector<16x32xf32>
    %163 = tpu.matmul %161, %162, %cst_96 {dimension_numbers = #tpu.dot_dimension_numbers<[1], [0], [0], [1], [0, 0, 1, 1], [], []>} : vector<16x16xbf16>, vector<16x32xbf16>, vector<16x32xf32> -> vector<16x32xf32>
    %164 = arith.truncf %163 : vector<16x32xf32> to vector<16x32xbf16>
    %c3_97 = arith.constant 3 : index
    %c0_98 = arith.constant 0 : index
    %c0_99 = arith.constant 0 : index
    %165 = vector.load %arg6[%c3_97, %c0_98, %c0_99] : memref<4x32x128xbf16, #tpu.memory_space<vmem>>, vector<1x32x128xbf16>
    %166 = vector.shape_cast %165 : vector<1x32x128xbf16> to vector<32x128xbf16>
    %cst_100 = arith.constant dense<0.000000e+00> : vector<16x128xf32>
    %167 = tpu.matmul %164, %166, %cst_100 {dimension_numbers = #tpu.dot_dimension_numbers<[1], [0], [0], [1], [0, 0, 1, 1], [], []>} : vector<16x32xbf16>, vector<32x128xbf16>, vector<16x128xf32> -> vector<16x128xf32>
    %168 = arith.addf %134, %167 : vector<16x128xf32>
    %169 = vector.broadcast %25 : vector<1x128xf32> to vector<16x128xf32>
    %170 = arith.addf %168, %169 : vector<16x128xf32>
    %171 = arith.addf %170, %0 : vector<16x128xf32>
    %c0_101 = arith.constant 0 : index
    %c0_102 = arith.constant 0 : index
    %172 = vector.load %arg10[%c0_101, %c0_102] : memref<16x128xf32, #tpu.memory_space<vmem>>, vector<16x128xf32>
    tpu.vector_store %arg10[%c0_101, %c0_102], %171 {strides = array<i32>} : memref<16x128xf32, #tpu.memory_space<vmem>>, vector<16x128xf32>,
    return
  }
}

module attributes {stable_mosaic.version = 11 : i64} {
  func.func @_attn_ada_kernel(%arg0: memref<16x128xf32, #tpu.memory_space<vmem>>, %arg1: memref<2x128xf32, #tpu.memory_space<vmem>>, %arg2: memref<128x128xbf16, #tpu.memory_space<vmem>>, %arg3: memref<1x128xf32, #tpu.memory_space<vmem>>, %arg4: memref<128x128xbf16, #tpu.memory_space<vmem>>, %arg5: memref<1x128xf32, #tpu.memory_space<vmem>>, %arg6: memref<16x2xf32, #tpu.memory_space<vmem>>, %arg7: memref<4x128x32xbf16, #tpu.memory_space<vmem>>, %arg8: memref<4x128x32xbf16, #tpu.memory_space<vmem>>, %arg9: memref<4x128x32xbf16, #tpu.memory_space<vmem>>, %arg10: memref<4x32x128xbf16, #tpu.memory_space<vmem>>, %arg11: memref<1x128xf32, #tpu.memory_space<vmem>>, %arg12: memref<16x1xi32, #tpu.memory_space<vmem>>, %arg13: memref<1x16xi32, #tpu.memory_space<vmem>>, %arg14: memref<16x128xf32, #tpu.memory_space<vmem>>) attributes {dimension_semantics = [], scalar_prefetch = 0 : i64, scratch_operands = 0 : i64, tpu.core_type = #tpu.core_type<tc>} {
    %c0 = arith.constant 0 : index
    %c0_0 = arith.constant 0 : index
    %0 = vector.load %arg0[%c0, %c0_0] : memref<16x128xf32, #tpu.memory_space<vmem>>, vector<16x128xf32>
    %c0_1 = arith.constant 0 : index
    %c0_2 = arith.constant 0 : index
    %1 = vector.load %arg1[%c0_1, %c0_2] : memref<2x128xf32, #tpu.memory_space<vmem>>, vector<2x128xf32>
    %2 = arith.negf %1 : vector<2x128xf32>
    %3 = math.exp %2 : vector<2x128xf32>
    %cst = arith.constant 1.000000e+00 : f32
    %4 = vector.broadcast %cst : f32 to vector<2x128xf32>
    %5 = arith.addf %4, %3 : vector<2x128xf32>
    %6 = arith.divf %4, %5 : vector<2x128xf32>
    %7 = arith.mulf %1, %6 : vector<2x128xf32>
    %8 = arith.truncf %7 : vector<2x128xf32> to vector<2x128xbf16>
    %c0_3 = arith.constant 0 : index
    %c0_4 = arith.constant 0 : index
    %9 = vector.load %arg2[%c0_3, %c0_4] : memref<128x128xbf16, #tpu.memory_space<vmem>>, vector<128x128xbf16>
    %cst_5 = arith.constant dense<0.000000e+00> : vector<2x128xf32>
    %10 = tpu.matmul %8, %9, %cst_5 {dimension_numbers = #tpu.dot_dimension_numbers<[1], [0], [0], [1], [0, 0, 1, 1], [], []>} : vector<2x128xbf16>, vector<128x128xbf16>, vector<2x128xf32> -> vector<2x128xf32>
    %c0_6 = arith.constant 0 : index
    %c0_7 = arith.constant 0 : index
    %11 = vector.load %arg3[%c0_6, %c0_7] : memref<1x128xf32, #tpu.memory_space<vmem>>, vector<1x128xf32>
    %12 = vector.broadcast %11 : vector<1x128xf32> to vector<2x128xf32>
    %13 = arith.addf %10, %12 : vector<2x128xf32>
    %c0_8 = arith.constant 0 : index
    %c0_9 = arith.constant 0 : index
    %14 = vector.load %arg4[%c0_8, %c0_9] : memref<128x128xbf16, #tpu.memory_space<vmem>>, vector<128x128xbf16>
    %cst_10 = arith.constant dense<0.000000e+00> : vector<2x128xf32>
    %15 = tpu.matmul %8, %14, %cst_10 {dimension_numbers = #tpu.dot_dimension_numbers<[1], [0], [0], [1], [0, 0, 1, 1], [], []>} : vector<2x128xbf16>, vector<128x128xbf16>, vector<2x128xf32> -> vector<2x128xf32>
    %c0_11 = arith.constant 0 : index
    %c0_12 = arith.constant 0 : index
    %16 = vector.load %arg5[%c0_11, %c0_12] : memref<1x128xf32, #tpu.memory_space<vmem>>, vector<1x128xf32>
    %17 = vector.broadcast %16 : vector<1x128xf32> to vector<2x128xf32>
    %18 = arith.addf %15, %17 : vector<2x128xf32>
    %c0_13 = arith.constant 0 : index
    %c0_14 = arith.constant 0 : index
    %19 = vector.load %arg6[%c0_13, %c0_14] : memref<16x2xf32, #tpu.memory_space<vmem>>, vector<16x2xf32>
    %cst_15 = arith.constant dense<0.000000e+00> : vector<16x128xf32>
    %20 = tpu.matmul %19, %13, %cst_15 {dimension_numbers = #tpu.dot_dimension_numbers<[1], [0], [0], [1], [0, 0, 1, 1], [], []>} : vector<16x2xf32>, vector<2x128xf32>, vector<16x128xf32> -> vector<16x128xf32>
    %cst_16 = arith.constant dense<0.000000e+00> : vector<16x128xf32>
    %21 = tpu.matmul %19, %18, %cst_16 {dimension_numbers = #tpu.dot_dimension_numbers<[1], [0], [0], [1], [0, 0, 1, 1], [], []>} : vector<16x2xf32>, vector<2x128xf32>, vector<16x128xf32> -> vector<16x128xf32>
    %cst_17 = arith.constant dense<0.000000e+00> : vector<16xf32>
    %22 = vector.multi_reduction <add>, %0, %cst_17 [1] : vector<16x128xf32> to vector<16xf32>
    %23 = vector.shape_cast %22 : vector<16xf32> to vector<16x1xf32>
    %cst_18 = arith.constant 1.280000e+02 : f32
    %24 = vector.broadcast %cst_18 : f32 to vector<16x1xf32>
    %25 = arith.divf %23, %24 : vector<16x1xf32>
    %26 = vector.broadcast %25 : vector<16x1xf32> to vector<16x128xf32>
    %27 = arith.subf %0, %26 : vector<16x128xf32>
    %28 = arith.mulf %27, %27 : vector<16x128xf32>
    %cst_19 = arith.constant dense<0.000000e+00> : vector<16xf32>
    %29 = vector.multi_reduction <add>, %28, %cst_19 [1] : vector<16x128xf32> to vector<16xf32>
    %30 = vector.shape_cast %29 : vector<16xf32> to vector<16x1xf32>
    %cst_20 = arith.constant 1.280000e+02 : f32
    %31 = vector.broadcast %cst_20 : f32 to vector<16x1xf32>
    %32 = arith.divf %30, %31 : vector<16x1xf32>
    %33 = vector.broadcast %25 : vector<16x1xf32> to vector<16x128xf32>
    %34 = arith.subf %0, %33 : vector<16x128xf32>
    %cst_21 = arith.constant 9.99999974E-6 : f32
    %35 = vector.broadcast %cst_21 : f32 to vector<16x1xf32>
    %36 = arith.addf %32, %35 : vector<16x1xf32>
    %37 = math.rsqrt %36 : vector<16x1xf32>
    %38 = vector.broadcast %37 : vector<16x1xf32> to vector<16x128xf32>
    %39 = arith.mulf %34, %38 : vector<16x128xf32>
    %cst_22 = arith.constant 1.000000e+00 : f32
    %40 = vector.broadcast %cst_22 : f32 to vector<16x128xf32>
    %41 = arith.addf %40, %20 : vector<16x128xf32>
    %42 = arith.mulf %39, %41 : vector<16x128xf32>
    %43 = arith.addf %42, %21 : vector<16x128xf32>
    %c0_23 = arith.constant 0 : index
    %c0_24 = arith.constant 0 : index
    %44 = vector.load %arg11[%c0_23, %c0_24] : memref<1x128xf32, #tpu.memory_space<vmem>>, vector<1x128xf32>
    %c0_25 = arith.constant 0 : index
    %c0_26 = arith.constant 0 : index
    %45 = vector.load %arg12[%c0_25, %c0_26] : memref<16x1xi32, #tpu.memory_space<vmem>>, vector<16x1xi32>
    %c0_27 = arith.constant 0 : index
    %c0_28 = arith.constant 0 : index
    %46 = vector.load %arg13[%c0_27, %c0_28] : memref<1x16xi32, #tpu.memory_space<vmem>>, vector<1x16xi32>
    %47 = arith.truncf %43 : vector<16x128xf32> to vector<16x128xbf16>
    %48 = vector.broadcast %45 : vector<16x1xi32> to vector<16x16xi32>
    %49 = vector.broadcast %46 : vector<1x16xi32> to vector<16x16xi32>
    %50 = arith.cmpi eq, %48, %49 : vector<16x16xi32>
    %cst_29 = arith.constant 0.000000e+00 : f32
    %51 = vector.broadcast %cst_29 : f32 to vector<16x128xf32>
    %c0_30 = arith.constant 0 : index
    %c0_31 = arith.constant 0 : index
    %c0_32 = arith.constant 0 : index
    %52 = vector.load %arg7[%c0_30, %c0_31, %c0_32] : memref<4x128x32xbf16, #tpu.memory_space<vmem>>, vector<1x128x32xbf16>
    %53 = vector.shape_cast %52 : vector<1x128x32xbf16> to vector<128x32xbf16>
    %cst_33 = arith.constant dense<0.000000e+00> : vector<16x32xf32>
    %54 = tpu.matmul %47, %53, %cst_33 {dimension_numbers = #tpu.dot_dimension_numbers<[1], [0], [0], [1], [0, 0, 1, 1], [], []>} : vector<16x128xbf16>, vector<128x32xbf16>, vector<16x32xf32> -> vector<16x32xf32>
    %c0_34 = arith.constant 0 : index
    %c0_35 = arith.constant 0 : index
    %c0_36 = arith.constant 0 : index
    %55 = vector.load %arg8[%c0_34, %c0_35, %c0_36] : memref<4x128x32xbf16, #tpu.memory_space<vmem>>, vector<1x128x32xbf16>
    %56 = vector.shape_cast %55 : vector<1x128x32xbf16> to vector<128x32xbf16>
    %cst_37 = arith.constant dense<0.000000e+00> : vector<16x32xf32>
    %57 = tpu.matmul %47, %56, %cst_37 {dimension_numbers = #tpu.dot_dimension_numbers<[1], [0], [0], [1], [0, 0, 1, 1], [], []>} : vector<16x128xbf16>, vector<128x32xbf16>, vector<16x32xf32> -> vector<16x32xf32>
    %c0_38 = arith.constant 0 : index
    %c0_39 = arith.constant 0 : index
    %c0_40 = arith.constant 0 : index
    %58 = vector.load %arg9[%c0_38, %c0_39, %c0_40] : memref<4x128x32xbf16, #tpu.memory_space<vmem>>, vector<1x128x32xbf16>
    %59 = vector.shape_cast %58 : vector<1x128x32xbf16> to vector<128x32xbf16>
    %cst_41 = arith.constant dense<0.000000e+00> : vector<16x32xf32>
    %60 = tpu.matmul %47, %59, %cst_41 {dimension_numbers = #tpu.dot_dimension_numbers<[1], [0], [0], [1], [0, 0, 1, 1], [], []>} : vector<16x128xbf16>, vector<128x32xbf16>, vector<16x32xf32> -> vector<16x32xf32>
    %61 = arith.truncf %54 : vector<16x32xf32> to vector<16x32xbf16>
    %62 = arith.truncf %57 : vector<16x32xf32> to vector<16x32xbf16>
    %cst_42 = arith.constant dense<0.000000e+00> : vector<16x16xf32>
    %63 = tpu.matmul %61, %62, %cst_42 {dimension_numbers = #tpu.dot_dimension_numbers<[1], [1], [0], [0], [0, 0, 1, 0], [], []>} : vector<16x32xbf16>, vector<16x32xbf16>, vector<16x16xf32> -> vector<16x16xf32>
    %cst_43 = arith.constant 0.176776692 : f32
    %64 = vector.broadcast %cst_43 : f32 to vector<16x16xf32>
    %65 = arith.mulf %63, %64 : vector<16x16xf32>
    %cst_44 = arith.constant -1.000000e+09 : f32
    %66 = vector.broadcast %cst_44 : f32 to vector<16x16xf32>
    %67 = arith.select %50, %65, %66 : vector<16x16xi1>, vector<16x16xf32>
    %cst_45 = arith.constant dense<0xFF800000> : vector<16xf32>
    %68 = vector.multi_reduction <maximumf>, %67, %cst_45 [1] : vector<16x16xf32> to vector<16xf32>
    %69 = vector.shape_cast %68 : vector<16xf32> to vector<16x1xf32>
    %70 = vector.broadcast %69 : vector<16x1xf32> to vector<16x16xf32>
    %71 = arith.subf %67, %70 : vector<16x16xf32>
    %72 = math.exp %71 : vector<16x16xf32>
    %cst_46 = arith.constant dense<0.000000e+00> : vector<16xf32>
    %73 = vector.multi_reduction <add>, %72, %cst_46 [1] : vector<16x16xf32> to vector<16xf32>
    %74 = vector.shape_cast %73 : vector<16xf32> to vector<16x1xf32>
    %75 = tpu.reciprocal %74 {approx = true} : vector<16x1xf32> -> vector<16x1xf32>
    %76 = vector.broadcast %75 : vector<16x1xf32> to vector<16x16xf32>
    %77 = arith.mulf %72, %76 : vector<16x16xf32>
    %78 = arith.truncf %77 : vector<16x16xf32> to vector<16x16xbf16>
    %79 = arith.truncf %60 : vector<16x32xf32> to vector<16x32xbf16>
    %cst_47 = arith.constant dense<0.000000e+00> : vector<16x32xf32>
    %80 = tpu.matmul %78, %79, %cst_47 {dimension_numbers = #tpu.dot_dimension_numbers<[1], [0], [0], [1], [0, 0, 1, 1], [], []>} : vector<16x16xbf16>, vector<16x32xbf16>, vector<16x32xf32> -> vector<16x32xf32>
    %81 = arith.truncf %80 : vector<16x32xf32> to vector<16x32xbf16>
    %c0_48 = arith.constant 0 : index
    %c0_49 = arith.constant 0 : index
    %c0_50 = arith.constant 0 : index
    %82 = vector.load %arg10[%c0_48, %c0_49, %c0_50] : memref<4x32x128xbf16, #tpu.memory_space<vmem>>, vector<1x32x128xbf16>
    %83 = vector.shape_cast %82 : vector<1x32x128xbf16> to vector<32x128xbf16>
    %cst_51 = arith.constant dense<0.000000e+00> : vector<16x128xf32>
    %84 = tpu.matmul %81, %83, %cst_51 {dimension_numbers = #tpu.dot_dimension_numbers<[1], [0], [0], [1], [0, 0, 1, 1], [], []>} : vector<16x32xbf16>, vector<32x128xbf16>, vector<16x128xf32> -> vector<16x128xf32>
    %85 = arith.addf %51, %84 : vector<16x128xf32>
    %c1 = arith.constant 1 : index
    %c0_52 = arith.constant 0 : index
    %c0_53 = arith.constant 0 : index
    %86 = vector.load %arg7[%c1, %c0_52, %c0_53] : memref<4x128x32xbf16, #tpu.memory_space<vmem>>, vector<1x128x32xbf16>
    %87 = vector.shape_cast %86 : vector<1x128x32xbf16> to vector<128x32xbf16>
    %cst_54 = arith.constant dense<0.000000e+00> : vector<16x32xf32>
    %88 = tpu.matmul %47, %87, %cst_54 {dimension_numbers = #tpu.dot_dimension_numbers<[1], [0], [0], [1], [0, 0, 1, 1], [], []>} : vector<16x128xbf16>, vector<128x32xbf16>, vector<16x32xf32> -> vector<16x32xf32>
    %c1_55 = arith.constant 1 : index
    %c0_56 = arith.constant 0 : index
    %c0_57 = arith.constant 0 : index
    %89 = vector.load %arg8[%c1_55, %c0_56, %c0_57] : memref<4x128x32xbf16, #tpu.memory_space<vmem>>, vector<1x128x32xbf16>
    %90 = vector.shape_cast %89 : vector<1x128x32xbf16> to vector<128x32xbf16>
    %cst_58 = arith.constant dense<0.000000e+00> : vector<16x32xf32>
    %91 = tpu.matmul %47, %90, %cst_58 {dimension_numbers = #tpu.dot_dimension_numbers<[1], [0], [0], [1], [0, 0, 1, 1], [], []>} : vector<16x128xbf16>, vector<128x32xbf16>, vector<16x32xf32> -> vector<16x32xf32>
    %c1_59 = arith.constant 1 : index
    %c0_60 = arith.constant 0 : index
    %c0_61 = arith.constant 0 : index
    %92 = vector.load %arg9[%c1_59, %c0_60, %c0_61] : memref<4x128x32xbf16, #tpu.memory_space<vmem>>, vector<1x128x32xbf16>
    %93 = vector.shape_cast %92 : vector<1x128x32xbf16> to vector<128x32xbf16>
    %cst_62 = arith.constant dense<0.000000e+00> : vector<16x32xf32>
    %94 = tpu.matmul %47, %93, %cst_62 {dimension_numbers = #tpu.dot_dimension_numbers<[1], [0], [0], [1], [0, 0, 1, 1], [], []>} : vector<16x128xbf16>, vector<128x32xbf16>, vector<16x32xf32> -> vector<16x32xf32>
    %95 = arith.truncf %88 : vector<16x32xf32> to vector<16x32xbf16>
    %96 = arith.truncf %91 : vector<16x32xf32> to vector<16x32xbf16>
    %cst_63 = arith.constant dense<0.000000e+00> : vector<16x16xf32>
    %97 = tpu.matmul %95, %96, %cst_63 {dimension_numbers = #tpu.dot_dimension_numbers<[1], [1], [0], [0], [0, 0, 1, 0], [], []>} : vector<16x32xbf16>, vector<16x32xbf16>, vector<16x16xf32> -> vector<16x16xf32>
    %cst_64 = arith.constant 0.176776692 : f32
    %98 = vector.broadcast %cst_64 : f32 to vector<16x16xf32>
    %99 = arith.mulf %97, %98 : vector<16x16xf32>
    %cst_65 = arith.constant -1.000000e+09 : f32
    %100 = vector.broadcast %cst_65 : f32 to vector<16x16xf32>
    %101 = arith.select %50, %99, %100 : vector<16x16xi1>, vector<16x16xf32>
    %cst_66 = arith.constant dense<0xFF800000> : vector<16xf32>
    %102 = vector.multi_reduction <maximumf>, %101, %cst_66 [1] : vector<16x16xf32> to vector<16xf32>
    %103 = vector.shape_cast %102 : vector<16xf32> to vector<16x1xf32>
    %104 = vector.broadcast %103 : vector<16x1xf32> to vector<16x16xf32>
    %105 = arith.subf %101, %104 : vector<16x16xf32>
    %106 = math.exp %105 : vector<16x16xf32>
    %cst_67 = arith.constant dense<0.000000e+00> : vector<16xf32>
    %107 = vector.multi_reduction <add>, %106, %cst_67 [1] : vector<16x16xf32> to vector<16xf32>
    %108 = vector.shape_cast %107 : vector<16xf32> to vector<16x1xf32>
    %109 = tpu.reciprocal %108 {approx = true} : vector<16x1xf32> -> vector<16x1xf32>
    %110 = vector.broadcast %109 : vector<16x1xf32> to vector<16x16xf32>
    %111 = arith.mulf %106, %110 : vector<16x16xf32>
    %112 = arith.truncf %111 : vector<16x16xf32> to vector<16x16xbf16>
    %113 = arith.truncf %94 : vector<16x32xf32> to vector<16x32xbf16>
    %cst_68 = arith.constant dense<0.000000e+00> : vector<16x32xf32>
    %114 = tpu.matmul %112, %113, %cst_68 {dimension_numbers = #tpu.dot_dimension_numbers<[1], [0], [0], [1], [0, 0, 1, 1], [], []>} : vector<16x16xbf16>, vector<16x32xbf16>, vector<16x32xf32> -> vector<16x32xf32>
    %115 = arith.truncf %114 : vector<16x32xf32> to vector<16x32xbf16>
    %c1_69 = arith.constant 1 : index
    %c0_70 = arith.constant 0 : index
    %c0_71 = arith.constant 0 : index
    %116 = vector.load %arg10[%c1_69, %c0_70, %c0_71] : memref<4x32x128xbf16, #tpu.memory_space<vmem>>, vector<1x32x128xbf16>
    %117 = vector.shape_cast %116 : vector<1x32x128xbf16> to vector<32x128xbf16>
    %cst_72 = arith.constant dense<0.000000e+00> : vector<16x128xf32>
    %118 = tpu.matmul %115, %117, %cst_72 {dimension_numbers = #tpu.dot_dimension_numbers<[1], [0], [0], [1], [0, 0, 1, 1], [], []>} : vector<16x32xbf16>, vector<32x128xbf16>, vector<16x128xf32> -> vector<16x128xf32>
    %119 = arith.addf %85, %118 : vector<16x128xf32>
    %c2 = arith.constant 2 : index
    %c0_73 = arith.constant 0 : index
    %c0_74 = arith.constant 0 : index
    %120 = vector.load %arg7[%c2, %c0_73, %c0_74] : memref<4x128x32xbf16, #tpu.memory_space<vmem>>, vector<1x128x32xbf16>
    %121 = vector.shape_cast %120 : vector<1x128x32xbf16> to vector<128x32xbf16>
    %cst_75 = arith.constant dense<0.000000e+00> : vector<16x32xf32>
    %122 = tpu.matmul %47, %121, %cst_75 {dimension_numbers = #tpu.dot_dimension_numbers<[1], [0], [0], [1], [0, 0, 1, 1], [], []>} : vector<16x128xbf16>, vector<128x32xbf16>, vector<16x32xf32> -> vector<16x32xf32>
    %c2_76 = arith.constant 2 : index
    %c0_77 = arith.constant 0 : index
    %c0_78 = arith.constant 0 : index
    %123 = vector.load %arg8[%c2_76, %c0_77, %c0_78] : memref<4x128x32xbf16, #tpu.memory_space<vmem>>, vector<1x128x32xbf16>
    %124 = vector.shape_cast %123 : vector<1x128x32xbf16> to vector<128x32xbf16>
    %cst_79 = arith.constant dense<0.000000e+00> : vector<16x32xf32>
    %125 = tpu.matmul %47, %124, %cst_79 {dimension_numbers = #tpu.dot_dimension_numbers<[1], [0], [0], [1], [0, 0, 1, 1], [], []>} : vector<16x128xbf16>, vector<128x32xbf16>, vector<16x32xf32> -> vector<16x32xf32>
    %c2_80 = arith.constant 2 : index
    %c0_81 = arith.constant 0 : index
    %c0_82 = arith.constant 0 : index
    %126 = vector.load %arg9[%c2_80, %c0_81, %c0_82] : memref<4x128x32xbf16, #tpu.memory_space<vmem>>, vector<1x128x32xbf16>
    %127 = vector.shape_cast %126 : vector<1x128x32xbf16> to vector<128x32xbf16>
    %cst_83 = arith.constant dense<0.000000e+00> : vector<16x32xf32>
    %128 = tpu.matmul %47, %127, %cst_83 {dimension_numbers = #tpu.dot_dimension_numbers<[1], [0], [0], [1], [0, 0, 1, 1], [], []>} : vector<16x128xbf16>, vector<128x32xbf16>, vector<16x32xf32> -> vector<16x32xf32>
    %129 = arith.truncf %122 : vector<16x32xf32> to vector<16x32xbf16>
    %130 = arith.truncf %125 : vector<16x32xf32> to vector<16x32xbf16>
    %cst_84 = arith.constant dense<0.000000e+00> : vector<16x16xf32>
    %131 = tpu.matmul %129, %130, %cst_84 {dimension_numbers = #tpu.dot_dimension_numbers<[1], [1], [0], [0], [0, 0, 1, 0], [], []>} : vector<16x32xbf16>, vector<16x32xbf16>, vector<16x16xf32> -> vector<16x16xf32>
    %cst_85 = arith.constant 0.176776692 : f32
    %132 = vector.broadcast %cst_85 : f32 to vector<16x16xf32>
    %133 = arith.mulf %131, %132 : vector<16x16xf32>
    %cst_86 = arith.constant -1.000000e+09 : f32
    %134 = vector.broadcast %cst_86 : f32 to vector<16x16xf32>
    %135 = arith.select %50, %133, %134 : vector<16x16xi1>, vector<16x16xf32>
    %cst_87 = arith.constant dense<0xFF800000> : vector<16xf32>
    %136 = vector.multi_reduction <maximumf>, %135, %cst_87 [1] : vector<16x16xf32> to vector<16xf32>
    %137 = vector.shape_cast %136 : vector<16xf32> to vector<16x1xf32>
    %138 = vector.broadcast %137 : vector<16x1xf32> to vector<16x16xf32>
    %139 = arith.subf %135, %138 : vector<16x16xf32>
    %140 = math.exp %139 : vector<16x16xf32>
    %cst_88 = arith.constant dense<0.000000e+00> : vector<16xf32>
    %141 = vector.multi_reduction <add>, %140, %cst_88 [1] : vector<16x16xf32> to vector<16xf32>
    %142 = vector.shape_cast %141 : vector<16xf32> to vector<16x1xf32>
    %143 = tpu.reciprocal %142 {approx = true} : vector<16x1xf32> -> vector<16x1xf32>
    %144 = vector.broadcast %143 : vector<16x1xf32> to vector<16x16xf32>
    %145 = arith.mulf %140, %144 : vector<16x16xf32>
    %146 = arith.truncf %145 : vector<16x16xf32> to vector<16x16xbf16>
    %147 = arith.truncf %128 : vector<16x32xf32> to vector<16x32xbf16>
    %cst_89 = arith.constant dense<0.000000e+00> : vector<16x32xf32>
    %148 = tpu.matmul %146, %147, %cst_89 {dimension_numbers = #tpu.dot_dimension_numbers<[1], [0], [0], [1], [0, 0, 1, 1], [], []>} : vector<16x16xbf16>, vector<16x32xbf16>, vector<16x32xf32> -> vector<16x32xf32>
    %149 = arith.truncf %148 : vector<16x32xf32> to vector<16x32xbf16>
    %c2_90 = arith.constant 2 : index
    %c0_91 = arith.constant 0 : index
    %c0_92 = arith.constant 0 : index
    %150 = vector.load %arg10[%c2_90, %c0_91, %c0_92] : memref<4x32x128xbf16, #tpu.memory_space<vmem>>, vector<1x32x128xbf16>
    %151 = vector.shape_cast %150 : vector<1x32x128xbf16> to vector<32x128xbf16>
    %cst_93 = arith.constant dense<0.000000e+00> : vector<16x128xf32>
    %152 = tpu.matmul %149, %151, %cst_93 {dimension_numbers = #tpu.dot_dimension_numbers<[1], [0], [0], [1], [0, 0, 1, 1], [], []>} : vector<16x32xbf16>, vector<32x128xbf16>, vector<16x128xf32> -> vector<16x128xf32>
    %153 = arith.addf %119, %152 : vector<16x128xf32>
    %c3 = arith.constant 3 : index
    %c0_94 = arith.constant 0 : index
    %c0_95 = arith.constant 0 : index
    %154 = vector.load %arg7[%c3, %c0_94, %c0_95] : memref<4x128x32xbf16, #tpu.memory_space<vmem>>, vector<1x128x32xbf16>
    %155 = vector.shape_cast %154 : vector<1x128x32xbf16> to vector<128x32xbf16>
    %cst_96 = arith.constant dense<0.000000e+00> : vector<16x32xf32>
    %156 = tpu.matmul %47, %155, %cst_96 {dimension_numbers = #tpu.dot_dimension_numbers<[1], [0], [0], [1], [0, 0, 1, 1], [], []>} : vector<16x128xbf16>, vector<128x32xbf16>, vector<16x32xf32> -> vector<16x32xf32>
    %c3_97 = arith.constant 3 : index
    %c0_98 = arith.constant 0 : index
    %c0_99 = arith.constant 0 : index
    %157 = vector.load %arg8[%c3_97, %c0_98, %c0_99] : memref<4x128x32xbf16, #tpu.memory_space<vmem>>, vector<1x128x32xbf16>
    %158 = vector.shape_cast %157 : vector<1x128x32xbf16> to vector<128x32xbf16>
    %cst_100 = arith.constant dense<0.000000e+00> : vector<16x32xf32>
    %159 = tpu.matmul %47, %158, %cst_100 {dimension_numbers = #tpu.dot_dimension_numbers<[1], [0], [0], [1], [0, 0, 1, 1], [], []>} : vector<16x128xbf16>, vector<128x32xbf16>, vector<16x32xf32> -> vector<16x32xf32>
    %c3_101 = arith.constant 3 : index
    %c0_102 = arith.constant 0 : index
    %c0_103 = arith.constant 0 : index
    %160 = vector.load %arg9[%c3_101, %c0_102, %c0_103] : memref<4x128x32xbf16, #tpu.memory_space<vmem>>, vector<1x128x32xbf16>
    %161 = vector.shape_cast %160 : vector<1x128x32xbf16> to vector<128x32xbf16>
    %cst_104 = arith.constant dense<0.000000e+00> : vector<16x32xf32>
    %162 = tpu.matmul %47, %161, %cst_104 {dimension_numbers = #tpu.dot_dimension_numbers<[1], [0], [0], [1], [0, 0, 1, 1], [], []>} : vector<16x128xbf16>, vector<128x32xbf16>, vector<16x32xf32> -> vector<16x32xf32>
    %163 = arith.truncf %156 : vector<16x32xf32> to vector<16x32xbf16>
    %164 = arith.truncf %159 : vector<16x32xf32> to vector<16x32xbf16>
    %cst_105 = arith.constant dense<0.000000e+00> : vector<16x16xf32>
    %165 = tpu.matmul %163, %164, %cst_105 {dimension_numbers = #tpu.dot_dimension_numbers<[1], [1], [0], [0], [0, 0, 1, 0], [], []>} : vector<16x32xbf16>, vector<16x32xbf16>, vector<16x16xf32> -> vector<16x16xf32>
    %cst_106 = arith.constant 0.176776692 : f32
    %166 = vector.broadcast %cst_106 : f32 to vector<16x16xf32>
    %167 = arith.mulf %165, %166 : vector<16x16xf32>
    %cst_107 = arith.constant -1.000000e+09 : f32
    %168 = vector.broadcast %cst_107 : f32 to vector<16x16xf32>
    %169 = arith.select %50, %167, %168 : vector<16x16xi1>, vector<16x16xf32>
    %cst_108 = arith.constant dense<0xFF800000> : vector<16xf32>
    %170 = vector.multi_reduction <maximumf>, %169, %cst_108 [1] : vector<16x16xf32> to vector<16xf32>
    %171 = vector.shape_cast %170 : vector<16xf32> to vector<16x1xf32>
    %172 = vector.broadcast %171 : vector<16x1xf32> to vector<16x16xf32>
    %173 = arith.subf %169, %172 : vector<16x16xf32>
    %174 = math.exp %173 : vector<16x16xf32>
    %cst_109 = arith.constant dense<0.000000e+00> : vector<16xf32>
    %175 = vector.multi_reduction <add>, %174, %cst_109 [1] : vector<16x16xf32> to vector<16xf32>
    %176 = vector.shape_cast %175 : vector<16xf32> to vector<16x1xf32>
    %177 = tpu.reciprocal %176 {approx = true} : vector<16x1xf32> -> vector<16x1xf32>
    %178 = vector.broadcast %177 : vector<16x1xf32> to vector<16x16xf32>
    %179 = arith.mulf %174, %178 : vector<16x16xf32>
    %180 = arith.truncf %179 : vector<16x16xf32> to vector<16x16xbf16>
    %181 = arith.truncf %162 : vector<16x32xf32> to vector<16x32xbf16>
    %cst_110 = arith.constant dense<0.000000e+00> : vector<16x32xf32>
    %182 = tpu.matmul %180, %181, %cst_110 {dimension_numbers = #tpu.dot_dimension_numbers<[1], [0], [0], [1], [0, 0, 1, 1], [], []>} : vector<16x16xbf16>, vector<16x32xbf16>, vector<16x32xf32> -> vector<16x32xf32>
    %183 = arith.truncf %182 : vector<16x32xf32> to vector<16x32xbf16>
    %c3_111 = arith.constant 3 : index
    %c0_112 = arith.constant 0 : index
    %c0_113 = arith.constant 0 : index
    %184 = vector.load %arg10[%c3_111, %c0_112, %c0_113] : memref<4x32x128xbf16, #tpu.memory_space<vmem>>, vector<1x32x128xbf16>
    %185 = vector.shape_cast %184 : vector<1x32x128xbf16> to vector<32x128xbf16>
    %cst_114 = arith.constant dense<0.000000e+00> : vector<16x128xf32>
    %186 = tpu.matmul %183, %185, %cst_114 {dimension_numbers = #tpu.dot_dimension_numbers<[1], [0], [0], [1], [0, 0, 1, 1], [], []>} : vector<16x32xbf16>, vector<32x128xbf16>, vector<16x128xf32> -> vector<16x128xf32>
    %187 = arith.addf %153, %186 : vector<16x128xf32>
    %188 = vector.broadcast %44 : vector<1x128xf32> to vector<16x128xf32>
    %189 = arith.addf %187, %188 : vector<16x128xf32>
    %190 = arith.addf %189, %0 : vector<16x128xf32>
    %c0_115 = arith.constant 0 : index
    %c0_116 = arith.constant 0 : index
    %191 = vector.load %arg14[%c0_115, %c0_116] : memref<16x128xf32, #tpu.memory_space<vmem>>, vector<16x128xf32>
    tpu.vector_store %arg14[%c0_115, %c0_116], %190 {strides = array<i32>} : memref<16x128xf32, #tpu.memory_space<vmem>>, vector<16x128xf32>,
    return
  }
}

module attributes {stable_mosaic.version = 11 : i64} {
  func.func @_ff_kernel(%arg0: memref<16x128xf32, #tpu.memory_space<vmem>>, %arg1: memref<1x128xf32, #tpu.memory_space<vmem>>, %arg2: memref<1x128xf32, #tpu.memory_space<vmem>>, %arg3: memref<128x512xbf16, #tpu.memory_space<vmem>>, %arg4: memref<1x512xf32, #tpu.memory_space<vmem>>, %arg5: memref<128x512xbf16, #tpu.memory_space<vmem>>, %arg6: memref<1x512xf32, #tpu.memory_space<vmem>>, %arg7: memref<512x128xbf16, #tpu.memory_space<vmem>>, %arg8: memref<1x128xf32, #tpu.memory_space<vmem>>, %arg9: memref<16x128xf32, #tpu.memory_space<vmem>>) attributes {dimension_semantics = [], scalar_prefetch = 0 : i64, scratch_operands = 0 : i64, tpu.core_type = #tpu.core_type<tc>} {
    %c0 = arith.constant 0 : index
    %c0_0 = arith.constant 0 : index
    %0 = vector.load %arg0[%c0, %c0_0] : memref<16x128xf32, #tpu.memory_space<vmem>>, vector<16x128xf32>
    %cst = arith.constant dense<0.000000e+00> : vector<16xf32>
    %1 = vector.multi_reduction <add>, %0, %cst [1] : vector<16x128xf32> to vector<16xf32>
    %2 = vector.shape_cast %1 : vector<16xf32> to vector<16x1xf32>
    %cst_1 = arith.constant 1.280000e+02 : f32
    %3 = vector.broadcast %cst_1 : f32 to vector<16x1xf32>
    %4 = arith.divf %2, %3 : vector<16x1xf32>
    %5 = vector.broadcast %4 : vector<16x1xf32> to vector<16x128xf32>
    %6 = arith.subf %0, %5 : vector<16x128xf32>
    %7 = arith.mulf %6, %6 : vector<16x128xf32>
    %cst_2 = arith.constant dense<0.000000e+00> : vector<16xf32>
    %8 = vector.multi_reduction <add>, %7, %cst_2 [1] : vector<16x128xf32> to vector<16xf32>
    %9 = vector.shape_cast %8 : vector<16xf32> to vector<16x1xf32>
    %cst_3 = arith.constant 1.280000e+02 : f32
    %10 = vector.broadcast %cst_3 : f32 to vector<16x1xf32>
    %11 = arith.divf %9, %10 : vector<16x1xf32>
    %12 = vector.broadcast %4 : vector<16x1xf32> to vector<16x128xf32>
    %13 = arith.subf %0, %12 : vector<16x128xf32>
    %cst_4 = arith.constant 9.99999974E-6 : f32
    %14 = vector.broadcast %cst_4 : f32 to vector<16x1xf32>
    %15 = arith.addf %11, %14 : vector<16x1xf32>
    %16 = math.rsqrt %15 : vector<16x1xf32>
    %17 = vector.broadcast %16 : vector<16x1xf32> to vector<16x128xf32>
    %18 = arith.mulf %13, %17 : vector<16x128xf32>
    %c0_5 = arith.constant 0 : index
    %c0_6 = arith.constant 0 : index
    %19 = vector.load %arg1[%c0_5, %c0_6] : memref<1x128xf32, #tpu.memory_space<vmem>>, vector<1x128xf32>
    %20 = vector.broadcast %19 : vector<1x128xf32> to vector<16x128xf32>
    %21 = arith.mulf %18, %20 : vector<16x128xf32>
    %c0_7 = arith.constant 0 : index
    %c0_8 = arith.constant 0 : index
    %22 = vector.load %arg2[%c0_7, %c0_8] : memref<1x128xf32, #tpu.memory_space<vmem>>, vector<1x128xf32>
    %23 = vector.broadcast %22 : vector<1x128xf32> to vector<16x128xf32>
    %24 = arith.addf %21, %23 : vector<16x128xf32>
    %25 = arith.truncf %24 : vector<16x128xf32> to vector<16x128xbf16>
    %c0_9 = arith.constant 0 : index
    %c0_10 = arith.constant 0 : index
    %26 = vector.load %arg3[%c0_9, %c0_10] : memref<128x512xbf16, #tpu.memory_space<vmem>>, vector<128x512xbf16>
    %cst_11 = arith.constant dense<0.000000e+00> : vector<16x512xf32>
    %27 = tpu.matmul %25, %26, %cst_11 {dimension_numbers = #tpu.dot_dimension_numbers<[1], [0], [0], [1], [0, 0, 1, 1], [], []>} : vector<16x128xbf16>, vector<128x512xbf16>, vector<16x512xf32> -> vector<16x512xf32>
    %c0_12 = arith.constant 0 : index
    %c0_13 = arith.constant 0 : index
    %28 = vector.load %arg4[%c0_12, %c0_13] : memref<1x512xf32, #tpu.memory_space<vmem>>, vector<1x512xf32>
    %29 = vector.broadcast %28 : vector<1x512xf32> to vector<16x512xf32>
    %30 = arith.addf %27, %29 : vector<16x512xf32>
    %c0_14 = arith.constant 0 : index
    %c0_15 = arith.constant 0 : index
    %31 = vector.load %arg5[%c0_14, %c0_15] : memref<128x512xbf16, #tpu.memory_space<vmem>>, vector<128x512xbf16>
    %cst_16 = arith.constant dense<0.000000e+00> : vector<16x512xf32>
    %32 = tpu.matmul %25, %31, %cst_16 {dimension_numbers = #tpu.dot_dimension_numbers<[1], [0], [0], [1], [0, 0, 1, 1], [], []>} : vector<16x128xbf16>, vector<128x512xbf16>, vector<16x512xf32> -> vector<16x512xf32>
    %c0_17 = arith.constant 0 : index
    %c0_18 = arith.constant 0 : index
    %33 = vector.load %arg6[%c0_17, %c0_18] : memref<1x512xf32, #tpu.memory_space<vmem>>, vector<1x512xf32>
    %34 = vector.broadcast %33 : vector<1x512xf32> to vector<16x512xf32>
    %35 = arith.addf %32, %34 : vector<16x512xf32>
    %36 = arith.mulf %35, %35 : vector<16x512xf32>
    %37 = arith.mulf %35, %36 : vector<16x512xf32>
    %cst_19 = arith.constant 4.471500e-02 : f32
    %38 = vector.broadcast %cst_19 : f32 to vector<16x512xf32>
    %39 = arith.mulf %38, %37 : vector<16x512xf32>
    %40 = arith.addf %35, %39 : vector<16x512xf32>
    %cst_20 = arith.constant 0.797884583 : f32
    %41 = vector.broadcast %cst_20 : f32 to vector<16x512xf32>
    %42 = arith.mulf %41, %40 : vector<16x512xf32>
    %43 = math.tanh %42 : vector<16x512xf32>
    %cst_21 = arith.constant 1.000000e+00 : f32
    %44 = vector.broadcast %cst_21 : f32 to vector<16x512xf32>
    %45 = arith.addf %44, %43 : vector<16x512xf32>
    %cst_22 = arith.constant 5.000000e-01 : f32
    %46 = vector.broadcast %cst_22 : f32 to vector<16x512xf32>
    %47 = arith.mulf %46, %45 : vector<16x512xf32>
    %48 = arith.mulf %35, %47 : vector<16x512xf32>
    %49 = arith.mulf %30, %48 : vector<16x512xf32>
    %50 = arith.truncf %49 : vector<16x512xf32> to vector<16x512xbf16>
    %c0_23 = arith.constant 0 : index
    %c0_24 = arith.constant 0 : index
    %51 = vector.load %arg7[%c0_23, %c0_24] : memref<512x128xbf16, #tpu.memory_space<vmem>>, vector<512x128xbf16>
    %cst_25 = arith.constant dense<0.000000e+00> : vector<16x128xf32>
    %52 = tpu.matmul %50, %51, %cst_25 {dimension_numbers = #tpu.dot_dimension_numbers<[1], [0], [0], [1], [0, 0, 1, 1], [], []>} : vector<16x512xbf16>, vector<512x128xbf16>, vector<16x128xf32> -> vector<16x128xf32>
    %c0_26 = arith.constant 0 : index
    %c0_27 = arith.constant 0 : index
    %53 = vector.load %arg8[%c0_26, %c0_27] : memref<1x128xf32, #tpu.memory_space<vmem>>, vector<1x128xf32>
    %54 = vector.broadcast %53 : vector<1x128xf32> to vector<16x128xf32>
    %55 = arith.addf %52, %54 : vector<16x128xf32>
    %56 = arith.addf %55, %0 : vector<16x128xf32>
    %c0_28 = arith.constant 0 : index
    %c0_29 = arith.constant 0 : index
    %57 = vector.load %arg9[%c0_28, %c0_29] : memref<16x128xf32, #tpu.memory_space<vmem>>, vector<16x128xf32>
    tpu.vector_store %arg9[%c0_28, %c0_29], %56 {strides = array<i32>} : memref<16x128xf32, #tpu.memory_space<vmem>>, vector<16x128xf32>,
    return
  }
}

module attributes {stable_mosaic.version = 11 : i64} {
  func.func @_pool_heads_kernel(%arg0: memref<5x16xf32, #tpu.memory_space<vmem>>, %arg1: memref<16x128xf32, #tpu.memory_space<vmem>>, %arg2: memref<128x128xbf16, #tpu.memory_space<vmem>>, %arg3: memref<1x128xf32, #tpu.memory_space<vmem>>, %arg4: memref<128x64xbf16, #tpu.memory_space<vmem>>, %arg5: memref<1x64xf32, #tpu.memory_space<vmem>>, %arg6: memref<64x3xbf16, #tpu.memory_space<vmem>>, %arg7: memref<1x3xf32, #tpu.memory_space<vmem>>, %arg8: memref<128x128xbf16, #tpu.memory_space<vmem>>, %arg9: memref<1x128xf32, #tpu.memory_space<vmem>>, %arg10: memref<128x64xbf16, #tpu.memory_space<vmem>>, %arg11: memref<1x64xf32, #tpu.memory_space<vmem>>, %arg12: memref<64x6xbf16, #tpu.memory_space<vmem>>, %arg13: memref<1x6xf32, #tpu.memory_space<vmem>>, %arg14: memref<5x3xf32, #tpu.memory_space<vmem>>, %arg15: memref<5x6xf32, #tpu.memory_space<vmem>>) attributes {dimension_semantics = [], scalar_prefetch = 0 : i64, scratch_operands = 0 : i64, tpu.core_type = #tpu.core_type<tc>} {
    %c0 = arith.constant 0 : index
    %c0_0 = arith.constant 0 : index
    %0 = vector.load %arg0[%c0, %c0_0] : memref<5x16xf32, #tpu.memory_space<vmem>>, vector<5x16xf32>
    %c0_1 = arith.constant 0 : index
    %c0_2 = arith.constant 0 : index
    %1 = vector.load %arg1[%c0_1, %c0_2] : memref<16x128xf32, #tpu.memory_space<vmem>>, vector<16x128xf32>
    %cst = arith.constant dense<0.000000e+00> : vector<5x128xf32>
    %2 = tpu.matmul %0, %1, %cst {dimension_numbers = #tpu.dot_dimension_numbers<[1], [0], [0], [1], [0, 0, 1, 1], [], []>} : vector<5x16xf32>, vector<16x128xf32>, vector<5x128xf32> -> vector<5x128xf32>
    %3 = arith.truncf %2 : vector<5x128xf32> to vector<5x128xbf16>
    %c0_3 = arith.constant 0 : index
    %c0_4 = arith.constant 0 : index
    %4 = vector.load %arg2[%c0_3, %c0_4] : memref<128x128xbf16, #tpu.memory_space<vmem>>, vector<128x128xbf16>
    %cst_5 = arith.constant dense<0.000000e+00> : vector<5x128xf32>
    %5 = tpu.matmul %3, %4, %cst_5 {dimension_numbers = #tpu.dot_dimension_numbers<[1], [0], [0], [1], [0, 0, 1, 1], [], []>} : vector<5x128xbf16>, vector<128x128xbf16>, vector<5x128xf32> -> vector<5x128xf32>
    %c0_6 = arith.constant 0 : index
    %c0_7 = arith.constant 0 : index
    %6 = vector.load %arg3[%c0_6, %c0_7] : memref<1x128xf32, #tpu.memory_space<vmem>>, vector<1x128xf32>
    %7 = vector.broadcast %6 : vector<1x128xf32> to vector<5x128xf32>
    %8 = arith.addf %5, %7 : vector<5x128xf32>
    %9 = arith.negf %8 : vector<5x128xf32>
    %10 = math.exp %9 : vector<5x128xf32>
    %cst_8 = arith.constant 1.000000e+00 : f32
    %11 = vector.broadcast %cst_8 : f32 to vector<5x128xf32>
    %12 = arith.addf %11, %10 : vector<5x128xf32>
    %13 = arith.divf %11, %12 : vector<5x128xf32>
    %14 = arith.mulf %8, %13 : vector<5x128xf32>
    %15 = arith.truncf %14 : vector<5x128xf32> to vector<5x128xbf16>
    %c0_9 = arith.constant 0 : index
    %c0_10 = arith.constant 0 : index
    %16 = vector.load %arg4[%c0_9, %c0_10] : memref<128x64xbf16, #tpu.memory_space<vmem>>, vector<128x64xbf16>
    %cst_11 = arith.constant dense<0.000000e+00> : vector<5x64xf32>
    %17 = tpu.matmul %15, %16, %cst_11 {dimension_numbers = #tpu.dot_dimension_numbers<[1], [0], [0], [1], [0, 0, 1, 1], [], []>} : vector<5x128xbf16>, vector<128x64xbf16>, vector<5x64xf32> -> vector<5x64xf32>
    %c0_12 = arith.constant 0 : index
    %c0_13 = arith.constant 0 : index
    %18 = vector.load %arg5[%c0_12, %c0_13] : memref<1x64xf32, #tpu.memory_space<vmem>>, vector<1x64xf32>
    %19 = vector.broadcast %18 : vector<1x64xf32> to vector<5x64xf32>
    %20 = arith.addf %17, %19 : vector<5x64xf32>
    %21 = arith.negf %20 : vector<5x64xf32>
    %22 = math.exp %21 : vector<5x64xf32>
    %cst_14 = arith.constant 1.000000e+00 : f32
    %23 = vector.broadcast %cst_14 : f32 to vector<5x64xf32>
    %24 = arith.addf %23, %22 : vector<5x64xf32>
    %25 = arith.divf %23, %24 : vector<5x64xf32>
    %26 = arith.mulf %20, %25 : vector<5x64xf32>
    %27 = arith.truncf %26 : vector<5x64xf32> to vector<5x64xbf16>
    %c0_15 = arith.constant 0 : index
    %c0_16 = arith.constant 0 : index
    %28 = vector.load %arg6[%c0_15, %c0_16] : memref<64x3xbf16, #tpu.memory_space<vmem>>, vector<64x3xbf16>
    %cst_17 = arith.constant dense<0.000000e+00> : vector<5x3xf32>
    %29 = tpu.matmul %27, %28, %cst_17 {dimension_numbers = #tpu.dot_dimension_numbers<[1], [0], [0], [1], [0, 0, 1, 1], [], []>} : vector<5x64xbf16>, vector<64x3xbf16>, vector<5x3xf32> -> vector<5x3xf32>
    %c0_18 = arith.constant 0 : index
    %c0_19 = arith.constant 0 : index
    %30 = vector.load %arg7[%c0_18, %c0_19] : memref<1x3xf32, #tpu.memory_space<vmem>>, vector<1x3xf32>
    %31 = vector.broadcast %30 : vector<1x3xf32> to vector<5x3xf32>
    %32 = arith.addf %29, %31 : vector<5x3xf32>
    %c0_20 = arith.constant 0 : index
    %c0_21 = arith.constant 0 : index
    %33 = vector.load %arg14[%c0_20, %c0_21] : memref<5x3xf32, #tpu.memory_space<vmem>>, vector<5x3xf32>
    tpu.vector_store %arg14[%c0_20, %c0_21], %32 {strides = array<i32>} : memref<5x3xf32, #tpu.memory_space<vmem>>, vector<5x3xf32>,
    %34 = arith.truncf %2 : vector<5x128xf32> to vector<5x128xbf16>
    %c0_22 = arith.constant 0 : index
    %c0_23 = arith.constant 0 : index
    %35 = vector.load %arg8[%c0_22, %c0_23] : memref<128x128xbf16, #tpu.memory_space<vmem>>, vector<128x128xbf16>
    %cst_24 = arith.constant dense<0.000000e+00> : vector<5x128xf32>
    %36 = tpu.matmul %34, %35, %cst_24 {dimension_numbers = #tpu.dot_dimension_numbers<[1], [0], [0], [1], [0, 0, 1, 1], [], []>} : vector<5x128xbf16>, vector<128x128xbf16>, vector<5x128xf32> -> vector<5x128xf32>
    %c0_25 = arith.constant 0 : index
    %c0_26 = arith.constant 0 : index
    %37 = vector.load %arg9[%c0_25, %c0_26] : memref<1x128xf32, #tpu.memory_space<vmem>>, vector<1x128xf32>
    %38 = vector.broadcast %37 : vector<1x128xf32> to vector<5x128xf32>
    %39 = arith.addf %36, %38 : vector<5x128xf32>
    %40 = arith.negf %39 : vector<5x128xf32>
    %41 = math.exp %40 : vector<5x128xf32>
    %cst_27 = arith.constant 1.000000e+00 : f32
    %42 = vector.broadcast %cst_27 : f32 to vector<5x128xf32>
    %43 = arith.addf %42, %41 : vector<5x128xf32>
    %44 = arith.divf %42, %43 : vector<5x128xf32>
    %45 = arith.mulf %39, %44 : vector<5x128xf32>
    %46 = arith.truncf %45 : vector<5x128xf32> to vector<5x128xbf16>
    %c0_28 = arith.constant 0 : index
    %c0_29 = arith.constant 0 : index
    %47 = vector.load %arg10[%c0_28, %c0_29] : memref<128x64xbf16, #tpu.memory_space<vmem>>, vector<128x64xbf16>
    %cst_30 = arith.constant dense<0.000000e+00> : vector<5x64xf32>
    %48 = tpu.matmul %46, %47, %cst_30 {dimension_numbers = #tpu.dot_dimension_numbers<[1], [0], [0], [1], [0, 0, 1, 1], [], []>} : vector<5x128xbf16>, vector<128x64xbf16>, vector<5x64xf32> -> vector<5x64xf32>
    %c0_31 = arith.constant 0 : index
    %c0_32 = arith.constant 0 : index
    %49 = vector.load %arg11[%c0_31, %c0_32] : memref<1x64xf32, #tpu.memory_space<vmem>>, vector<1x64xf32>
    %50 = vector.broadcast %49 : vector<1x64xf32> to vector<5x64xf32>
    %51 = arith.addf %48, %50 : vector<5x64xf32>
    %52 = arith.negf %51 : vector<5x64xf32>
    %53 = math.exp %52 : vector<5x64xf32>
    %cst_33 = arith.constant 1.000000e+00 : f32
    %54 = vector.broadcast %cst_33 : f32 to vector<5x64xf32>
    %55 = arith.addf %54, %53 : vector<5x64xf32>
    %56 = arith.divf %54, %55 : vector<5x64xf32>
    %57 = arith.mulf %51, %56 : vector<5x64xf32>
    %58 = arith.truncf %57 : vector<5x64xf32> to vector<5x64xbf16>
    %c0_34 = arith.constant 0 : index
    %c0_35 = arith.constant 0 : index
    %59 = vector.load %arg12[%c0_34, %c0_35] : memref<64x6xbf16, #tpu.memory_space<vmem>>, vector<64x6xbf16>
    %cst_36 = arith.constant dense<0.000000e+00> : vector<5x6xf32>
    %60 = tpu.matmul %58, %59, %cst_36 {dimension_numbers = #tpu.dot_dimension_numbers<[1], [0], [0], [1], [0, 0, 1, 1], [], []>} : vector<5x64xbf16>, vector<64x6xbf16>, vector<5x6xf32> -> vector<5x6xf32>
    %c0_37 = arith.constant 0 : index
    %c0_38 = arith.constant 0 : index
    %61 = vector.load %arg13[%c0_37, %c0_38] : memref<1x6xf32, #tpu.memory_space<vmem>>, vector<1x6xf32>
    %62 = vector.broadcast %61 : vector<1x6xf32> to vector<5x6xf32>
    %63 = arith.addf %60, %62 : vector<5x6xf32>
    %c0_39 = arith.constant 0 : index
    %c0_40 = arith.constant 0 : index
    %64 = vector.load %arg15[%c0_39, %c0_40] : memref<5x6xf32, #tpu.memory_space<vmem>>, vector<5x6xf32>
    tpu.vector_store %arg15[%c0_39, %c0_40], %63 {strides = array<i32>} : memref<5x6xf32, #tpu.memory_space<vmem>>, vector<5x6xf32>,
    return
  }
}

</mosaic_0001>

<bundles_post_ra>
// kernel: denoiser_forward.10
= control target key start
LH: loop header
LB: loop body
LE: loop exit
PB: predicated region body
PF: predicated region fallthrough
CT: control target
= control target key end

     0   :  { %vm103_vm0 = vcmask 1040384   ;;  %vm104_vm1 = vcmask 1041408   ;;  %v189_v1 = vmov 65535   ;;  %vm99_vm2 = vcmask 154624   ;;  %s252_s1 = inlined_call_operand.vmem [shape: bf16[147,128], index: 1, kind: input, shape index: {}]   ;;  %s253_s0 = inlined_call_operand.vmem [shape: f32[5,147], index: 0, kind: input, shape index: {}]   ;;  %s254_s2 = inlined_call_operand.vmem [shape: f32[1,128], index: 2, kind: input, shape index: {}]   ;;  %s255_s3 = inlined_call_operand.vmem [shape: f32[5,128], index: 3, kind: output, shape index: {}]  }
   0x1   :  { %v185_v0 = vld [vmem:[%s252_s1 + $0x38] sm:$0xff]  ;;  %v105_v2 = vsel %vm103_vm0, 4294967295, %v189_v1  ;;  %v37_v3 = vld [vmem:[%s252_s1 + $0x48] sm:$0x3]  ;;  %v184_v4 = vld [vmem:[%s252_s1 + $0x30] sm:$0xff] }
   0x2   :  { %110 = vmatpush.bf16.msra.mxu0 %v185_v0  ;;  %v79_v5 = vunpack.c.l.b16 %v37_v3  ;;  %v106_v6 = vsel %vm104_vm1, %v105_v2, 0  ;;  %v183_v8 = vld [vmem:[%s252_s1 + $0x28] sm:$0xff]  ;;  %v186_v10 = vld [vmem:[%s252_s1 + $0x40] sm:$0xff]  ;;  %v181_v14 = vld [vmem:[%s252_s1 + $0x18] sm:$0xff] }
   0x3   :  { %v16_v11 = vld [vmem:[%s253_s0 + $0x8] sm:$0x1f]  ;;  %v182_v12 = vld [vmem:[%s252_s1 + $0x20] sm:$0xff]  ;;  %v180_v15 = vld [vmem:[%s252_s1 + $0x10] sm:$0xff] }
   0x4   :  { %v89_v7 = vpack.c.b16 %v79_v5, %v79_v5  ;;  %v18_v13 = vpack.c.bf16 %v16_v11, %v16_v11  ;;  %v179_v16 = vld [vmem:[%s252_s1 + $0x8] sm:$0xff]  ;;  %v178_v17 = vld [vmem:[%s252_s1] sm:$0xff] }
   0x5   :  { %v15_v18 = vld [vmem:[%s253_s0] sm:$0x1f] }
   0x6   :  { %111 = vmatpush.bf16.msra.mxu0 %v184_v4  ;;  %v108_v9 = vand.u32 %v106_v6, %v89_v7  ;;  %v17_v19 = vpack.c.bf16 %v15_v18, %v15_v18  ;;  %v188_v22 = vld [vmem:[%s254_s2] ss:$0 sm:$0xff] }
   0x8   :  { %129 = vmatpush.bf16.msra.mxu1 %v108_v9 }
   0xa   :  { %112 = vmatpush.bf16.msra.mxu0 %v183_v8 }
   0xc   :  { %130 = vmatpush.bf16.msra.mxu1 %v186_v10 }
   0xe   :  { %113 = vmatpush.bf16.msra.mxu0 %v182_v12 }
   0xf   :  { %177 = vmatmul.msk.bf16.vlgmr.msra.gmra.mxu1 %vm99_vm2, %v18_v13 }
  0x12   :  { %114 = vmatpush.bf16.msra.mxu0 %v181_v14 }
  0x16   :  { %115 = vmatpush.bf16.msra.mxu0 %v180_v15 }
  0x1a   :  { %116 = vmatpush.bf16.msra.mxu0 %v179_v16 }
  0x1e   :  { %117 = vmatpush.bf16.msra.mxu0 %v178_v17 }
  0x21   :  { %118 = vmatmul.bf16.vlgmr.msra.gmra.mxu0 %v17_v19 }
  0x8c   :  { %v132_v20 = vpop.f32.mrf.mxu1 }
  0x94   :  { %v134_v21 = vpop.f32.mrf.mxu1 }
  0x9e   :  { %v119_v23 = vpop.f32.mrf.mxu0 }
  0x9f   :  { %v120_v24 = vadd.f32 %v188_v22, %v119_v23 }
  0xa1   :  { %v133_v25 = vadd.f32 %v132_v20, %v120_v24 }
  0xa3   :  { %136 = vst [vmem:[%s255_s3] sm:$0x1f] %v133_v25 }
  0xa6   :  { %v121_v26 = vpop.f32.mrf.mxu0 }

// kernel: denoiser_forward.9
= control target key start
LH: loop header
LB: loop body
LE: loop exit
PB: predicated region body
PF: predicated region fallthrough
CT: control target
= control target key end

     0   :  { %vm108_vm0 = vcmask 1044480   ;;  %vm109_vm1 = vcmask 1045504   ;;  %v202_v1 = vmov 65535   ;;  %vm104_vm2 = vcmask 220160   ;;  %s277_s1 = inlined_call_operand.vmem [shape: bf16[155,128], index: 1, kind: input, shape index: {}]   ;;  %s278_s0 = inlined_call_operand.vmem [shape: f32[14,155], index: 0, kind: input, shape index: {}]   ;;  %s279_s2 = inlined_call_operand.vmem [shape: f32[1,128], index: 2, kind: input, shape index: {}]   ;;  %s280_s3 = inlined_call_operand.vmem [shape: f32[14,128], index: 3, kind: output, shape index: {}]  }
   0x1   :  { %v197_v0 = vld [vmem:[%s277_s1 + $0x38] sm:$0xff]  ;;  %v110_v2 = vsel %vm108_vm0, 4294967295, %v202_v1  ;;  %v187_v3 = vld [vmem:[%s277_s1 + $0x48] sm:$0xf]  ;;  %v196_v4 = vld [vmem:[%s277_s1 + $0x30] sm:$0xff] }
   0x2   :  { %115 = vmatpush.bf16.msra.mxu0 %v197_v0  ;;  %v199_v5 = vld [vmem:[%s277_s1 + $0x48] sm:$0x30]  ;;  %v111_v6 = vsel %vm109_vm1, %v110_v2, 0  ;;  %v198_v10 = vld [vmem:[%s277_s1 + $0x40] sm:$0xff]  ;;  %v18_v12 = vld [vmem:[%s278_s0 + $0x18] sm:$0x3f] }
   0x3   :  { %v188_v7 = vor.u32 %v199_v5, %v187_v3  ;;  %v195_v9 = vld [vmem:[%s277_s1 + $0x28] sm:$0xff]  ;;  %v194_v13 = vld [vmem:[%s277_s1 + $0x20] sm:$0xff]  ;;  %v193_v15 = vld [vmem:[%s277_s1 + $0x18] sm:$0xff] }
   0x4   :  { %v16_v11 = vld [vmem:[%s278_s0 + $0x8] sm:$0xff]  ;;  %v192_v16 = vld [vmem:[%s277_s1 + $0x10] sm:$0xff]  ;;  %v190_v18 = vld [vmem:[%s277_s1] sm:$0xff] }
   0x5   :  { %v113_v8 = vand.u32 %v188_v7, %v111_v6  ;;  %v20_v14 = vpack.c.bf16 %v18_v12, %v16_v11  ;;  %v191_v17 = vld [vmem:[%s277_s1 + $0x8] sm:$0xff]  ;;  %v15_v19 = vld [vmem:[%s278_s0] sm:$0xff]  ;;  %v17_v20 = vld [vmem:[%s278_s0 + $0x10] sm:$0x3f] }
   0x6   :  { %116 = vmatpush.bf16.msra.mxu0 %v196_v4  ;;  %v19_v21 = vpack.c.bf16 %v17_v20, %v15_v19  ;;  %v201_v22 = vld [vmem:[%s279_s2] ss:$0 sm:$0xff] }
   0x7   :  { %135 = vmatpush.bf16.msra.mxu1 %v113_v8 }
   0xa   :  { %117 = vmatpush.bf16.msra.mxu0 %v195_v9 }
   0xb   :  { %136 = vmatpush.bf16.msra.mxu1 %v198_v10 }
   0xe   :  { %118 = vmatpush.bf16.msra.mxu0 %v194_v13  ;;  %189 = vmatmul.msk.bf16.vlgmr.msra.gmra.mxu1 %vm104_vm2, %v20_v14 }
  0x12   :  { %119 = vmatpush.bf16.msra.mxu0 %v193_v15 }
  0x16   :  { %120 = vmatpush.bf16.msra.mxu0 %v192_v16 }
  0x1a   :  { %121 = vmatpush.bf16.msra.mxu0 %v191_v17 }
  0x1e   :  { %122 = vmatpush.bf16.msra.mxu0 %v190_v18 }
  0x21   :  { %123 = vmatmul.bf16.vlgmr.msra.gmra.mxu0 %v19_v21 }
  0x8b   :  { %v138_v23 = vpop.f32.mrf.mxu1 }
  0x93   :  { %v140_v29 = vpop.f32.mrf.mxu1 }
  0x9e   :  { %v124_v24 = vpop.f32.mrf.mxu0 }
  0x9f   :  { %v125_v25 = vadd.f32 %v201_v22, %v124_v24 }
  0xa1   :  { %v139_v26 = vadd.f32 %v138_v23, %v125_v25 }
  0xa3   :  { %143 = vst [vmem:[%s280_s3] sm:$0xff] %v139_v26 }
  0xa6   :  { %v126_v27 = vpop.f32.mrf.mxu0 }
  0xa7   :  { %v127_v28 = vadd.f32 %v201_v22, %v126_v27 }
  0xa9   :  { %v141_v30 = vadd.f32 %v140_v29, %v127_v28 }
  0xab   :  { %144 = vst [vmem:[%s280_s3 + $0x8] sm:$0x3f] %v141_v30 }

// kernel: denoiser_forward.13
= control target key start
LH: loop header
LB: loop body
LE: loop exit
PB: predicated region body
PF: predicated region fallthrough
CT: control target
= control target key end

     0   :  { %v1526_v2 = vmov 128.0   ;;  %s2197_s0 = inlined_call_operand.vmem [shape: f32[16,128], index: 0, kind: input, shape index: {}]   ;;  %s2198_s1 = inlined_call_operand.vmem [shape: f32[1,128], index: 1, kind: input, shape index: {}]   ;;  %s2199_s2 = inlined_call_operand.vmem [shape: f32[1,128], index: 2, kind: input, shape index: {}]   ;;  %s2200_s3 = inlined_call_operand.vmem [shape: bf16[128,512], index: 3, kind: input, shape index: {}]   ;;  %s2201_s5 = inlined_call_operand.vmem [shape: bf16[128,512], index: 5, kind: input, shape index: {}]   ;;  %s2202_s8 = inlined_call_operand.vmem [shape: f32[1,128], index: 8, kind: input, shape index: {}]   ;;  %s2203_s7 = inlined_call_operand.vmem [shape: bf16[512,128], index: 7, kind: input, shape index: {}]   ;;  %s2204_s6 = inlined_call_operand.vmem [shape: f32[1,512], index: 6, kind: input, shape index: {}]   ;;  %s2205_s4 = inlined_call_operand.vmem [shape: f32[1,512], index: 4, kind: input, shape index: {}]   ;;  %s2206_s9 = inlined_call_operand.vmem [shape: f32[16,128], index: 9, kind: output, shape index: {}]  }
   0x1   :  { %v32_v0 = vld [vmem:[%s2197_s0] sm:$0xff]  ;;  %v33_v1 = vld [vmem:[%s2197_s0 + $0x8] sm:$0xff]  ;;  %1502 = vrcp.f32 %v1526_v2  ;;  %v1432_v7 = vld [vmem:[%s2200_s3 + $0xec] sm:$0xf0] }
   0x2   :  { %34 = vadd.xlane.f32.xlu0 %v32_v0  ;;  %v1132_v6 = vld [vmem:[%s2200_s3 + $0xe0] sm:$0xf]  ;;  %v1430_v8 = vld [vmem:[%s2200_s3 + $0xe4] sm:$0xf]  ;;  %v1134_v10 = vld [vmem:[%s2200_s3 + $0xf0] sm:$0xf0] }
   0x3   :  { %v1133_v9 = vor.u32 %v1432_v7, %v1132_v6  ;;  %v1140_v11 = vld [vmem:[%s2200_s3 + $0xe8] sm:$0xf]  ;;  %v1433_v12 = vld [vmem:[%s2200_s3 + $0xf4] sm:$0xf0]  ;;  %v1137_v13 = vor.u32 %v1430_v8, %v1134_v10  ;;  %v1431_v15 = vld [vmem:[%s2200_s3 + $0xec] sm:$0xf] }
   0x4   :  { %v1141_v14 = vor.u32 %v1433_v12, %v1140_v11  ;;  %v1142_v16 = vld [vmem:[%s2200_s3 + $0xf8] sm:$0xf0]  ;;  %v1116_v17 = vld [vmem:[%s2200_s3 + $0xc0] sm:$0xf]  ;;  %v1428_v19 = vld [vmem:[%s2200_s3 + $0xcc] sm:$0xf0] }
   0x5   :  { %296 = vmatpush.bf16.msra.mxu0 %v1133_v9  ;;  %v1145_v18 = vor.u32 %v1431_v15, %v1142_v16  ;;  %v1426_v20 = vld [vmem:[%s2200_s3 + $0xc4] sm:$0xf]  ;;  %v1118_v21 = vld [vmem:[%s2200_s3 + $0xd0] sm:$0xf0]  ;;  %310 = vmatpush.bf16.msra.mxu1 %v1137_v13  ;;  %v1117_v22 = vor.u32 %v1428_v19, %v1116_v17  ;;  %v1124_v24 = vld [vmem:[%s2200_s3 + $0xc8] sm:$0xf] }
   0x6   :  { %324 = vmatpush.bf16.msra.mxu2 %v1141_v14  ;;  %v1121_v23 = vor.u32 %v1426_v20, %v1118_v21  ;;  %v1429_v25 = vld [vmem:[%s2200_s3 + $0xd4] sm:$0xf0]  ;;  %v1427_v26 = vld [vmem:[%s2200_s3 + $0xcc] sm:$0xf]  ;;  %v1126_v28 = vld [vmem:[%s2200_s3 + $0xd8] sm:$0xf0] }
   0x7   :  { %v1503_v3 = vpop.eup %1502  ;;  %338 = vmatpush.bf16.msra.mxu3 %v1145_v18  ;;  %v1125_v27 = vor.u32 %v1429_v25, %v1124_v24  ;;  %v1129_v29 = vor.u32 %v1427_v26, %v1126_v28  ;;  %v1100_v41 = vld [vmem:[%s2200_s3 + $0xa0] sm:$0xf]  ;;  %v1424_v42 = vld [vmem:[%s2200_s3 + $0xac] sm:$0xf0]  ;;  %v1422_v43 = vld [vmem:[%s2200_s3 + $0xa4] sm:$0xf] }
   0x8   :  { %v39_v4 = vmul.f32 128.0, %v1503_v3  ;;  %vm43_vm0 = vweird.f32 %v1503_v3  ;;  %v1101_v44 = vor.u32 %v1424_v42, %v1100_v41  ;;  %v1102_v45 = vld [vmem:[%s2200_s3 + $0xb0] sm:$0xf0]  ;;  %v1108_v46 = vld [vmem:[%s2200_s3 + $0xa8] sm:$0xf] }
   0x9   :  { %297 = vmatpush.bf16.msra.mxu0 %v1117_v22  ;;  %311 = vmatpush.bf16.msra.mxu1 %v1121_v23  ;;  %v1425_v47 = vld [vmem:[%s2200_s3 + $0xb4] sm:$0xf0]  ;;  %v1105_v48 = vor.u32 %v1422_v43, %v1102_v45  ;;  %v1423_v50 = vld [vmem:[%s2200_s3 + $0xac] sm:$0xf]  ;;  %v1110_v51 = vld [vmem:[%s2200_s3 + $0xb8] sm:$0xf0] }
   0xa   :  { %36 = vadd.xlane.f32.xlu0 %v33_v1  ;;  %v40_v5 = vsub.f32 1.0, %v39_v4  ;;  %325 = vmatpush.bf16.msra.mxu2 %v1125_v27  ;;  %v1109_v49 = vor.u32 %v1425_v47, %v1108_v46  ;;  %v1113_v52 = vor.u32 %v1423_v50, %v1110_v51  ;;  %v1084_v53 = vld [vmem:[%s2200_s3 + $0x80] sm:$0xf]  ;;  %v1420_v54 = vld [vmem:[%s2200_s3 + $0x8c] sm:$0xf0] }
   0xb   :  { %339 = vmatpush.bf16.msra.mxu3 %v1129_v29  ;;  %v1418_v55 = vld [vmem:[%s2200_s3 + $0x84] sm:$0xf]  ;;  %v1085_v56 = vor.u32 %v1420_v54, %v1084_v53  ;;  %v1086_v57 = vld [vmem:[%s2200_s3 + $0x90] sm:$0xf0]  ;;  %v1092_v58 = vld [vmem:[%s2200_s3 + $0x88] sm:$0xf] }
   0xc   :  { %v41_v30 = vmul.f32 %v1503_v3, %v40_v5  ;;  %v1421_v59 = vld [vmem:[%s2200_s3 + $0x94] sm:$0xf0]  ;;  %v1089_v60 = vor.u32 %v1418_v55, %v1086_v57  ;;  %v1419_v62 = vld [vmem:[%s2200_s3 + $0x8c] sm:$0xf]  ;;  %v1094_v63 = vld [vmem:[%s2200_s3 + $0x98] sm:$0xf0] }
   0xd   :  { %298 = vmatpush.bf16.msra.mxu0 %v1101_v44  ;;  %312 = vmatpush.bf16.msra.mxu1 %v1105_v48  ;;  %v1093_v61 = vor.u32 %v1421_v59, %v1092_v58  ;;  %v1416_v2 = vld [vmem:[%s2200_s3 + $0x6c] sm:$0xf0]  ;;  %v1070_v5 = vld [vmem:[%s2200_s3 + $0x70] sm:$0xf0]  ;;  %v1076_v6 = vld [vmem:[%s2200_s3 + $0x68] sm:$0xf] }
   0xe   :  { %v42_v31 = vadd.f32 %v1503_v3, %v41_v30  ;;  %326 = vmatpush.bf16.msra.mxu2 %v1109_v49  ;;  %v1417_v7 = vld [vmem:[%s2200_s3 + $0x74] sm:$0xf0]  ;;  %v1415_v10 = vld [vmem:[%s2200_s3 + $0x6c] sm:$0xf]  ;;  %v1078_v11 = vld [vmem:[%s2200_s3 + $0x78] sm:$0xf0] }
   0xf   :  { %340 = vmatpush.bf16.msra.mxu3 %v1113_v52  ;;  %v1077_v9 = vor.u32 %v1417_v7, %v1076_v6  ;;  %v1081_v12 = vor.u32 %v1415_v10, %v1078_v11  ;;  %v1052_v13 = vld [vmem:[%s2200_s3 + $0x40] sm:$0xf]  ;;  %v1412_v14 = vld [vmem:[%s2200_s3 + $0x4c] sm:$0xf0]  ;;  %v1410_v15 = vld [vmem:[%s2200_s3 + $0x44] sm:$0xf] }
  0x10   :  { %v1631_v32 = vsel %vm43_vm0, %v1503_v3, %v42_v31  ;;  %v1414_v3 = vld [vmem:[%s2200_s3 + $0x64] sm:$0xf]  ;;  %v1053_v16 = vor.u32 %v1412_v14, %v1052_v13  ;;  %v1054_v17 = vld [vmem:[%s2200_s3 + $0x50] sm:$0xf0]  ;;  %v1060_v18 = vld [vmem:[%s2200_s3 + $0x48] sm:$0xf] }
  0x11   :  { %299 = vmatpush.bf16.msra.mxu0 %v1085_v56  ;;  %313 = vmatpush.bf16.msra.mxu1 %v1089_v60  ;;  %v1073_v8 = vor.u32 %v1414_v3, %v1070_v5  ;;  %v1413_v19 = vld [vmem:[%s2200_s3 + $0x54] sm:$0xf0]  ;;  %v1057_v20 = vor.u32 %v1410_v15, %v1054_v17  ;;  %v1411_v22 = vld [vmem:[%s2200_s3 + $0x4c] sm:$0xf]  ;;  %v1062_v23 = vld [vmem:[%s2200_s3 + $0x58] sm:$0xf0] }
  0x12   :  { %327 = vmatpush.bf16.msra.mxu2 %v1093_v61  ;;  %v1061_v21 = vor.u32 %v1413_v19, %v1060_v18  ;;  %v1065_v24 = vor.u32 %v1411_v22, %v1062_v23  ;;  %v1036_v25 = vld [vmem:[%s2200_s3 + $0x20] sm:$0xf]  ;;  %v1408_v26 = vld [vmem:[%s2200_s3 + $0x2c] sm:$0xf0]  ;;  %v1406_v27 = vld [vmem:[%s2200_s3 + $0x24] sm:$0xf] }
  0x13   :  { %v1037_v28 = vor.u32 %v1408_v26, %v1036_v25  ;;  %v1038_v29 = vld [vmem:[%s2200_s3 + $0x30] sm:$0xf0]  ;;  %v1044_v30 = vld [vmem:[%s2200_s3 + $0x28] sm:$0xf]  ;;  %v1409_v31 = vld [vmem:[%s2200_s3 + $0x34] sm:$0xf0] }
  0x14   :  { %v1404_v41 = vld [vmem:[%s2200_s3 + $0xc] sm:$0xf0]  ;;  %v1402_v42 = vld [vmem:[%s2200_s3 + $0x4] sm:$0xf]  ;;  %v1022_v44 = vld [vmem:[%s2200_s3 + $0x10] sm:$0xf0] }
  0x15   :  { %314 = vmatpush.bf16.msra.mxu1 %v1073_v8  ;;  %v1028_v45 = vld [vmem:[%s2200_s3 + $0x8] sm:$0xf]  ;;  %v1405_v46 = vld [vmem:[%s2200_s3 + $0x14] sm:$0xf0]  ;;  %v1025_v47 = vor.u32 %v1402_v42, %v1022_v44  ;;  %v1403_v49 = vld [vmem:[%s2200_s3 + $0xc] sm:$0xf] }
  0x16   :  { %328 = vmatpush.bf16.msra.mxu2 %v1077_v9  ;;  %v1029_v48 = vor.u32 %v1405_v46, %v1028_v45  ;;  %v1030_v50 = vld [vmem:[%s2200_s3 + $0x18] sm:$0xf0]  ;;  %v1260_v51 = vld [vmem:[%s2201_s5 + $0xe0] sm:$0xf]  ;;  %v1464_v53 = vld [vmem:[%s2201_s5 + $0xec] sm:$0xf0] }
  0x17   :  { %v1033_v52 = vor.u32 %v1403_v49, %v1030_v50  ;;  %v1462_v54 = vld [vmem:[%s2201_s5 + $0xe4] sm:$0xf]  ;;  %v1262_v55 = vld [vmem:[%s2201_s5 + $0xf0] sm:$0xf0]  ;;  %v1261_v56 = vor.u32 %v1464_v53, %v1260_v51  ;;  %v1268_v58 = vld [vmem:[%s2201_s5 + $0xe8] sm:$0xf] }
  0x18   :  { %v1265_v57 = vor.u32 %v1462_v54, %v1262_v55  ;;  %v1465_v59 = vld [vmem:[%s2201_s5 + $0xf4] sm:$0xf0]  ;;  %v1463_v60 = vld [vmem:[%s2201_s5 + $0xec] sm:$0xf]  ;;  %v1458_v3 = vld [vmem:[%s2201_s5 + $0xc4] sm:$0xf] }
  0x19   :  { %315 = vmatpush.bf16.msra.mxu1 %v1057_v20  ;;  %v1269_v61 = vor.u32 %v1465_v59, %v1268_v58  ;;  %v1252_v5 = vld [vmem:[%s2201_s5 + $0xc8] sm:$0xf]  ;;  %v1461_v7 = vld [vmem:[%s2201_s5 + $0xd4] sm:$0xf0]  ;;  %v1459_v8 = vld [vmem:[%s2201_s5 + $0xcc] sm:$0xf] }
  0x1a   :  { %329 = vmatpush.bf16.msra.mxu2 %v1061_v21  ;;  %v1254_v9 = vld [vmem:[%s2201_s5 + $0xd8] sm:$0xf0]  ;;  %v1253_v10 = vor.u32 %v1461_v7, %v1252_v5  ;;  %v1456_v13 = vld [vmem:[%s2201_s5 + $0xac] sm:$0xf0]  ;;  %v1454_v14 = vld [vmem:[%s2201_s5 + $0xa4] sm:$0xf] }
  0x1b   :  { %v1257_v11 = vor.u32 %v1459_v8, %v1254_v9  ;;  %v1236_v17 = vld [vmem:[%s2201_s5 + $0xa8] sm:$0xf]  ;;  %v1457_v18 = vld [vmem:[%s2201_s5 + $0xb4] sm:$0xf0]  ;;  %v1455_v21 = vld [vmem:[%s2201_s5 + $0xac] sm:$0xf] }
  0x1c   :  { %v1237_v20 = vor.u32 %v1457_v18, %v1236_v17  ;;  %v1238_v22 = vld [vmem:[%s2201_s5 + $0xb8] sm:$0xf0]  ;;  %v1212_v26 = vld [vmem:[%s2201_s5 + $0x80] sm:$0xf]  ;;  %v1446_v44 = vld [vmem:[%s2201_s5 + $0x64] sm:$0xf] }
  0x1d   :  { %v1196_v42 = vld [vmem:[%s2201_s5 + $0x60] sm:$0xf]  ;;  %v1198_v46 = vld [vmem:[%s2201_s5 + $0x70] sm:$0xf0]  ;;  %v1206_v53 = vld [vmem:[%s2201_s5 + $0x78] sm:$0xf0] }
  0x1e   :  { %v1201_v50 = vor.u32 %v1446_v44, %v1198_v46  ;;  %v1180_v54 = vld [vmem:[%s2201_s5 + $0x40] sm:$0xf]  ;;  %v1442_v58 = vld [vmem:[%s2201_s5 + $0x44] sm:$0xf]  ;;  %v1182_v59 = vld [vmem:[%s2201_s5 + $0x50] sm:$0xf0] }
  0x1f   :  { %v1440_v7 = vld [vmem:[%s2201_s5 + $0x2c] sm:$0xf0]  ;;  %v1438_v8 = vld [vmem:[%s2201_s5 + $0x24] sm:$0xf]  ;;  %v1166_v9 = vld [vmem:[%s2201_s5 + $0x30] sm:$0xf0] }
  0x20   :  { %v1148_v17 = vld [vmem:[%s2201_s5] sm:$0xf] }
  0x21   :  { %v1499_v44 = vld [vmem:[%s2198_s1] ss:$0 sm:$0xff] }
  0x75   :  { %v35_v33 = vpop.xlane.xlu0 %34 }
  0x76   :  { %v45_v34 = vmul.f32 %v1631_v32, %v35_v33  ;;  %v1041_v33 = vor.u32 %v1406_v27, %v1038_v29  ;;  %v1452_v27 = vld [vmem:[%s2201_s5 + $0x8c] sm:$0xf0] }
  0x77   :  { %v1213_v29 = vor.u32 %v1452_v27, %v1212_v26  ;;  %v1435_v26 = vld [vmem:[%s2201_s5 + $0xc] sm:$0xf]  ;;  %v1158_v27 = vld [vmem:[%s2201_s5 + $0x18] sm:$0xf0] }
  0x78   :  { %v1634_v35 = vsub.f32 %v32_v0, %v45_v34  ;;  %v1097_v0 = vor.u32 %v1419_v62, %v1094_v63  ;;  %v1045_v34 = vor.u32 %v1409_v31, %v1044_v30  ;;  %316 = vmatpush.bf16.msra.mxu1 %v1041_v33  ;;  %v1270_v62 = vld [vmem:[%s2201_s5 + $0xf8] sm:$0xf0]  ;;  %v1244_v63 = vld [vmem:[%s2201_s5 + $0xc0] sm:$0xf]  ;;  %v1214_v30 = vld [vmem:[%s2201_s5 + $0x90] sm:$0xf0] }
  0x79   :  { %v1220_v31 = vld [vmem:[%s2201_s5 + $0x88] sm:$0xf]  ;;  %v1453_v33 = vld [vmem:[%s2201_s5 + $0x94] sm:$0xf0] }
  0x7a   :  { %v49_v36 = vmul.f32 %v1634_v35, %v1634_v35  ;;  %341 = vmatpush.bf16.msra.mxu3 %v1097_v0  ;;  %330 = vmatpush.bf16.msra.mxu2 %v1045_v34  ;;  %v1460_v0 = vld [vmem:[%s2201_s5 + $0xcc] sm:$0xf0] }
  0x7c   :  { %51 = vadd.xlane.f32.xlu1 %v49_v36  ;;  %v1407_v36 = vld [vmem:[%s2200_s3 + $0x2c] sm:$0xf]  ;;  %317 = vmatpush.bf16.msra.mxu1 %v1025_v47  ;;  %v1204_v47 = vld [vmem:[%s2201_s5 + $0x68] sm:$0xf] }
  0x7d   :  { %v37_v37 = vpop.xlane.xlu0 %36 }
  0x7e   :  { %v46_v38 = vmul.f32 %v1631_v32, %v37_v37  ;;  %342 = vmatpush.bf16.msra.mxu3 %v1081_v12  ;;  %v1046_v37 = vld [vmem:[%s2200_s3 + $0x38] sm:$0xf0]  ;;  %331 = vmatpush.bf16.msra.mxu2 %v1029_v48  ;;  %v1228_v12 = vld [vmem:[%s2201_s5 + $0xa0] sm:$0xf]  ;;  %v1449_v48 = vld [vmem:[%s2201_s5 + $0x74] sm:$0xf0] }
  0x7f   :  { %v1229_v15 = vor.u32 %v1456_v13, %v1228_v12  ;;  %v1205_v51 = vor.u32 %v1449_v48, %v1204_v47  ;;  %v1500_v47 = vld [vmem:[%s2199_s2] ss:$0 sm:$0xff] }
  0x80   :  { %v1639_v39 = vsub.f32 %v33_v1, %v46_v38  ;;  %v1068_v1 = vld [vmem:[%s2200_s3 + $0x60] sm:$0xf]  ;;  %v1049_v38 = vor.u32 %v1407_v36, %v1046_v37  ;;  %568 = vmatpush.bf16.msrb.mxu1 %v1265_v57  ;;  %v1221_v37 = vor.u32 %v1453_v33, %v1220_v31  ;;  %v1444_v57 = vld [vmem:[%s2201_s5 + $0x4c] sm:$0xf0] }
  0x81   :  { %v1069_v4 = vor.u32 %v1416_v2, %v1068_v1  ;;  %v1273_v1 = vor.u32 %v1463_v60, %v1270_v62  ;;  %v1245_v2 = vor.u32 %v1460_v0, %v1244_v63  ;;  %v1181_v60 = vor.u32 %v1444_v57, %v1180_v54  ;;  %v1445_v62 = vld [vmem:[%s2201_s5 + $0x54] sm:$0xf0]  ;;  %v1443_v63 = vld [vmem:[%s2201_s5 + $0x4c] sm:$0xf]  ;;  %v1472_v54 = vld [vmem:[%s2203_s7 + $0x30] sm:$0xff] }
  0x82   :  { %v50_v40 = vmul.f32 %v1639_v39, %v1639_v39  ;;  %343 = vmatpush.bf16.msra.mxu3 %v1065_v24  ;;  %582 = vmatpush.bf16.msrb.mxu2 %v1269_v61  ;;  %v1241_v24 = vor.u32 %v1455_v21, %v1238_v22  ;;  %v1185_v61 = vor.u32 %v1442_v58, %v1182_v59  ;;  %v1150_v21 = vld [vmem:[%s2201_s5 + $0x10] sm:$0xf0]  ;;  %v1497_v57 = vld [vmem:[%s2203_s7 + $0xf8] sm:$0xff]  ;;  %v1471_v58 = vld [vmem:[%s2203_s7 + $0x28] sm:$0xff] }
  0x83   :  { %300 = vmatpush.bf16.msra.mxu0 %v1069_v4  ;;  %v1246_v4 = vld [vmem:[%s2201_s5 + $0xd0] sm:$0xf0]  ;;  %v1479_v59 = vld [vmem:[%s2203_s7 + $0x68] sm:$0xff] }
  0x84   :  { %53 = vadd.xlane.f32.xlu1 %v50_v40  ;;  %v1020_v40 = vld [vmem:[%s2200_s3] sm:$0xf]  ;;  %v1249_v6 = vor.u32 %v1458_v3, %v1246_v4  ;;  %v1190_v3 = vld [vmem:[%s2201_s5 + $0x58] sm:$0xf0] }
  0x85   :  { %v1021_v43 = vor.u32 %v1404_v41, %v1020_v40  ;;  %v1222_v40 = vld [vmem:[%s2201_s5 + $0x98] sm:$0xf0]  ;;  %v1164_v4 = vld [vmem:[%s2201_s5 + $0x20] sm:$0xf] }
  0x86   :  { %344 = vmatpush.bf16.msra.mxu3 %v1049_v38  ;;  %569 = vmatpush.bf16.msrb.mxu1 %v1249_v6  ;;  %v1451_v38 = vld [vmem:[%s2201_s5 + $0x8c] sm:$0xf]  ;;  %v1193_v6 = vor.u32 %v1443_v63, %v1190_v3  ;;  %v1165_v13 = vor.u32 %v1440_v7, %v1164_v4  ;;  %v1470_v63 = vld [vmem:[%s2203_s7 + $0x20] sm:$0xff] }
  0x87   :  { %301 = vmatpush.bf16.msra.mxu0 %v1053_v16  ;;  %v1230_v16 = vld [vmem:[%s2201_s5 + $0xb0] sm:$0xf0]  ;;  %583 = vmatpush.bf16.msrb.mxu2 %v1253_v10  ;;  %v1225_v41 = vor.u32 %v1451_v38, %v1222_v40  ;;  %v1172_v10 = vld [vmem:[%s2201_s5 + $0x28] sm:$0xf]  ;;  %v1161_v38 = vor.u32 %v1435_v26, %v1158_v27 }
  0x88   :  { %v1233_v19 = vor.u32 %v1454_v14, %v1230_v16  ;;  %v1169_v14 = vor.u32 %v1438_v8, %v1166_v9  ;;  %v1174_v16 = vld [vmem:[%s2201_s5 + $0x38] sm:$0xf0]  ;;  %v1486_v9 = vld [vmem:[%s2203_s7 + $0xa0] sm:$0xff]  ;;  %v1484_v26 = vld [vmem:[%s2203_s7 + $0x90] sm:$0xff] }
  0x89   :  { %v1492_v27 = vld [vmem:[%s2203_s7 + $0xd0] sm:$0xff] }
  0x8a   :  { %345 = vmatpush.bf16.msra.mxu3 %v1033_v52  ;;  %570 = vmatpush.bf16.msrb.mxu1 %v1233_v19  ;;  %v1447_v52 = vld [vmem:[%s2201_s5 + $0x6c] sm:$0xf]  ;;  %v1436_v19 = vld [vmem:[%s2201_s5 + $0xc] sm:$0xf0] }
  0x8b   :  { %302 = vmatpush.bf16.msra.mxu0 %v1037_v28  ;;  %v1450_v28 = vld [vmem:[%s2201_s5 + $0x84] sm:$0xf]  ;;  %584 = vmatpush.bf16.msrb.mxu2 %v1237_v20 }
  0x8c   :  { %v1217_v36 = vor.u32 %v1450_v28, %v1214_v30  ;;  %v1434_v20 = vld [vmem:[%s2201_s5 + $0x4] sm:$0xf] }
  0x8d   :  { %v1153_v30 = vor.u32 %v1434_v20, %v1150_v21  ;;  %v1467_v20 = vld [vmem:[%s2203_s7 + $0x8] sm:$0xff] }
  0x8e   :  { %596 = vmatpush.bf16.msrb.mxu3 %v1273_v1  ;;  %571 = vmatpush.bf16.msrb.mxu1 %v1217_v36  ;;  %v1475_v21 = vld [vmem:[%s2203_s7 + $0x48] sm:$0xff] }
  0x8f   :  { %303 = vmatpush.bf16.msra.mxu0 %v1021_v43  ;;  %v1448_v43 = vld [vmem:[%s2201_s5 + $0x6c] sm:$0xf0]  ;;  %585 = vmatpush.bf16.msrb.mxu2 %v1221_v37 }
  0x90   :  { %v1197_v45 = vor.u32 %v1448_v43, %v1196_v42 }
  0x92   :  { %597 = vmatpush.bf16.msrb.mxu3 %v1257_v11  ;;  %572 = vmatpush.bf16.msrb.mxu1 %v1201_v50  ;;  %v1441_v11 = vld [vmem:[%s2201_s5 + $0x34] sm:$0xf0] }
  0x93   :  { %554 = vmatpush.bf16.msrb.mxu0 %v1261_v56  ;;  %v1209_v56 = vor.u32 %v1447_v52, %v1206_v53  ;;  %586 = vmatpush.bf16.msrb.mxu2 %v1205_v51  ;;  %v1173_v18 = vor.u32 %v1441_v11, %v1172_v10  ;;  %v1494_v10 = vld [vmem:[%s2203_s7 + $0xe0] sm:$0xff] }
  0x94   :  { %v2063_v11 = vld [vmem:[%s2204_s6] sm:$0xf] }
  0x96   :  { %598 = vmatpush.bf16.msrb.mxu3 %v1241_v24  ;;  %573 = vmatpush.bf16.msrb.mxu1 %v1185_v61  ;;  %v1156_v24 = vld [vmem:[%s2201_s5 + $0x8] sm:$0xf] }
  0x97   :  { %555 = vmatpush.bf16.msrb.mxu0 %v1245_v2 }
  0x9a   :  { %599 = vmatpush.bf16.msrb.mxu3 %v1225_v41  ;;  %574 = vmatpush.bf16.msrb.mxu1 %v1169_v14  ;;  %v386_v14 = vperm.slane %v2063_v11, 0 }
  0x9b   :  { %556 = vmatpush.bf16.msrb.mxu0 %v1229_v15  ;;  %v1439_v15 = vld [vmem:[%s2201_s5 + $0x2c] sm:$0xf] }
  0x9e   :  { %600 = vmatpush.bf16.msrb.mxu3 %v1209_v56  ;;  %575 = vmatpush.bf16.msrb.mxu1 %v1153_v30  ;;  %v1489_v56 = vld [vmem:[%s2203_s7 + $0xb8] sm:$0xff]  ;;  %v1466_v30 = vld [vmem:[%s2203_s7] sm:$0xff] }
  0x9f   :  { %557 = vmatpush.bf16.msrb.mxu0 %v1213_v29  ;;  %v1149_v29 = vor.u32 %v1436_v19, %v1148_v17  ;;  %v1493_v17 = vld [vmem:[%s2203_s7 + $0xd8] sm:$0xff] }
  0xa2   :  { %601 = vmatpush.bf16.msrb.mxu3 %v1193_v6  ;;  %v1477_v6 = vld [vmem:[%s2203_s7 + $0x58] sm:$0xff] }
  0xa3   :  { %558 = vmatpush.bf16.msrb.mxu0 %v1197_v45 }
  0xa7   :  { %559 = vmatpush.bf16.msrb.mxu0 %v1181_v60 }
  0xab   :  { %560 = vmatpush.bf16.msrb.mxu0 %v1165_v13  ;;  %v1476_v13 = vld [vmem:[%s2203_s7 + $0x50] sm:$0xff] }
  0xaf   :  { %561 = vmatpush.bf16.msrb.mxu0 %v1149_v29 }
  0xef   :  { %v52_v23 = vpop.xlane.xlu1 %51 }
  0xf0   :  { %v55_v25 = vmul.f32 %v52_v23, %v1631_v32  ;;  %v1177_v23 = vor.u32 %v1439_v15, %v1174_v16  ;;  %v387_v15 = vperm.slane %v2063_v11, 1  ;;  %v1485_v16 = vld [vmem:[%s2203_s7 + $0x98] sm:$0xff] }
  0xf2   :  { %v1878_v34 = vadd.f32 1e-05, %v55_v25  ;;  %v1437_v25 = vld [vmem:[%s2201_s5 + $0x14] sm:$0xf0]  ;;  %602 = vmatpush.bf16.msrb.mxu3 %v1177_v23 }
  0xf3   :  { %v1157_v33 = vor.u32 %v1437_v25, %v1156_v24 }
  0xf4   :  { %1504 = vrsqrt.f32 %v1878_v34  ;;  %vm65_vm2 = vweird.f32 %v1878_v34 }
  0xf6   :  { %603 = vmatpush.bf16.msrb.mxu3 %v1161_v38 }
  0xf7   :  { %v54_v49 = vpop.xlane.xlu1 %53 }
  0xf8   :  { %v56_v55 = vmul.f32 %v54_v49, %v1631_v32  ;;  %v1188_v32 = vld [vmem:[%s2201_s5 + $0x48] sm:$0xf] }
  0xf9   :  { %v1189_v2 = vor.u32 %v1445_v62, %v1188_v32  ;;  %v1488_v32 = vld [vmem:[%s2203_s7 + $0xb0] sm:$0xff] }
  0xfa   :  { %v1505_v0 = vpop.eup %1504  ;;  %v58_v1 = vadd.f32 1e-05, %v56_v55  ;;  %v1480_v55 = vld [vmem:[%s2203_s7 + $0x70] sm:$0xff] }
  0xfb   :  { %v60_v5 = vmul.f32 %v1505_v0, %v1878_v34  ;;  %587 = vmatpush.bf16.msrb.mxu2 %v1189_v2  ;;  %vm66_vm1 = vweird.f32 %v1505_v0  ;;  %v1496_v62 = vld [vmem:[%s2203_s7 + $0xf0] sm:$0xff]  ;;  %v1495_v2 = vld [vmem:[%s2203_s7 + $0xe8] sm:$0xff] }
  0xfc   :  { %1506 = vrsqrt.f32 %v58_v1  ;;  %vm67_vm3 = vmor %vm65_vm2, %vm66_vm1  ;;  %vm75_vm5 = vweird.f32 %v58_v1 }
  0xfd   :  { %v61_v12 = vmul.f32 %v1505_v0, %v60_v5  ;;  %v1469_v5 = vld [vmem:[%s2203_s7 + $0x18] sm:$0xff] }
  0xff   :  { %v62_v22 = vmul.f32 0.5, %v61_v12  ;;  %588 = vmatpush.bf16.msrb.mxu2 %v1173_v18  ;;  %v1468_v12 = vld [vmem:[%s2203_s7 + $0x10] sm:$0xff] }
 0x101   :  { %v63_v28 = vsub.f32 1.5, %v62_v22 }
 0x102   :  { %v1507_v31 = vpop.eup %1506 }
 0x103   :  { %v64_v36 = vmul.f32 %v1505_v0, %v63_v28  ;;  %v70_v37 = vmul.f32 %v1507_v31, %v58_v1  ;;  %589 = vmatpush.bf16.msrb.mxu2 %v1157_v33  ;;  %vm76_vm4 = vweird.f32 %v1507_v31  ;;  %v1487_v1 = vld [vmem:[%s2203_s7 + $0xa8] sm:$0xff]  ;;  %v388_v33 = vperm.slane %v2063_v11, 2 }
 0x104   :  { %vm77_vm6 = vmor %vm75_vm5, %vm76_vm4 }
 0x105   :  { %v71_v40 = vmul.f32 %v1507_v31, %v70_v37  ;;  %v68_v41 = vsel %vm67_vm3, %v1505_v0, %v64_v36  ;;  %v1478_v0 = vld [vmem:[%s2203_s7 + $0x60] sm:$0xff]  ;;  %v389_v36 = vperm.slane %v2063_v11, 3 }
 0x106   :  { %v79_v45 = vmul.f32 %v68_v41, %v1634_v35  ;;  %v1473_v35 = vld [vmem:[%s2203_s7 + $0x38] sm:$0xff]  ;;  %v1491_v41 = vld [vmem:[%s2203_s7 + $0xc8] sm:$0xff] }
 0x107   :  { %v72_v42 = vmul.f32 0.5, %v71_v40  ;;  %v1483_v40 = vld [vmem:[%s2203_s7 + $0x88] sm:$0xff] }
 0x108   :  { %v85_v48 = vmul.f32 %v1499_v44, %v79_v45 }
 0x109   :  { %v73_v43 = vsub.f32 1.5, %v72_v42 }
 0x10a   :  { %v91_v51 = vadd.f32 %v1500_v47, %v85_v48 }
 0x10b   :  { %v74_v46 = vmul.f32 %v1507_v31, %v73_v43 }
 0x10d   :  { %v78_v34 = vsel %vm77_vm6, %v1507_v31, %v74_v46  ;;  %v1474_v31 = vld [vmem:[%s2203_s7 + $0x40] sm:$0xff] }
 0x10e   :  { %v80_v49 = vmul.f32 %v78_v34, %v1639_v39  ;;  %v1481_v39 = vld [vmem:[%s2203_s7 + $0x78] sm:$0xff] }
 0x110   :  { %v86_v50 = vmul.f32 %v1499_v44, %v80_v49  ;;  %v1482_v49 = vld [vmem:[%s2203_s7 + $0x80] sm:$0xff] }
 0x112   :  { %v92_v52 = vadd.f32 %v1500_v47, %v86_v50  ;;  %v1490_v50 = vld [vmem:[%s2203_s7 + $0xc0] sm:$0xff] }
 0x114   :  { %v93_v53 = vpack.c.bf16 %v92_v52, %v91_v51 }
 0x116   :  { %304 = vmatmul.bf16.vlgmr.msra.gmra.mxu0 %v93_v53  ;;  %318 = vmatmul.bf16.vlgmr.msra.gmra.mxu1 %v93_v53 }
 0x117   :  { %332 = vmatmul.bf16.vlgmr.msra.gmra.mxu2 %v93_v53  ;;  %346 = vmatmul.bf16.vlgmr.msra.gmra.mxu3 %v93_v53 }
 0x118   :  { %954 = vmatpush.bf16.msra.mxu0 %v1473_v35  ;;  %968 = vmatpush.bf16.msra.mxu1 %v1481_v39 }
 0x119   :  { %982 = vmatpush.bf16.msra.mxu2 %v1489_v56  ;;  %996 = vmatpush.bf16.msra.mxu3 %v1497_v57 }
 0x11c   :  { %955 = vmatpush.bf16.msra.mxu0 %v1472_v54  ;;  %969 = vmatpush.bf16.msra.mxu1 %v1480_v55 }
 0x11d   :  { %983 = vmatpush.bf16.msra.mxu2 %v1488_v32  ;;  %997 = vmatpush.bf16.msra.mxu3 %v1496_v62 }
 0x120   :  { %956 = vmatpush.bf16.msra.mxu0 %v1471_v58  ;;  %970 = vmatpush.bf16.msra.mxu1 %v1479_v59 }
 0x121   :  { %984 = vmatpush.bf16.msra.mxu2 %v1487_v1  ;;  %998 = vmatpush.bf16.msra.mxu3 %v1495_v2 }
 0x124   :  { %957 = vmatpush.bf16.msra.mxu0 %v1470_v63  ;;  %971 = vmatpush.bf16.msra.mxu1 %v1478_v0 }
 0x125   :  { %985 = vmatpush.bf16.msra.mxu2 %v1486_v9  ;;  %999 = vmatpush.bf16.msra.mxu3 %v1494_v10 }
 0x126   :  { %562 = vmatmul.bf16.vlgmr.msrb.gmra.mxu0 %v93_v53  ;;  %576 = vmatmul.bf16.vlgmr.msrb.gmra.mxu1 %v93_v53 }
 0x127   :  { %590 = vmatmul.bf16.vlgmr.msrb.gmra.mxu2 %v93_v53  ;;  %604 = vmatmul.bf16.vlgmr.msrb.gmra.mxu3 %v93_v53 }
 0x128   :  { %958 = vmatpush.bf16.msra.mxu0 %v1469_v5  ;;  %972 = vmatpush.bf16.msra.mxu1 %v1477_v6 }
 0x129   :  { %986 = vmatpush.bf16.msra.mxu2 %v1485_v16  ;;  %1000 = vmatpush.bf16.msra.mxu3 %v1493_v17 }
 0x12c   :  { %959 = vmatpush.bf16.msra.mxu0 %v1468_v12  ;;  %973 = vmatpush.bf16.msra.mxu1 %v1476_v13 }
 0x12d   :  { %987 = vmatpush.bf16.msra.mxu2 %v1484_v26  ;;  %1001 = vmatpush.bf16.msra.mxu3 %v1492_v27 }
 0x130   :  { %960 = vmatpush.bf16.msra.mxu0 %v1467_v20  ;;  %974 = vmatpush.bf16.msra.mxu1 %v1475_v21 }
 0x131   :  { %988 = vmatpush.bf16.msra.mxu2 %v1483_v40  ;;  %1002 = vmatpush.bf16.msra.mxu3 %v1491_v41  ;;  %v126_v41 = vld [vmem:[%s2205_s4] sm:$0xf] }
 0x134   :  { %961 = vmatpush.bf16.msra.mxu0 %v1466_v30  ;;  %975 = vmatpush.bf16.msra.mxu1 %v1474_v31 }
 0x135   :  { %989 = vmatpush.bf16.msra.mxu2 %v1482_v49  ;;  %1003 = vmatpush.bf16.msra.mxu3 %v1490_v50  ;;  %v128_v50 = vperm.slane %v126_v41, 0 }
 0x193   :  { %v2018_v60 = vpop.f32.mrf.mxu0  ;;  %v2020_v61 = vpop.f32.mrf.mxu1 }
 0x19a   :  { %v2040_v3 = vpop.f32.mrf.mxu2  ;;  %v2042_v4 = vpop.f32.mrf.mxu3 }
 0x19b   :  { %v2050_v7 = vpop.f32.mrf.mxu0  ;;  %v2052_v8 = vpop.f32.mrf.mxu1 }
 0x1a2   :  { %v2079_v18 = vpop.f32.mrf.mxu2  ;;  %v2081_v19 = vpop.f32.mrf.mxu3 }
 0x1a3   :  { %v563_v22 = vpop.f32.mrf.mxu0  ;;  %v577_v23 = vpop.f32.mrf.mxu1 }
 0x1a4   :  { %v2089_v24 = vadd.f32 %v563_v22, %v386_v14  ;;  %v2091_v25 = vadd.f32 %v577_v23, %v387_v15 }
 0x1a6   :  { %v610_v28 = vmul.f32 %v2089_v24, %v2089_v24  ;;  %v611_v29 = vmul.f32 %v2091_v25, %v2091_v25 }
 0x1a8   :  { %v618_v37 = vmul.f32 %v610_v28, %v2089_v24  ;;  %v619_v38 = vmul.f32 %v611_v29, %v2091_v25 }
 0x1aa   :  { %v626_v42 = vmul.f32 0.044715, %v618_v37  ;;  %v627_v43 = vmul.f32 0.044715, %v619_v38  ;;  %v591_v44 = vpop.f32.mrf.mxu2  ;;  %v605_v45 = vpop.f32.mrf.mxu3 }
 0x1ab   :  { %v2119_v46 = vadd.f32 %v591_v44, %v388_v33  ;;  %v2121_v34 = vadd.f32 %v605_v45, %v389_v36  ;;  %v565_v47 = vpop.f32.mrf.mxu0  ;;  %v579_v48 = vpop.f32.mrf.mxu1 }
 0x1ac   :  { %v634_v51 = vadd.f32 %v626_v42, %v2089_v24  ;;  %v635_v52 = vadd.f32 %v627_v43, %v2091_v25  ;;  %v2131_v53 = vadd.f32 %v565_v47, %v386_v14  ;;  %v2133_v35 = vadd.f32 %v579_v48, %v387_v15 }
 0x1ad   :  { %v612_v39 = vmul.f32 %v2119_v46, %v2119_v46  ;;  %v613_v54 = vmul.f32 %v2121_v34, %v2121_v34 }
 0x1ae   :  { %v642_v55 = vmul.f32 0.7978846, %v634_v51  ;;  %v643_v56 = vmul.f32 0.7978846, %v635_v52  ;;  %v614_v57 = vmul.f32 %v2131_v53, %v2131_v53  ;;  %v615_v58 = vmul.f32 %v2133_v35, %v2133_v35 }
 0x1af   :  { %v620_v59 = vmul.f32 %v612_v39, %v2119_v46  ;;  %v621_v32 = vmul.f32 %v613_v54, %v2121_v34  ;;  %v129_v39 = vperm.slane %v126_v41, 1 }
 0x1b0   :  { %v622_v62 = vmul.f32 %v614_v57, %v2131_v53  ;;  %v623_v63 = vmul.f32 %v615_v58, %v2133_v35  ;;  %1508 = vtanh.f32 %v642_v55 }
 0x1b1   :  { %v628_v0 = vmul.f32 0.044715, %v620_v59  ;;  %v629_v1 = vmul.f32 0.044715, %v621_v32  ;;  %1510 = vtanh.f32 %v643_v56  ;;  %v306_v32 = vadd.f32 %v2018_v60, %v128_v50 }
 0x1b2   :  { %v630_v2 = vmul.f32 0.044715, %v622_v62  ;;  %v631_v5 = vmul.f32 0.044715, %v623_v63  ;;  %v593_v6 = vpop.f32.mrf.mxu2  ;;  %v607_v9 = vpop.f32.mrf.mxu3  ;;  %v308_v62 = vadd.f32 %v2050_v7, %v128_v50 }
 0x1b3   :  { %v636_v10 = vadd.f32 %v628_v0, %v2119_v46  ;;  %v637_v11 = vadd.f32 %v629_v1, %v2121_v34  ;;  %v2149_v12 = vadd.f32 %v593_v6, %v388_v33  ;;  %v2151_v13 = vadd.f32 %v607_v9, %v389_v36 }
 0x1b4   :  { %v638_v14 = vadd.f32 %v630_v2, %v2131_v53  ;;  %v639_v15 = vadd.f32 %v631_v5, %v2133_v35  ;;  %v320_v2 = vadd.f32 %v2020_v61, %v129_v39  ;;  %v322_v5 = vadd.f32 %v2052_v8, %v129_v39 }
 0x1b5   :  { %v644_v16 = vmul.f32 0.7978846, %v636_v10  ;;  %v645_v17 = vmul.f32 0.7978846, %v637_v11  ;;  %v616_v20 = vmul.f32 %v2149_v12, %v2149_v12  ;;  %v617_v21 = vmul.f32 %v2151_v13, %v2151_v13 }
 0x1b6   :  { %v646_v22 = vmul.f32 0.7978846, %v638_v14  ;;  %v647_v23 = vmul.f32 0.7978846, %v639_v15  ;;  %v1509_v26 = vpop.eup %1508  ;;  %v130_v10 = vperm.slane %v126_v41, 2  ;;  %v131_v15 = vperm.slane %v126_v41, 3 }
 0x1b7   :  { %1512 = vtanh.f32 %v644_v16  ;;  %v624_v27 = vmul.f32 %v616_v20, %v2149_v12  ;;  %v625_v28 = vmul.f32 %v617_v21, %v2151_v13  ;;  %v1511_v29 = vpop.eup %1510  ;;  %v658_v33 = vadd.f32 1.0, %v1509_v26 }
 0x1b8   :  { %1514 = vtanh.f32 %v645_v17  ;;  %v659_v36 = vadd.f32 1.0, %v1511_v29  ;;  %v348_v26 = vadd.f32 %v2042_v4, %v131_v15 }
 0x1b9   :  { %1516 = vtanh.f32 %v646_v22  ;;  %v632_v30 = vmul.f32 0.044715, %v624_v27  ;;  %v633_v31 = vmul.f32 0.044715, %v625_v28  ;;  %v666_v45 = vmul.f32 0.5, %v658_v33 }
 0x1ba   :  { %1518 = vtanh.f32 %v647_v23  ;;  %v667_v48 = vmul.f32 0.5, %v659_v36  ;;  %v334_v22 = vadd.f32 %v2040_v3, %v130_v10  ;;  %v350_v27 = vadd.f32 %v2081_v19, %v131_v15 }
 0x1bb   :  { %v640_v37 = vadd.f32 %v632_v30, %v2149_v12  ;;  %v641_v38 = vadd.f32 %v633_v31, %v2151_v13  ;;  %v674_v56 = vmul.f32 %v666_v45, %v2089_v24 }
 0x1bc   :  { %v675_v58 = vmul.f32 %v667_v48, %v2091_v25 }
 0x1bd   :  { %v1513_v40 = vpop.eup %1512  ;;  %v648_v42 = vmul.f32 0.7978846, %v640_v37  ;;  %v649_v43 = vmul.f32 0.7978846, %v641_v38  ;;  %v682_v25 = vmul.f32 %v674_v56, %v306_v32 }
 0x1be   :  { %v1515_v44 = vpop.eup %1514  ;;  %v660_v51 = vadd.f32 1.0, %v1513_v40  ;;  %v683_v16 = vmul.f32 %v675_v58, %v320_v2 }
 0x1bf   :  { %v1517_v47 = vpop.eup %1516  ;;  %1520 = vtanh.f32 %v648_v42  ;;  %v661_v54 = vadd.f32 1.0, %v1515_v44  ;;  %v1524_v42 = vld [vmem:[%s2197_s0] sm:$0xff] }
 0x1c0   :  { %v1519_v49 = vpop.eup %1518  ;;  %v662_v52 = vadd.f32 1.0, %v1517_v47  ;;  %1522 = vtanh.f32 %v649_v43  ;;  %v668_v63 = vmul.f32 0.5, %v660_v51  ;;  %v1525_v51 = vld [vmem:[%s2197_s0 + $0x8] sm:$0xff] }
 0x1c1   :  { %v663_v55 = vadd.f32 1.0, %v1519_v49  ;;  %v669_v6 = vmul.f32 0.5, %v661_v54 }
 0x1c2   :  { %v670_v57 = vmul.f32 0.5, %v662_v52  ;;  %v676_v17 = vmul.f32 %v668_v63, %v2119_v46 }
 0x1c3   :  { %v671_v59 = vmul.f32 0.5, %v663_v55  ;;  %v677_v61 = vmul.f32 %v669_v6, %v2121_v34 }
 0x1c4   :  { %v678_v0 = vmul.f32 %v670_v57, %v2131_v53  ;;  %v684_v46 = vmul.f32 %v676_v17, %v334_v22 }
 0x1c5   :  { %v1521_v1 = vpop.eup %1520  ;;  %v679_v9 = vmul.f32 %v671_v59, %v2133_v35  ;;  %v336_v35 = vadd.f32 %v2079_v18, %v130_v10  ;;  %v685_v30 = vmul.f32 %v677_v61, %v348_v26  ;;  %v1501_v18 = vld [vmem:[%s2202_s8] ss:$0 sm:$0xff] }
 0x1c6   :  { %v1523_v24 = vpop.eup %1522  ;;  %v664_v11 = vadd.f32 1.0, %v1521_v1  ;;  %v686_v14 = vmul.f32 %v678_v0, %v308_v62 }
 0x1c7   :  { %v665_v60 = vadd.f32 1.0, %v1523_v24  ;;  %v687_v7 = vmul.f32 %v679_v9, %v322_v5 }
 0x1c8   :  { %v672_v53 = vmul.f32 0.5, %v664_v11  ;;  %v690_v20 = vpack.c.bf16 %v686_v14, %v682_v25 }
 0x1c9   :  { %v673_v21 = vmul.f32 0.5, %v665_v60  ;;  %v691_v8 = vpack.c.bf16 %v687_v7, %v683_v16 }
 0x1ca   :  { %v680_v23 = vmul.f32 %v672_v53, %v2149_v12  ;;  %962 = vmatmul.bf16.vlgmr.msra.gmra.mxu0 %v690_v20 }
 0x1cb   :  { %v681_v28 = vmul.f32 %v673_v21, %v2151_v13  ;;  %976 = vmatmul.bf16.vlgmr.msra.gmra.mxu1 %v691_v8 }
 0x1cc   :  { %v688_v29 = vmul.f32 %v680_v23, %v336_v35 }
 0x1cd   :  { %v689_v34 = vmul.f32 %v681_v28, %v350_v27 }
 0x1ce   :  { %v692_v31 = vpack.c.bf16 %v688_v29, %v684_v46 }
 0x1cf   :  { %v693_v33 = vpack.c.bf16 %v689_v34, %v685_v30 }
 0x1d0   :  { %990 = vmatmul.bf16.vlgmr.msra.gmra.mxu2 %v692_v31 }
 0x1d1   :  { %1004 = vmatmul.bf16.vlgmr.msra.gmra.mxu3 %v693_v33 }
 0x247   :  { %v963_v3 = vpop.f32.mrf.mxu0 }
 0x248   :  { %v964_v12 = vadd.f32 %v1501_v18, %v963_v3  ;;  %v977_v4 = vpop.f32.mrf.mxu1 }
 0x24a   :  { %v978_v36 = vadd.f32 %v977_v4, %v964_v12 }
 0x24f   :  { %v965_v19 = vpop.f32.mrf.mxu0 }
 0x250   :  { %v966_v40 = vadd.f32 %v1501_v18, %v965_v19  ;;  %v979_v44 = vpop.f32.mrf.mxu1 }
 0x252   :  { %v980_v45 = vadd.f32 %v979_v44, %v966_v40 }
 0x253   :  { %v991_v37 = vpop.f32.mrf.mxu2 }
 0x254   :  { %v992_v13 = vadd.f32 %v991_v37, %v978_v36  ;;  %v1005_v38 = vpop.f32.mrf.mxu3 }
 0x256   :  { %v1006_v41 = vadd.f32 %v1005_v38, %v992_v13 }
 0x258   :  { %v1010_v43 = vadd.f32 %v1524_v42, %v1006_v41 }
 0x25a   :  { %1012 = vst [vmem:[%s2206_s9] sm:$0xff] %v1010_v43 }
 0x25b   :  { %v993_v47 = vpop.f32.mrf.mxu2 }
 0x25c   :  { %v994_v48 = vadd.f32 %v993_v47, %v980_v45  ;;  %v1007_v49 = vpop.f32.mrf.mxu3 }
 0x25e   :  { %v1008_v50 = vadd.f32 %v1007_v49, %v994_v48 }
 0x260   :  { %v1011_v52 = vadd.f32 %v1525_v51, %v1008_v50 }
 0x262   :  { %1013 = vst [vmem:[%s2206_s9 + $0x8] sm:$0xff] %v1011_v52 }

// kernel: denoiser_forward.12
= control target key start
LH: loop header
LB: loop body
LE: loop exit
PB: predicated region body
PF: predicated region fallthrough
CT: control target
= control target key end

     0   :  { %v2218_v2 = vmov 128.0   ;;  %vm347_vm7 = vcmask 261120   ;;  %vm372_vm9 = vcmask 130048   ;;  %s2728_s0 = inlined_call_operand.vmem [shape: f32[16,128], index: 0, kind: input, shape index: {}]   ;;  %s2729_s1 = inlined_call_operand.vmem [shape: f32[1,128], index: 1, kind: input, shape index: {}]   ;;  %s2730_s2 = inlined_call_operand.vmem [shape: f32[1,128], index: 2, kind: input, shape index: {}]   ;;  %s2731_s4 = inlined_call_operand.vmem [shape: bf16[4,128,32], index: 4, kind: input, shape index: {}]   ;;  %s2732_s3 = inlined_call_operand.vmem [shape: bf16[4,128,32], index: 3, kind: input, shape index: {}]   ;;  %s2733_s5 = inlined_call_operand.vmem [shape: bf16[4,128,32], index: 5, kind: input, shape index: {}]   ;;  %s2734_s9 = inlined_call_operand.vmem [shape: s32[1,16], index: 9, kind: input, shape index: {}]   ;;  %s2735_s8 = inlined_call_operand.vmem [shape: s32[16,1], index: 8, kind: input, shape index: {}]   ;;  %s2736_s6 = inlined_call_operand.vmem [shape: bf16[4,32,128], index: 6, kind: input, shape index: {}]   ;;  %s2737_s7 = inlined_call_operand.vmem [shape: f32[1,128], index: 7, kind: input, shape index: {}]   ;;  %s2738_s10 = inlined_call_operand.vmem [shape: f32[16,128], index: 10, kind: output, shape index: {}]  }
   0x1   :  { %v36_v0 = vld [vmem:[%s2728_s0] sm:$0xff]  ;;  %v37_v1 = vld [vmem:[%s2728_s0 + $0x8] sm:$0xff]  ;;  %2178 = vrcp.f32 %v2218_v2  ;;  %v2081_v5 = vld [vmem:[%s2731_s4 + $0x38] sm:$0xff] }
   0x2   :  { %38 = vadd.xlane.f32.xlu0 %v36_v0  ;;  %v2073_v6 = vld [vmem:[%s2732_s3 + $0x38] sm:$0xff]  ;;  %253 = vmatpush.bf16.msra.mxu1 %v2081_v5  ;;  %v2080_v7 = vld [vmem:[%s2731_s4 + $0x30] sm:$0xff]  ;;  %v2079_v10 = vld [vmem:[%s2731_s4 + $0x28] sm:$0xff] }
   0x3   :  { %175 = vmatpush.bf16.msra.mxu0 %v2073_v6  ;;  %v2072_v9 = vld [vmem:[%s2732_s3 + $0x30] sm:$0xff]  ;;  %v2078_v12 = vld [vmem:[%s2731_s4 + $0x20] sm:$0xff]  ;;  %v2077_v14 = vld [vmem:[%s2731_s4 + $0x18] sm:$0xff] }
   0x4   :  { %v2076_v24 = vld [vmem:[%s2731_s4 + $0x10] sm:$0xff]  ;;  %v2071_v25 = vld [vmem:[%s2732_s3 + $0x28] sm:$0xff]  ;;  %v2070_v27 = vld [vmem:[%s2732_s3 + $0x20] sm:$0xff] }
   0x5   :  { %v2075_v26 = vld [vmem:[%s2731_s4 + $0x8] sm:$0xff]  ;;  %v2089_v28 = vld [vmem:[%s2733_s5 + $0x38] sm:$0xff]  ;;  %v2074_v29 = vld [vmem:[%s2731_s4] sm:$0xff] }
   0x6   :  { %254 = vmatpush.bf16.msra.mxu1 %v2080_v7  ;;  %331 = vmatpush.bf16.msra.mxu2 %v2089_v28  ;;  %v2069_v30 = vld [vmem:[%s2732_s3 + $0x18] sm:$0xff]  ;;  %v2088_v32 = vld [vmem:[%s2733_s5 + $0x30] sm:$0xff]  ;;  %v2087_v35 = vld [vmem:[%s2733_s5 + $0x28] sm:$0xff] }
   0x7   :  { %v2179_v3 = vpop.eup %2178  ;;  %176 = vmatpush.bf16.msra.mxu0 %v2072_v9  ;;  %v2115_v31 = vld [vmem:[%s2733_s5 + $0x78] sm:$0xff]  ;;  %v2068_v33 = vld [vmem:[%s2732_s3 + $0x10] sm:$0xff]  ;;  %v2067_v36 = vld [vmem:[%s2732_s3 + $0x8] sm:$0xff] }
   0x8   :  { %v43_v4 = vmul.f32 128.0, %v2179_v3  ;;  %vm47_vm0 = vweird.f32 %v2179_v3  ;;  %v2114_v34 = vld [vmem:[%s2733_s5 + $0x70] sm:$0xff]  ;;  %v2113_v37 = vld [vmem:[%s2733_s5 + $0x68] sm:$0xff]  ;;  %v2086_v38 = vld [vmem:[%s2733_s5 + $0x20] sm:$0xff] }
   0x9   :  { %v2066_v39 = vld [vmem:[%s2732_s3] sm:$0xff]  ;;  %v2085_v41 = vld [vmem:[%s2733_s5 + $0x18] sm:$0xff]  ;;  %v2084_v44 = vld [vmem:[%s2733_s5 + $0x10] sm:$0xff] }
   0xa   :  { %40 = vadd.xlane.f32.xlu0 %v37_v1  ;;  %v44_v8 = vsub.f32 1.0, %v43_v4  ;;  %255 = vmatpush.bf16.msra.mxu1 %v2079_v10  ;;  %v2112_v40 = vld [vmem:[%s2733_s5 + $0x60] sm:$0xff]  ;;  %v2107_v42 = vld [vmem:[%s2731_s4 + $0x78] sm:$0xff]  ;;  %v2106_v45 = vld [vmem:[%s2731_s4 + $0x70] sm:$0xff] }
   0xb   :  { %177 = vmatpush.bf16.msra.mxu0 %v2071_v25  ;;  %332 = vmatpush.bf16.msra.mxu2 %v2088_v32  ;;  %v2111_v43 = vld [vmem:[%s2733_s5 + $0x58] sm:$0xff]  ;;  %v2110_v46 = vld [vmem:[%s2733_s5 + $0x50] sm:$0xff]  ;;  %v2083_v47 = vld [vmem:[%s2733_s5 + $0x8] sm:$0xff] }
   0xc   :  { %v45_v11 = vmul.f32 %v2179_v3, %v44_v8  ;;  %v2105_v48 = vld [vmem:[%s2731_s4 + $0x68] sm:$0xff]  ;;  %v2082_v52 = vld [vmem:[%s2733_s5] sm:$0xff]  ;;  %v2103_v56 = vld [vmem:[%s2731_s4 + $0x58] sm:$0xff] }
   0xd   :  { %v2109_v51 = vld [vmem:[%s2733_s5 + $0x48] sm:$0xff]  ;;  %v2104_v53 = vld [vmem:[%s2731_s4 + $0x60] sm:$0xff]  ;;  %v2102_v59 = vld [vmem:[%s2731_s4 + $0x50] sm:$0xff] }
   0xe   :  { %v46_v13 = vadd.f32 %v2179_v3, %v45_v11  ;;  %256 = vmatpush.bf16.msra.mxu1 %v2078_v12  ;;  %v2108_v55 = vld [vmem:[%s2733_s5 + $0x40] sm:$0xff]  ;;  %v2101_v63 = vld [vmem:[%s2731_s4 + $0x48] sm:$0xff] }
   0xf   :  { %178 = vmatpush.bf16.msra.mxu0 %v2070_v27  ;;  %333 = vmatpush.bf16.msra.mxu2 %v2087_v35  ;;  %v2100_v2 = vld [vmem:[%s2731_s4 + $0x40] sm:$0xff]  ;;  %v2120_v27 = vld [vmem:[%s2732_s3 + $0x90] sm:$0xff]  ;;  %v2119_v28 = vld [vmem:[%s2732_s3 + $0x88] sm:$0xff] }
  0x10   :  { %v2302_v15 = vsel %vm47_vm0, %v2179_v3, %v46_v13  ;;  %v2174_v11 = vld [vmem:[%s2729_s1] ss:$0 sm:$0xff] }
  0x11   :  { %v2122_v25 = vld [vmem:[%s2732_s3 + $0xa0] sm:$0xff] }
  0x12   :  { %257 = vmatpush.bf16.msra.mxu1 %v2077_v14 }
  0x13   :  { %179 = vmatpush.bf16.msra.mxu0 %v2069_v30  ;;  %334 = vmatpush.bf16.msra.mxu2 %v2086_v38 }
  0x16   :  { %258 = vmatpush.bf16.msra.mxu1 %v2076_v24 }
  0x17   :  { %180 = vmatpush.bf16.msra.mxu0 %v2068_v33  ;;  %335 = vmatpush.bf16.msra.mxu2 %v2085_v41 }
  0x1a   :  { %259 = vmatpush.bf16.msra.mxu1 %v2075_v26  ;;  %v2121_v26 = vld [vmem:[%s2732_s3 + $0x98] sm:$0xff] }
  0x1b   :  { %181 = vmatpush.bf16.msra.mxu0 %v2067_v36  ;;  %336 = vmatpush.bf16.msra.mxu2 %v2084_v44  ;;  %v98_v36 = vld [vmem:[%s2735_s8] sm:$0xff] }
  0x1e   :  { %260 = vmatpush.bf16.msra.mxu1 %v2074_v29  ;;  %v2118_v29 = vld [vmem:[%s2732_s3 + $0x80] sm:$0xff] }
  0x1f   :  { %182 = vmatpush.bf16.msra.mxu0 %v2066_v39  ;;  %337 = vmatpush.bf16.msra.mxu2 %v2083_v47 }
  0x22   :  { %642 = vmatpush.bf16.msrb.mxu1 %v2115_v31 }
  0x23   :  { %563 = vmatpush.bf16.msrb.mxu0 %v2107_v42  ;;  %338 = vmatpush.bf16.msra.mxu2 %v2082_v52 }
  0x26   :  { %643 = vmatpush.bf16.msrb.mxu1 %v2114_v34 }
  0x27   :  { %564 = vmatpush.bf16.msrb.mxu0 %v2106_v45 }
  0x2a   :  { %644 = vmatpush.bf16.msrb.mxu1 %v2113_v37  ;;  %v2219_v37 = vmov 0  }
  0x2b   :  { %565 = vmatpush.bf16.msrb.mxu0 %v2105_v48  ;;  %2172 = vset.pattern.permute.xlu2 %v2219_v37 }
  0x2c   :  { %2173 = vset.pattern.permute.xlu0 %v2219_v37  ;;  %103 = vperm.xlu2 %2172, %v98_v36  }
  0x2e   :  { %645 = vmatpush.bf16.msrb.mxu1 %v2112_v40 }
  0x2f   :  { %566 = vmatpush.bf16.msrb.mxu0 %v2104_v53 }
  0x32   :  { %646 = vmatpush.bf16.msrb.mxu1 %v2111_v43  ;;  %v99_v43 = vld [vmem:[%s2735_s8 + $0x8] sm:$0xff] }
  0x33   :  { %567 = vmatpush.bf16.msrb.mxu0 %v2103_v56 }
  0x34   :  { %106 = vperm.xlu2 %2172, %v99_v43  }
  0x36   :  { %647 = vmatpush.bf16.msrb.mxu1 %v2110_v46 }
  0x37   :  { %568 = vmatpush.bf16.msrb.mxu0 %v2102_v59 }
  0x3a   :  { %648 = vmatpush.bf16.msrb.mxu1 %v2109_v51 }
  0x3b   :  { %569 = vmatpush.bf16.msrb.mxu0 %v2101_v63 }
  0x3e   :  { %649 = vmatpush.bf16.msrb.mxu1 %v2108_v55 }
  0x3f   :  { %570 = vmatpush.bf16.msrb.mxu0 %v2100_v2 }
  0x75   :  { %v39_v16 = vpop.xlane.xlu0 %38 }
  0x76   :  { %v49_v17 = vmul.f32 %v2302_v15, %v39_v16 }
  0x78   :  { %v2305_v18 = vsub.f32 %v36_v0, %v49_v17 }
  0x7a   :  { %v53_v19 = vmul.f32 %v2305_v18, %v2305_v18 }
  0x7c   :  { %55 = vadd.xlane.f32.xlu1 %v53_v19 }
  0x7d   :  { %v41_v20 = vpop.xlane.xlu0 %40 }
  0x7e   :  { %v50_v21 = vmul.f32 %v2302_v15, %v41_v20 }
  0x80   :  { %v2310_v22 = vsub.f32 %v37_v1, %v50_v21 }
  0x82   :  { %v54_v23 = vmul.f32 %v2310_v22, %v2310_v22 }
  0x84   :  { %57 = vadd.xlane.f32.xlu1 %v54_v23  ;;  %v2125_v23 = vld [vmem:[%s2732_s3 + $0xb8] sm:$0xff] }
  0x86   :  { %v2469_v51 = vpop.permute.xlu2 %103 }
  0x8e   :  { %v2477_v56 = vpop.permute.xlu2 %106 }
  0xef   :  { %v56_v49 = vpop.xlane.xlu1 %55 }
  0xf0   :  { %v59_v50 = vmul.f32 %v56_v49, %v2302_v15 }
  0xf2   :  { %v61_v54 = vadd.f32 1e-05, %v59_v50  ;;  %v2467_v50 = vld [vmem:[%s2734_s9] ss:$0 sm:$0xff] }
  0xf3   :  { %vm109_vm8 = vcmp.eq.s32.totalorder %v2469_v51, %v2467_v50  ;;  %vm110_vm10 = vcmp.eq.s32.totalorder %v2477_v56, %v2467_v50 }
  0xf4   :  { %2180 = vrsqrt.f32 %v61_v54  ;;  %vm69_vm2 = vweird.f32 %v61_v54 }
  0xf7   :  { %v58_v57 = vpop.xlane.xlu1 %57 }
  0xf8   :  { %v60_v58 = vmul.f32 %v58_v57, %v2302_v15  ;;  %v2175_v15 = vld [vmem:[%s2730_s2] ss:$0 sm:$0xff] }
  0xfa   :  { %v2181_v60 = vpop.eup %2180  ;;  %v62_v61 = vadd.f32 1e-05, %v60_v58 }
  0xfb   :  { %v64_v62 = vmul.f32 %v2181_v60, %v61_v54  ;;  %vm70_vm1 = vweird.f32 %v2181_v60 }
  0xfc   :  { %2182 = vrsqrt.f32 %v62_v61  ;;  %vm71_vm3 = vmor %vm69_vm2, %vm70_vm1  ;;  %vm79_vm5 = vweird.f32 %v62_v61 }
  0xfd   :  { %v65_v0 = vmul.f32 %v2181_v60, %v64_v62 }
  0xff   :  { %v66_v1 = vmul.f32 0.5, %v65_v0 }
 0x101   :  { %v67_v3 = vsub.f32 1.5, %v66_v1 }
 0x102   :  { %v2183_v4 = vpop.eup %2182 }
 0x103   :  { %v68_v5 = vmul.f32 %v2181_v60, %v67_v3  ;;  %v74_v6 = vmul.f32 %v2183_v4, %v62_v61  ;;  %vm80_vm4 = vweird.f32 %v2183_v4 }
 0x104   :  { %vm81_vm6 = vmor %vm79_vm5, %vm80_vm4 }
 0x105   :  { %v75_v7 = vmul.f32 %v2183_v4, %v74_v6  ;;  %v72_v8 = vsel %vm71_vm3, %v2181_v60, %v68_v5 }
 0x106   :  { %v83_v12 = vmul.f32 %v72_v8, %v2305_v18  ;;  %v2124_v18 = vld [vmem:[%s2732_s3 + $0xb0] sm:$0xff] }
 0x107   :  { %v76_v9 = vmul.f32 0.5, %v75_v7  ;;  %v2099_v7 = vld [vmem:[%s2732_s3 + $0x78] sm:$0xff]  ;;  %v2098_v8 = vld [vmem:[%s2732_s3 + $0x70] sm:$0xff] }
 0x108   :  { %v89_v16 = vmul.f32 %v2174_v11, %v83_v12  ;;  %v2094_v12 = vld [vmem:[%s2732_s3 + $0x50] sm:$0xff] }
 0x109   :  { %v77_v10 = vsub.f32 1.5, %v76_v9  ;;  %v2097_v9 = vld [vmem:[%s2732_s3 + $0x68] sm:$0xff] }
 0x10a   :  { %v95_v20 = vadd.f32 %v2175_v15, %v89_v16 }
 0x10b   :  { %v78_v13 = vmul.f32 %v2183_v4, %v77_v10  ;;  %v2096_v10 = vld [vmem:[%s2732_s3 + $0x60] sm:$0xff] }
 0x10d   :  { %v82_v14 = vsel %vm81_vm6, %v2183_v4, %v78_v13  ;;  %v2093_v13 = vld [vmem:[%s2732_s3 + $0x48] sm:$0xff] }
 0x10e   :  { %v84_v17 = vmul.f32 %v82_v14, %v2310_v22  ;;  %v2123_v22 = vld [vmem:[%s2732_s3 + $0xa8] sm:$0xff]  ;;  %v2092_v14 = vld [vmem:[%s2732_s3 + $0x40] sm:$0xff] }
 0x110   :  { %v90_v19 = vmul.f32 %v2174_v11, %v84_v17  ;;  %v2095_v11 = vld [vmem:[%s2732_s3 + $0x58] sm:$0xff] }
 0x112   :  { %v96_v21 = vadd.f32 %v2175_v15, %v90_v19 }
 0x114   :  { %v2426_v24 = vpack.c.bf16 %v96_v21, %v95_v20 }
 0x116   :  { %183 = vmatmul.bf16.vlgmr.msra.gmra.mxu0 %v2426_v24  ;;  %261 = vmatmul.bf16.vlgmr.msra.gmra.mxu1 %v2426_v24 }
 0x117   :  { %339 = vmatmul.bf16.vlgmr.msra.gmra.mxu2 %v2426_v24  ;;  %852 = vmatpush.bf16.msra.mxu1 %v2125_v23 }
 0x11b   :  { %853 = vmatpush.bf16.msra.mxu1 %v2124_v18  ;;  %v2091_v18 = vld [vmem:[%s2736_s6 + $0x8] sm:$0xff] }
 0x11c   :  { %779 = vmatpush.bf16.msra.mxu0 %v2091_v18 }
 0x11f   :  { %854 = vmatpush.bf16.msra.mxu1 %v2123_v22  ;;  %v2090_v22 = vld [vmem:[%s2736_s6] sm:$0xff] }
 0x120   :  { %780 = vmatpush.bf16.msra.mxu0 %v2090_v22  ;;  %v2159_v22 = vld [vmem:[%s2731_s4 + $0xf8] sm:$0xff] }
 0x123   :  { %855 = vmatpush.bf16.msra.mxu1 %v2122_v25 }
 0x126   :  { %571 = vmatmul.bf16.vlgmr.msrb.gmra.mxu0 %v2426_v24  ;;  %650 = vmatmul.bf16.vlgmr.msrb.gmra.mxu1 %v2426_v24 }
 0x127   :  { %856 = vmatpush.bf16.msra.mxu1 %v2121_v26 }
 0x12b   :  { %857 = vmatpush.bf16.msra.mxu1 %v2120_v27 }
 0x12f   :  { %858 = vmatpush.bf16.msra.mxu1 %v2119_v28 }
 0x133   :  { %859 = vmatpush.bf16.msra.mxu1 %v2118_v29 }
 0x136   :  { %860 = vmatmul.bf16.vlgmr.msra.gmra.mxu1 %v2426_v24 }
 0x193   :  { %v184_v30 = vpop.f32.mrf.mxu0  ;;  %v262_v31 = vpop.f32.mrf.mxu1 }
 0x19a   :  { %v340_v32 = vpop.f32.mrf.mxu2 }
 0x19b   :  { %v186_v33 = vpop.f32.mrf.mxu0  ;;  %v264_v34 = vpop.f32.mrf.mxu1 }
 0x19c   :  { %v346_v35 = vpack.c.bf16 %v264_v34, %v262_v31  ;;  %v345_v44 = vpack.c.bf16 %v186_v33, %v184_v30 }
 0x19e   :  { %v352_v38 = vsel %vm347_vm7, %v346_v35, 0 }
 0x19f   :  { %361 = vmatpush.bf16.xpose.msra.mxu3 %v352_v38 }
 0x1a2   :  { %v342_v39 = vpop.f32.mrf.mxu2 }
 0x1a3   :  { %v396_v40 = vpack.c.bf16 %v342_v39, %v340_v32  ;;  %v572_v41 = vpop.f32.mrf.mxu0  ;;  %v651_v42 = vpop.f32.mrf.mxu1  ;;  %v2133_v39 = vld [vmem:[%s2731_s4 + $0xb8] sm:$0xff] }
 0x1a6   :  { %1578 = vmatmul.msk.bf16.vlgmr.msra.gmra.mxu3 %vm347_vm7, %v345_v44 }
 0x1a7   :  { %407 = vmatpush.bf16.msrb.mxu3 %v396_v40  ;;  %v2132_v40 = vld [vmem:[%s2731_s4 + $0xb0] sm:$0xff] }
 0x1ab   :  { %v574_v45 = vpop.f32.mrf.mxu0  ;;  %v653_v46 = vpop.f32.mrf.mxu1  ;;  %484 = vmatpush.bf16.msra.mxu3 %v2099_v7  ;;  %v2141_v7 = vld [vmem:[%s2733_s5 + $0xb8] sm:$0xff] }
 0x1ac   :  { %v657_v47 = vpack.c.bf16 %v574_v45, %v572_v41  ;;  %v705_v48 = vpack.c.bf16 %v653_v46, %v651_v42  ;;  %v2131_v41 = vld [vmem:[%s2731_s4 + $0xa8] sm:$0xff] }
 0x1ae   :  { %v662_v49 = vsel %vm347_vm7, %v657_v47, 0 }
 0x1af   :  { %671 = vmatpush.bf16.xpose.msrb.mxu2 %v662_v49  ;;  %485 = vmatpush.bf16.msra.mxu3 %v2098_v8  ;;  %v2149_v8 = vld [vmem:[%s2732_s3 + $0xe8] sm:$0xff] }
 0x1b3   :  { %486 = vmatpush.bf16.msra.mxu3 %v2097_v9  ;;  %v2140_v9 = vld [vmem:[%s2733_s5 + $0xb0] sm:$0xff] }
 0x1b7   :  { %716 = vmatpush.bf16.msra.mxu2 %v705_v48  ;;  %487 = vmatpush.bf16.msra.mxu3 %v2096_v10  ;;  %v2148_v10 = vld [vmem:[%s2732_s3 + $0xe0] sm:$0xff] }
 0x1bb   :  { %488 = vmatpush.bf16.msra.mxu3 %v2095_v11  ;;  %v2139_v11 = vld [vmem:[%s2733_s5 + $0xa8] sm:$0xff] }
 0x1bf   :  { %489 = vmatpush.bf16.msra.mxu3 %v2094_v12  ;;  %v2147_v12 = vld [vmem:[%s2732_s3 + $0xd8] sm:$0xff] }
 0x1c3   :  { %490 = vmatpush.bf16.msra.mxu3 %v2093_v13  ;;  %v2138_v13 = vld [vmem:[%s2733_s5 + $0xa0] sm:$0xff] }
 0x1c7   :  { %491 = vmatpush.bf16.msra.mxu3 %v2092_v14  ;;  %v2146_v14 = vld [vmem:[%s2732_s3 + $0xd0] sm:$0xff] }
 0x229   :  { %v363_v52 = vpop.f32.mrf.mxu3 }
 0x22a   :  { %v368_v53 = vmul.f32 0.17677669, %v363_v52 }
 0x22c   :  { %v370_v54 = vsel %vm109_vm8, %v368_v53, -1e+09 }
 0x22d   :  { %v373_v55 = vsel %vm372_vm9, %v370_v54, -inf }
 0x22e   :  { %374 = vmax.xlane.f32.xlu0 %v373_v55  ;;  %v2129_v55 = vld [vmem:[%s2731_s4 + $0x98] sm:$0xff] }
 0x231   :  { %v365_v57 = vpop.f32.mrf.mxu3 }
 0x232   :  { %v369_v58 = vmul.f32 0.17677669, %v365_v57  ;;  %v2128_v57 = vld [vmem:[%s2731_s4 + $0x90] sm:$0xff] }
 0x234   :  { %v371_v59 = vsel %vm110_vm10, %v369_v58, -1e+09  ;;  %v2127_v58 = vld [vmem:[%s2731_s4 + $0x88] sm:$0xff] }
 0x235   :  { %v376_v60 = vsel %vm372_vm9, %v371_v59, -inf }
 0x236   :  { %377 = vmax.xlane.f32.xlu1 %v376_v60 }
 0x2a1   :  { %v375_v61 = vpop.xlane.xlu0 %374 }
 0x2a2   :  { %v379_v62 = vsub.f32 %v370_v54, %v375_v61  ;;  %v2130_v54 = vld [vmem:[%s2731_s4 + $0xa0] sm:$0xff] }
 0x2a4   :  { %v381_v63 = vmul.f32 1.442695, %v379_v62 }
 0x2a6   :  { %2184 = vpow2.f32 %v381_v63 }
 0x2a9   :  { %v378_v0 = vpop.xlane.xlu1 %377 }
 0x2aa   :  { %v380_v1 = vsub.f32 %v371_v59, %v378_v0  ;;  %v2126_v59 = vld [vmem:[%s2731_s4 + $0x80] sm:$0xff] }
 0x2ac   :  { %v2185_v2 = vpop.eup %2184  ;;  %v383_v3 = vmul.f32 1.442695, %v380_v1 }
 0x2ad   :  { %v385_v4 = vsel %vm372_vm9, %v2185_v2, 0.0 }
 0x2ae   :  { %2186 = vpow2.f32 %v383_v3  ;;  %386 = vadd.xlane.f32.xlu2 %v385_v4  ;;  %v2117_v4 = vld [vmem:[%s2736_s6 + $0x18] sm:$0xff] }
 0x2b4   :  { %v2187_v5 = vpop.eup %2186 }
 0x2b5   :  { %v388_v6 = vsel %vm372_vm9, %v2187_v5, 0.0 }
 0x2b6   :  { %389 = vadd.xlane.f32.xlu0 %v388_v6  ;;  %v2116_v6 = vld [vmem:[%s2736_s6 + $0x10] sm:$0xff] }
 0x321   :  { %v387_v15 = vpop.xlane.xlu2 %386 }
 0x322   :  { %2188 = vrcp.f32 %v387_v15  ;;  %v2137_v15 = vld [vmem:[%s2733_s5 + $0x98] sm:$0xff] }
 0x328   :  { %v2189_v17 = vpop.eup %2188 }
 0x329   :  { %v390_v16 = vpop.xlane.xlu0 %389  ;;  %v393_v20 = vmul.f32 %v2189_v17, %v2185_v2  ;;  %v2151_v2 = vld [vmem:[%s2732_s3 + $0xf8] sm:$0xff]  ;;  %v2144_v17 = vld [vmem:[%s2732_s3 + $0xc0] sm:$0xff] }
 0x32a   :  { %2190 = vrcp.f32 %v390_v16  ;;  %v2145_v16 = vld [vmem:[%s2732_s3 + $0xc8] sm:$0xff] }
 0x330   :  { %v2191_v19 = vpop.eup %2190 }
 0x331   :  { %v394_v21 = vmul.f32 %v2191_v19, %v2187_v5  ;;  %v2150_v5 = vld [vmem:[%s2732_s3 + $0xf0] sm:$0xff] }
 0x332   :  { %v2136_v19 = vld [vmem:[%s2733_s5 + $0x90] sm:$0xff] }
 0x333   :  { %v395_v23 = vpack.c.bf16 %v394_v21, %v393_v20  ;;  %v2135_v20 = vld [vmem:[%s2733_s5 + $0x88] sm:$0xff]  ;;  %v2134_v21 = vld [vmem:[%s2733_s5 + $0x80] sm:$0xff] }
 0x335   :  { %1579 = vmatmul.msk.bf16.vlgmr.msrb.gmra.mxu3 %vm372_vm9, %v395_v23 }
 0x336   :  { %750 = vmatpush.bf16.msrb.mxu3 %v2117_v4 }
 0x33a   :  { %751 = vmatpush.bf16.msrb.mxu3 %v2116_v6 }
 0x345   :  { %492 = vmatmul.bf16.vlgmr.msra.gmra.mxu3 %v2426_v24 }
 0x346   :  { %1010 = vmatpush.bf16.msra.mxu3 %v2141_v7 }
 0x34a   :  { %1011 = vmatpush.bf16.msra.mxu3 %v2140_v9 }
 0x34e   :  { %1012 = vmatpush.bf16.msra.mxu3 %v2139_v11  ;;  %v2167_v11 = vld [vmem:[%s2733_s5 + $0xf8] sm:$0xff] }
 0x352   :  { %1013 = vmatpush.bf16.msra.mxu3 %v2138_v13  ;;  %v2165_v13 = vld [vmem:[%s2733_s5 + $0xe8] sm:$0xff] }
 0x356   :  { %1014 = vmatpush.bf16.msra.mxu3 %v2137_v15  ;;  %v2163_v15 = vld [vmem:[%s2733_s5 + $0xd8] sm:$0xff] }
 0x35a   :  { %1015 = vmatpush.bf16.msra.mxu3 %v2136_v19  ;;  %v2160_v19 = vld [vmem:[%s2733_s5 + $0xc0] sm:$0xff] }
 0x35e   :  { %1016 = vmatpush.bf16.msra.mxu3 %v2135_v20 }
 0x362   :  { %1017 = vmatpush.bf16.msra.mxu3 %v2134_v21 }
 0x3b8   :  { %v409_v25 = vpop.f32.mrf.mxu3 }
 0x3c0   :  { %v411_v26 = vpop.f32.mrf.mxu3 }
 0x3c1   :  { %v414_v27 = vpack.c.bf16 %v411_v26, %v409_v25  ;;  %v2158_v26 = vld [vmem:[%s2731_s4 + $0xf0] sm:$0xff] }
 0x3c3   :  { %1747 = vmatmul.msk.bf16.vlgmr.msra.gmra.mxu0 %vm347_vm7, %v414_v27 }
 0x3c8   :  { %v493_v28 = vpop.f32.mrf.mxu3 }
 0x3d0   :  { %v495_v29 = vpop.f32.mrf.mxu3 }
 0x3d1   :  { %v656_v30 = vpack.c.bf16 %v495_v29, %v493_v28  ;;  %v2157_v28 = vld [vmem:[%s2731_s4 + $0xe8] sm:$0xff]  ;;  %v861_v29 = vpop.f32.mrf.mxu1 }
 0x3d3   :  { %1724 = vmatmul.msk.bf16.vlgmr.msrb.gmra.mxu2 %vm347_vm7, %v656_v30  ;;  %v2156_v30 = vld [vmem:[%s2731_s4 + $0xe0] sm:$0xff] }
 0x3d4   :  { %931 = vmatpush.bf16.msrb.mxu2 %v2133_v39  ;;  %v2152_v39 = vld [vmem:[%s2731_s4 + $0xc0] sm:$0xff] }
 0x3d8   :  { %932 = vmatpush.bf16.msrb.mxu2 %v2132_v40 }
 0x3dc   :  { %933 = vmatpush.bf16.msrb.mxu2 %v2131_v41 }
 0x3e0   :  { %934 = vmatpush.bf16.msrb.mxu2 %v2130_v54 }
 0x3e4   :  { %935 = vmatpush.bf16.msrb.mxu2 %v2129_v55 }
 0x3e8   :  { %936 = vmatpush.bf16.msrb.mxu2 %v2128_v57 }
 0x3ec   :  { %937 = vmatpush.bf16.msrb.mxu2 %v2127_v58 }
 0x3f0   :  { %938 = vmatpush.bf16.msrb.mxu2 %v2126_v59 }
 0x440   :  { %v2641_v40 = vpop.f32.mrf.mxu0 }
 0x456   :  { %v673_v31 = vpop.f32.mrf.mxu2 }
 0x457   :  { %v678_v32 = vmul.f32 0.17677669, %v673_v31 }
 0x459   :  { %v680_v33 = vsel %vm109_vm8, %v678_v32, -1e+09  ;;  %v2155_v32 = vld [vmem:[%s2731_s4 + $0xd8] sm:$0xff] }
 0x45a   :  { %v682_v34 = vsel %vm372_vm9, %v680_v33, -inf }
 0x45b   :  { %683 = vmax.xlane.f32.xlu1 %v682_v34 }
 0x45e   :  { %v675_v35 = vpop.f32.mrf.mxu2 }
 0x45f   :  { %v679_v36 = vmul.f32 0.17677669, %v675_v35  ;;  %v2154_v35 = vld [vmem:[%s2731_s4 + $0xd0] sm:$0xff] }
 0x461   :  { %v681_v37 = vsel %vm110_vm10, %v679_v36, -1e+09  ;;  %v863_v36 = vpop.f32.mrf.mxu1 }
 0x462   :  { %v685_v38 = vsel %vm372_vm9, %v681_v37, -inf }
 0x463   :  { %686 = vmax.xlane.f32.xlu0 %v685_v38  ;;  %v1024_v38 = vpack.c.bf16 %v863_v36, %v861_v29 }
 0x4ce   :  { %v684_v42 = vpop.xlane.xlu1 %683 }
 0x4cf   :  { %v688_v43 = vsub.f32 %v680_v33, %v684_v42  ;;  %v2143_v42 = vld [vmem:[%s2736_s6 + $0x28] sm:$0xff] }
 0x4d0   :  { %1118 = vmatpush.bf16.msrb.mxu1 %v2143_v42 }
 0x4d1   :  { %v690_v44 = vmul.f32 1.442695, %v688_v43  ;;  %v784_v43 = vpop.f32.mrf.mxu0 }
 0x4d3   :  { %2192 = vpow2.f32 %v690_v44 }
 0x4d6   :  { %v687_v45 = vpop.xlane.xlu0 %686 }
 0x4d7   :  { %v689_v46 = vsub.f32 %v681_v37, %v687_v45  ;;  %v2153_v37 = vld [vmem:[%s2731_s4 + $0xc8] sm:$0xff] }
 0x4d9   :  { %v2193_v47 = vpop.eup %2192  ;;  %v692_v48 = vmul.f32 1.442695, %v689_v46  ;;  %v2142_v46 = vld [vmem:[%s2736_s6 + $0x20] sm:$0xff] }
 0x4da   :  { %v694_v49 = vsel %vm372_vm9, %v2193_v47, 0.0  ;;  %1119 = vmatpush.bf16.msrb.mxu1 %v2142_v46 }
 0x4db   :  { %2194 = vpow2.f32 %v692_v48  ;;  %695 = vadd.xlane.f32.xlu1 %v694_v49 }
 0x4e1   :  { %v2195_v52 = vpop.eup %2194 }
 0x4e2   :  { %v697_v53 = vsel %vm372_vm9, %v2195_v52, 0.0 }
 0x4e3   :  { %698 = vadd.xlane.f32.xlu0 %v697_v53 }
 0x54e   :  { %v696_v60 = vpop.xlane.xlu1 %695 }
 0x54f   :  { %2196 = vrcp.f32 %v696_v60 }
 0x555   :  { %v2197_v62 = vpop.eup %2196 }
 0x556   :  { %v699_v61 = vpop.xlane.xlu0 %698  ;;  %v702_v0 = vmul.f32 %v2197_v62, %v2193_v47 }
 0x557   :  { %2198 = vrcp.f32 %v699_v61 }
 0x55d   :  { %v2199_v63 = vpop.eup %2198 }
 0x55e   :  { %v703_v1 = vmul.f32 %v2199_v63, %v2195_v52 }
 0x560   :  { %v704_v3 = vpack.c.bf16 %v703_v1, %v702_v0 }
 0x562   :  { %1725 = vmatmul.msk.bf16.vlgmr.msra.gmra.mxu2 %vm372_vm9, %v704_v3 }
 0x563   :  { %1193 = vmatpush.bf16.msra.mxu2 %v2151_v2 }
 0x567   :  { %1194 = vmatpush.bf16.msra.mxu2 %v2150_v5 }
 0x56b   :  { %1195 = vmatpush.bf16.msra.mxu2 %v2149_v8 }
 0x56f   :  { %1196 = vmatpush.bf16.msra.mxu2 %v2148_v10 }
 0x572   :  { %939 = vmatmul.bf16.vlgmr.msrb.gmra.mxu2 %v2426_v24 }
 0x573   :  { %1197 = vmatpush.bf16.msra.mxu2 %v2147_v12  ;;  %v2166_v12 = vld [vmem:[%s2733_s5 + $0xf0] sm:$0xff] }
 0x577   :  { %1198 = vmatpush.bf16.msra.mxu2 %v2146_v14  ;;  %v2164_v14 = vld [vmem:[%s2733_s5 + $0xe0] sm:$0xff] }
 0x57b   :  { %1199 = vmatpush.bf16.msra.mxu2 %v2145_v16  ;;  %v2162_v16 = vld [vmem:[%s2733_s5 + $0xd0] sm:$0xff] }
 0x57f   :  { %1200 = vmatpush.bf16.msra.mxu2 %v2144_v17  ;;  %v2161_v17 = vld [vmem:[%s2733_s5 + $0xc8] sm:$0xff] }
 0x582   :  { %1201 = vmatmul.bf16.vlgmr.msra.gmra.mxu2 %v2426_v24 }
 0x5e5   :  { %v718_v23 = vpop.f32.mrf.mxu2 }
 0x5ed   :  { %v720_v18 = vpop.f32.mrf.mxu2 }
 0x5ee   :  { %v723_v25 = vpack.c.bf16 %v720_v18, %v718_v23 }
 0x5f0   :  { %1738 = vmatmul.msk.bf16.vlgmr.msrb.gmra.mxu3 %vm347_vm7, %v723_v25 }
 0x5f1   :  { %1272 = vmatpush.bf16.msrb.mxu3 %v2159_v22 }
 0x5f5   :  { %v940_v27 = vpop.f32.mrf.mxu2  ;;  %1273 = vmatpush.bf16.msrb.mxu3 %v2158_v26 }
 0x5f9   :  { %1274 = vmatpush.bf16.msrb.mxu3 %v2157_v28 }
 0x5fd   :  { %v942_v31 = vpop.f32.mrf.mxu2  ;;  %1275 = vmatpush.bf16.msrb.mxu3 %v2156_v30 }
 0x5fe   :  { %v1025_v33 = vpack.c.bf16 %v942_v31, %v940_v27 }
 0x600   :  { %v1030_v34 = vsel %vm347_vm7, %v1025_v33, 0  ;;  %1018 = vmatmul.bf16.vlgmr.msra.gmra.mxu3 %v2426_v24 }
 0x601   :  { %1039 = vmatpush.bf16.xpose.msrb.mxu0 %v1030_v34  ;;  %1276 = vmatpush.bf16.msrb.mxu3 %v2155_v32 }
 0x605   :  { %1277 = vmatpush.bf16.msrb.mxu3 %v2154_v35  ;;  %v1202_v30 = vpop.f32.mrf.mxu2 }
 0x608   :  { %1892 = vmatmul.msk.bf16.vlgmr.msrb.gmra.mxu0 %vm347_vm7, %v1024_v38 }
 0x609   :  { %1278 = vmatpush.bf16.msrb.mxu3 %v2153_v37 }
 0x60d   :  { %1279 = vmatpush.bf16.msrb.mxu3 %v2152_v39  ;;  %v1204_v32 = vpop.f32.mrf.mxu2 }
 0x60e   :  { %v1365_v34 = vpack.c.bf16 %v1204_v32, %v1202_v30 }
 0x610   :  { %1280 = vmatmul.bf16.vlgmr.msrb.gmra.mxu3 %v2426_v24 }
 0x673   :  { %v2643_v41 = vpop.f32.mrf.mxu3 }
 0x674   :  { %v783_v36 = vadd.f32 %v2641_v40, %v2643_v41 }
 0x67b   :  { %v755_v44 = vpop.f32.mrf.mxu3 }
 0x67c   :  { %v2648_v45 = vadd.f32 %v784_v43, %v755_v44 }
 0x683   :  { %v1019_v47 = vpop.f32.mrf.mxu3 }
 0x685   :  { %v1041_v48 = vpop.f32.mrf.mxu0 }
 0x686   :  { %v1046_v49 = vmul.f32 0.17677669, %v1041_v48 }
 0x688   :  { %v1048_v52 = vsel %vm109_vm8, %v1046_v49, -1e+09 }
 0x689   :  { %v1050_v53 = vsel %vm372_vm9, %v1048_v52, -inf }
 0x68a   :  { %1051 = vmax.xlane.f32.xlu1 %v1050_v53 }
 0x68b   :  { %v1021_v54 = vpop.f32.mrf.mxu3 }
 0x68c   :  { %v1073_v55 = vpack.c.bf16 %v1021_v54, %v1019_v47 }
 0x68d   :  { %v1043_v57 = vpop.f32.mrf.mxu0 }
 0x68e   :  { %v1047_v58 = vmul.f32 0.17677669, %v1043_v57  ;;  %1084 = vmatpush.bf16.msra.mxu0 %v1073_v55 }
 0x690   :  { %v1049_v59 = vsel %vm110_vm10, %v1047_v58, -1e+09 }
 0x691   :  { %v1053_v60 = vsel %vm372_vm9, %v1049_v59, -inf }
 0x692   :  { %1054 = vmax.xlane.f32.xlu0 %v1053_v60  ;;  %1351 = vmatpush.bf16.msrb.mxu0 %v2167_v11 }
 0x693   :  { %v1281_v61 = vpop.f32.mrf.mxu3 }
 0x696   :  { %1352 = vmatpush.bf16.msrb.mxu0 %v2166_v12 }
 0x69a   :  { %1353 = vmatpush.bf16.msrb.mxu0 %v2165_v13 }
 0x69b   :  { %v1283_v62 = vpop.f32.mrf.mxu3 }
 0x69c   :  { %v1366_v63 = vpack.c.bf16 %v1283_v62, %v1281_v61 }
 0x69e   :  { %v1371_v0 = vsel %vm347_vm7, %v1366_v63, 0  ;;  %1354 = vmatpush.bf16.msrb.mxu0 %v2164_v14 }
 0x69f   :  { %1380 = vmatpush.bf16.xpose.msra.mxu1 %v1371_v0 }
 0x6a2   :  { %1355 = vmatpush.bf16.msrb.mxu0 %v2163_v15  ;;  %v2217_v15 = vld [vmem:[%s2728_s0 + $0x8] sm:$0xff] }
 0x6a6   :  { %1356 = vmatpush.bf16.msrb.mxu0 %v2162_v16 }
 0x6aa   :  { %1357 = vmatpush.bf16.msrb.mxu0 %v2161_v17 }
 0x6ae   :  { %1358 = vmatpush.bf16.msrb.mxu0 %v2160_v19 }
 0x6fd   :  { %v1052_v1 = vpop.xlane.xlu1 %1051 }
 0x6fe   :  { %v1056_v2 = vsub.f32 %v1048_v52, %v1052_v1  ;;  %v2169_v1 = vld [vmem:[%s2736_s6 + $0x38] sm:$0xff] }
 0x6ff   :  { %1459 = vmatpush.bf16.msrb.mxu2 %v2169_v1 }
 0x700   :  { %v1058_v3 = vmul.f32 1.442695, %v1056_v2  ;;  %v2168_v2 = vld [vmem:[%s2736_s6 + $0x30] sm:$0xff] }
 0x702   :  { %2200 = vpow2.f32 %v1058_v3 }
 0x703   :  { %1460 = vmatpush.bf16.msrb.mxu2 %v2168_v2 }
 0x705   :  { %v1055_v4 = vpop.xlane.xlu0 %1054 }
 0x706   :  { %v1057_v5 = vsub.f32 %v1049_v59, %v1055_v4 }
 0x708   :  { %v2201_v6 = vpop.eup %2200  ;;  %v1060_v7 = vmul.f32 1.442695, %v1057_v5 }
 0x709   :  { %v1062_v8 = vsel %vm372_vm9, %v2201_v6, 0.0 }
 0x70a   :  { %2202 = vpow2.f32 %v1060_v7  ;;  %1063 = vadd.xlane.f32.xlu1 %v1062_v8 }
 0x710   :  { %v2203_v9 = vpop.eup %2202 }
 0x711   :  { %v1065_v10 = vsel %vm372_vm9, %v2203_v9, 0.0 }
 0x712   :  { %1066 = vadd.xlane.f32.xlu0 %v1065_v10  ;;  %v2216_v10 = vld [vmem:[%s2728_s0] sm:$0xff] }
 0x77d   :  { %v1064_v20 = vpop.xlane.xlu1 %1063 }
 0x77e   :  { %2204 = vrcp.f32 %v1064_v20 }
 0x784   :  { %v2205_v23 = vpop.eup %2204 }
 0x785   :  { %v1067_v21 = vpop.xlane.xlu0 %1066  ;;  %v1070_v22 = vmul.f32 %v2205_v23, %v2201_v6  ;;  %v2177_v6 = vld [vmem:[%s2737_s7] ss:$0 sm:$0xff] }
 0x786   :  { %2206 = vrcp.f32 %v1067_v21 }
 0x78c   :  { %v2207_v18 = vpop.eup %2206 }
 0x78d   :  { %v1071_v25 = vmul.f32 %v2207_v18, %v2203_v9 }
 0x78f   :  { %v1072_v26 = vpack.c.bf16 %v1071_v25, %v1070_v22 }
 0x791   :  { %1893 = vmatmul.msk.bf16.vlgmr.msra.gmra.mxu0 %vm372_vm9, %v1072_v26 }
 0x7a1   :  { %1359 = vmatmul.bf16.vlgmr.msrb.gmra.mxu0 %v2426_v24 }
 0x80e   :  { %v1086_v27 = vpop.f32.mrf.mxu0 }
 0x816   :  { %v1088_v28 = vpop.f32.mrf.mxu0 }
 0x817   :  { %v1091_v29 = vpack.c.bf16 %v1088_v28, %v1086_v27 }
 0x819   :  { %1906 = vmatmul.msk.bf16.vlgmr.msrb.gmra.mxu1 %vm347_vm7, %v1091_v29 }
 0x81e   :  { %v1360_v31 = vpop.f32.mrf.mxu0 }
 0x826   :  { %v1362_v33 = vpop.f32.mrf.mxu0 }
 0x827   :  { %v1414_v35 = vpack.c.bf16 %v1362_v33, %v1360_v31 }
 0x829   :  { %2051 = vmatmul.msk.bf16.vlgmr.msra.gmra.mxu1 %vm347_vm7, %v1365_v34 }
 0x82a   :  { %1425 = vmatpush.bf16.msrb.mxu1 %v1414_v35 }
 0x896   :  { %v1121_v37 = vpop.f32.mrf.mxu1 }
 0x897   :  { %v1126_v38 = vadd.f32 %v1121_v37, %v783_v36 }
 0x89e   :  { %v1123_v24 = vpop.f32.mrf.mxu1 }
 0x89f   :  { %v1127_v39 = vadd.f32 %v1123_v24, %v2648_v45 }
 0x8a6   :  { %v1382_v42 = vpop.f32.mrf.mxu1 }
 0x8a7   :  { %v1387_v43 = vmul.f32 0.17677669, %v1382_v42 }
 0x8a9   :  { %v1389_v44 = vsel %vm109_vm8, %v1387_v43, -1e+09 }
 0x8aa   :  { %v1391_v46 = vsel %vm372_vm9, %v1389_v44, -inf }
 0x8ab   :  { %1392 = vmax.xlane.f32.xlu1 %v1391_v46 }
 0x8ae   :  { %v1384_v47 = vpop.f32.mrf.mxu1 }
 0x8af   :  { %v1388_v48 = vmul.f32 0.17677669, %v1384_v47 }
 0x8b1   :  { %v1390_v40 = vsel %vm110_vm10, %v1388_v48, -1e+09 }
 0x8b2   :  { %v1394_v41 = vsel %vm372_vm9, %v1390_v40, -inf }
 0x8b3   :  { %1395 = vmax.xlane.f32.xlu2 %v1394_v41 }
 0x91e   :  { %v1393_v49 = vpop.xlane.xlu1 %1392 }
 0x91f   :  { %v1397_v45 = vsub.f32 %v1389_v44, %v1393_v49 }
 0x921   :  { %v1399_v52 = vmul.f32 1.442695, %v1397_v45 }
 0x923   :  { %2208 = vpow2.f32 %v1399_v52 }
 0x926   :  { %v1396_v53 = vpop.xlane.xlu2 %1395 }
 0x927   :  { %v1398_v54 = vsub.f32 %v1390_v40, %v1396_v53 }
 0x929   :  { %v2209_v51 = vpop.eup %2208  ;;  %v1401_v55 = vmul.f32 1.442695, %v1398_v54 }
 0x92a   :  { %v1403_v57 = vsel %vm372_vm9, %v2209_v51, 0.0 }
 0x92b   :  { %2210 = vpow2.f32 %v1401_v55  ;;  %1404 = vadd.xlane.f32.xlu0 %v1403_v57 }
 0x931   :  { %v2211_v58 = vpop.eup %2210 }
 0x932   :  { %v1406_v59 = vsel %vm372_vm9, %v2211_v58, 0.0 }
 0x933   :  { %1407 = vadd.xlane.f32.xlu1 %v1406_v59 }
 0x99e   :  { %v1405_v50 = vpop.xlane.xlu0 %1404 }
 0x99f   :  { %2212 = vrcp.f32 %v1405_v50 }
 0x9a5   :  { %v2213_v60 = vpop.eup %2212 }
 0x9a6   :  { %v1408_v56 = vpop.xlane.xlu1 %1407  ;;  %v1411_v62 = vmul.f32 %v2213_v60, %v2209_v51 }
 0x9a7   :  { %2214 = vrcp.f32 %v1408_v56 }
 0x9ad   :  { %v2215_v61 = vpop.eup %2214 }
 0x9ae   :  { %v1412_v63 = vmul.f32 %v2215_v61, %v2211_v58 }
 0x9b0   :  { %v1413_v0 = vpack.c.bf16 %v1412_v63, %v1411_v62 }
 0x9b2   :  { %2052 = vmatmul.msk.bf16.vlgmr.msrb.gmra.mxu1 %vm372_vm9, %v1413_v0 }
 0xa2f   :  { %v1427_v3 = vpop.f32.mrf.mxu1 }
 0xa37   :  { %v1429_v4 = vpop.f32.mrf.mxu1 }
 0xa38   :  { %v1432_v5 = vpack.c.bf16 %v1429_v4, %v1427_v3 }
 0xa3a   :  { %2065 = vmatmul.msk.bf16.vlgmr.msrb.gmra.mxu2 %vm347_vm7, %v1432_v5 }
 0xabd   :  { %v1462_v7 = vpop.f32.mrf.mxu2 }
 0xabe   :  { %v1467_v8 = vadd.f32 %v1462_v7, %v1126_v38 }
 0xac0   :  { %v1472_v9 = vadd.f32 %v2177_v6, %v1467_v8 }
 0xac2   :  { %v1474_v11 = vadd.f32 %v2216_v10, %v1472_v9 }
 0xac4   :  { %1476 = vst [vmem:[%s2738_s10] sm:$0xff] %v1474_v11 }
 0xac5   :  { %v1464_v12 = vpop.f32.mrf.mxu2 }
 0xac6   :  { %v1468_v13 = vadd.f32 %v1464_v12, %v1127_v39 }
 0xac8   :  { %v1473_v14 = vadd.f32 %v2177_v6, %v1468_v13 }
 0xaca   :  { %v1475_v16 = vadd.f32 %v2217_v15, %v1473_v14 }
 0xacc   :  { %1477 = vst [vmem:[%s2738_s10 + $0x8] sm:$0xff] %v1475_v16 }

// kernel: denoiser_forward.11
= control target key start
LH: loop header
LB: loop body
LE: loop exit
PB: predicated region body
PF: predicated region fallthrough
CT: control target
= control target key end

     0   :  { %v2559_v34 = vmov 128.0   ;;  %vm243_vm5 = vcmask 1041408   ;;  %vm236_vm6 = vcmask 15360   ;;  %vm597_vm13 = vcmask 261120   ;;  %s3154_s0 = inlined_call_operand.vmem [shape: f32[16,128], index: 0, kind: input, shape index: {}]   ;;  %s3155_s2 = inlined_call_operand.vmem [shape: bf16[128,128], index: 2, kind: input, shape index: {}]   ;;  %s3156_s4 = inlined_call_operand.vmem [shape: bf16[128,128], index: 4, kind: input, shape index: {}]   ;;  %s3157_s1 = inlined_call_operand.vmem [shape: f32[2,128], index: 1, kind: input, shape index: {}]   ;;  %s3158_s3 = inlined_call_operand.vmem [shape: f32[1,128], index: 3, kind: input, shape index: {}]   ;;  %s3159_s5 = inlined_call_operand.vmem [shape: f32[1,128], index: 5, kind: input, shape index: {}]   ;;  %s3160_s6 = inlined_call_operand.vmem [shape: f32[16,2], index: 6, kind: input, shape index: {}]   ;;  %s3161_s8 = inlined_call_operand.vmem [shape: bf16[4,128,32], index: 8, kind: input, shape index: {}]   ;;  %s3162_s7 = inlined_call_operand.vmem [shape: bf16[4,128,32], index: 7, kind: input, shape index: {}]   ;;  %s3163_s9 = inlined_call_operand.vmem [shape: bf16[4,128,32], index: 9, kind: input, shape index: {}]   ;;  %s3164_s13 = inlined_call_operand.vmem [shape: s32[1,16], index: 13, kind: input, shape index: {}]   ;;  %s3165_s12 = inlined_call_operand.vmem [shape: s32[16,1], index: 12, kind: input, shape index: {}]   ;;  %s3166_s10 = inlined_call_operand.vmem [shape: bf16[4,32,128], index: 10, kind: input, shape index: {}]   ;;  %s3167_s11 = inlined_call_operand.vmem [shape: f32[1,128], index: 11, kind: input, shape index: {}]   ;;  %s3168_s14 = inlined_call_operand.vmem [shape: f32[16,128], index: 14, kind: output, shape index: {}]  }
   0x1   :  { %v2639_v0 = vld [vmem:[%s3154_s0] sm:$0xff]  ;;  %v2394_v1 = vld [vmem:[%s3155_s2 + $0x38] sm:$0xff]  ;;  %v2393_v3 = vld [vmem:[%s3155_s2 + $0x30] sm:$0xff]  ;;  %vm622_vm15 = vcmask 130048  }
   0x2   :  { %v2402_v2 = vld [vmem:[%s3156_s4 + $0x38] sm:$0xff]  ;;  %270 = vadd.xlane.f32.xlu0 %v2639_v0  ;;  %140 = vmatpush.bf16.msra.mxu0 %v2394_v1  ;;  %v2401_v4 = vld [vmem:[%s3156_s4 + $0x30] sm:$0xff]  ;;  %v2657_v5 = vld [vmem:[%s3154_s0 + $0x8] sm:$0xff] }
   0x3   :  { %221 = vmatpush.bf16.msra.mxu1 %v2402_v2  ;;  %v2392_v6 = vld [vmem:[%s3155_s2 + $0x28] sm:$0xff]  ;;  %v50_v8 = vld [vmem:[%s3157_s1] sm:$0x3]  ;;  %v2390_v12 = vld [vmem:[%s3155_s2 + $0x18] sm:$0xff] }
   0x4   :  { %v2400_v7 = vld [vmem:[%s3156_s4 + $0x28] sm:$0xff]  ;;  %v1732_v9 = vmul.f32 -1.442695, %v50_v8  ;;  %v2391_v10 = vld [vmem:[%s3155_s2 + $0x20] sm:$0xff]  ;;  %v2398_v13 = vld [vmem:[%s3156_s4 + $0x18] sm:$0xff] }
   0x5   :  { %v2399_v11 = vld [vmem:[%s3156_s4 + $0x20] sm:$0xff]  ;;  %v2389_v16 = vld [vmem:[%s3155_s2 + $0x10] sm:$0xff]  ;;  %v2388_v18 = vld [vmem:[%s3155_s2 + $0x8] sm:$0xff] }
   0x6   :  { %141 = vmatpush.bf16.msra.mxu0 %v2393_v3  ;;  %2515 = vpow2.f32 %v1732_v9  ;;  %v2397_v17 = vld [vmem:[%s3156_s4 + $0x10] sm:$0xff]  ;;  %v2396_v19 = vld [vmem:[%s3156_s4 + $0x8] sm:$0xff]  ;;  %v2387_v22 = vld [vmem:[%s3155_s2] sm:$0xff] }
   0x7   :  { %222 = vmatpush.bf16.msra.mxu1 %v2401_v4  ;;  %v2395_v23 = vld [vmem:[%s3156_s4] sm:$0xff]  ;;  %v235_v58 = vld [vmem:[%s3160_s6 + $0x8] sm:$0xff]  ;;  %v2418_v59 = vld [vmem:[%s3161_s8 + $0x38] sm:$0xff] }
   0x8   :  { %v2511_v49 = vld [vmem:[%s3158_s3] ss:$0 sm:$0xff]  ;;  %v2410_v60 = vld [vmem:[%s3162_s7 + $0x38] sm:$0xff]  ;;  %v2417_v62 = vld [vmem:[%s3161_s8 + $0x30] sm:$0xff] }
   0x9   :  { %v2512_v50 = vld [vmem:[%s3159_s5] ss:$0 sm:$0xff]  ;;  %v2426_v61 = vld [vmem:[%s3163_s9 + $0x38] sm:$0xff]  ;;  %v2409_v63 = vld [vmem:[%s3162_s7 + $0x30] sm:$0xff] }
   0xa   :  { %272 = vadd.xlane.f32.xlu0 %v2657_v5  ;;  %142 = vmatpush.bf16.msra.mxu0 %v2392_v6  ;;  %v234_v55 = vld [vmem:[%s3160_s6] sm:$0xff]  ;;  %v2416_v1 = vld [vmem:[%s3161_s8 + $0x28] sm:$0xff] }
   0xb   :  { %223 = vmatpush.bf16.msra.mxu1 %v2400_v7  ;;  %v2408_v2 = vld [vmem:[%s3162_s7 + $0x28] sm:$0xff]  ;;  %v2415_v4 = vld [vmem:[%s3161_s8 + $0x20] sm:$0xff]  ;;  %v2414_v7 = vld [vmem:[%s3161_s8 + $0x18] sm:$0xff] }
   0xc   :  { %v2516_v14 = vpop.eup %2515  ;;  %v2424_v3 = vld [vmem:[%s3163_s9 + $0x28] sm:$0xff]  ;;  %v2423_v6 = vld [vmem:[%s3163_s9 + $0x20] sm:$0xff] }
   0xd   :  { %v54_v15 = vadd.f32 1.0, %v2516_v14  ;;  %v2412_v9 = vld [vmem:[%s3161_s8 + $0x8] sm:$0xff]  ;;  %v2406_v14 = vld [vmem:[%s3162_s7 + $0x18] sm:$0xff] }
   0xe   :  { %143 = vmatpush.bf16.msra.mxu0 %v2391_v10 }
   0xf   :  { %224 = vmatpush.bf16.msra.mxu1 %v2399_v11  ;;  %2517 = vrcp.f32 %v54_v15  ;;  %v66_v24 = vand.u32 2147483648, %v54_v15  ;;  %vm60_vm0 = vweird.f32 %v54_v15  ;;  %v64_v26 = vand.u32 2147483647, %v54_v15 }
  0x10   :  { %2519 = vrcp.f32 %v2559_v34  ;;  %v2431_v34 = vld [vmem:[%s3162_s7 + $0x50] sm:$0xff] }
  0x11   :  { %v67_v28 = vor.u32 1.1754944e-38, %v66_v24  ;;  %vm65_vm3 = vcmp.eq.f32.partialorder %v64_v26, 8.507059e+37  ;;  %v2420_v24 = vld [vmem:[%s3163_s9 + $0x8] sm:$0xff]  ;;  %v2403_v26 = vld [vmem:[%s3162_s7] sm:$0xff] }
  0x12   :  { %144 = vmatpush.bf16.msra.mxu0 %v2390_v12 }
  0x13   :  { %225 = vmatpush.bf16.msra.mxu1 %v2398_v13  ;;  %v2411_v13 = vld [vmem:[%s3161_s8] sm:$0xff] }
  0x15   :  { %v2518_v20 = vpop.eup %2517 }
  0x16   :  { %145 = vmatpush.bf16.msra.mxu0 %v2389_v16  ;;  %v56_v21 = vmul.f32 %v2518_v20, %v54_v15  ;;  %vm61_vm1 = vweird.f32 %v2518_v20  ;;  %v2520_v35 = vpop.eup %2519  ;;  %v2422_v15 = vld [vmem:[%s3163_s9 + $0x18] sm:$0xff] }
  0x17   :  { %226 = vmatpush.bf16.msra.mxu1 %v2397_v17  ;;  %vm62_vm2 = vmor %vm60_vm0, %vm61_vm1  ;;  %v275_v36 = vmul.f32 128.0, %v2520_v35  ;;  %vm279_vm4 = vweird.f32 %v2520_v35  ;;  %v2436_v16 = vld [vmem:[%s3162_s7 + $0x78] sm:$0xff] }
  0x18   :  { %v57_v25 = vsub.f32 1.0, %v56_v21  ;;  %v2435_v21 = vld [vmem:[%s3162_s7 + $0x70] sm:$0xff] }
  0x19   :  { %v276_v37 = vsub.f32 1.0, %v275_v36 }
  0x1a   :  { %146 = vmatpush.bf16.msra.mxu0 %v2388_v18  ;;  %v58_v27 = vmul.f32 %v2518_v20, %v57_v25  ;;  %v2434_v25 = vld [vmem:[%s3162_s7 + $0x68] sm:$0xff] }
  0x1b   :  { %227 = vmatpush.bf16.msra.mxu1 %v2396_v19  ;;  %v277_v38 = vmul.f32 %v2520_v35, %v276_v37  ;;  %v2405_v19 = vld [vmem:[%s3162_s7 + $0x10] sm:$0xff]  ;;  %v2430_v37 = vld [vmem:[%s3162_s7 + $0x48] sm:$0xff] }
  0x1c   :  { %v59_v29 = vadd.f32 %v2518_v20, %v58_v27  ;;  %v2419_v27 = vld [vmem:[%s3163_s9] sm:$0xff] }
  0x1d   :  { %v278_v39 = vadd.f32 %v2520_v35, %v277_v38 }
  0x1e   :  { %147 = vmatpush.bf16.msra.mxu0 %v2387_v22  ;;  %v63_v30 = vsel %vm62_vm2, %v2518_v20, %v59_v29  ;;  %v2421_v20 = vld [vmem:[%s3163_s9 + $0x10] sm:$0xff] }
  0x1f   :  { %228 = vmatpush.bf16.msra.mxu1 %v2395_v23  ;;  %v68_v31 = vsel %vm65_vm3, %v67_v28, %v63_v30  ;;  %v2699_v40 = vsel %vm279_vm4, %v2520_v35, %v278_v39  ;;  %v2404_v23 = vld [vmem:[%s3162_s7 + $0x8] sm:$0xff]  ;;  %v2433_v28 = vld [vmem:[%s3162_s7 + $0x60] sm:$0xff] }
  0x20   :  { %v70_v32 = vmul.f32 %v68_v31, %v50_v8  ;;  %v2413_v8 = vld [vmem:[%s3161_s8 + $0x10] sm:$0xff] }
  0x22   :  { %v71_v33 = vpack.c.bf16 %v70_v32, %v70_v32  ;;  %581 = vmatpush.bf16.msrb.mxu0 %v2426_v61  ;;  %v2432_v32 = vld [vmem:[%s3162_s7 + $0x58] sm:$0xff] }
  0x24   :  { %148 = vmatmul.bf16.vlgmr.msra.gmra.mxu0 %v71_v33  ;;  %229 = vmatmul.bf16.vlgmr.msra.gmra.mxu1 %v71_v33 }
  0x75   :  { %v271_v41 = vpop.xlane.xlu0 %270 }
  0x76   :  { %v281_v42 = vmul.f32 %v2699_v40, %v271_v41 }
  0x78   :  { %v2703_v43 = vsub.f32 %v2639_v0, %v281_v42  ;;  %v2425_v0 = vld [vmem:[%s3163_s9 + $0x30] sm:$0xff] }
  0x79   :  { %582 = vmatpush.bf16.msrb.mxu0 %v2425_v0 }
  0x7a   :  { %v285_v44 = vmul.f32 %v2703_v43, %v2703_v43 }
  0x7c   :  { %287 = vadd.xlane.f32.xlu1 %v285_v44 }
  0x7d   :  { %v273_v45 = vpop.xlane.xlu0 %272  ;;  %583 = vmatpush.bf16.msrb.mxu0 %v2424_v3  ;;  %v2444_v3 = vld [vmem:[%s3161_s8 + $0x78] sm:$0xff] }
  0x7e   :  { %v282_v46 = vmul.f32 %v2699_v40, %v273_v45 }
  0x80   :  { %v2709_v47 = vsub.f32 %v2657_v5, %v282_v46  ;;  %v2407_v5 = vld [vmem:[%s3162_s7 + $0x20] sm:$0xff] }
  0x81   :  { %584 = vmatpush.bf16.msrb.mxu0 %v2423_v6  ;;  %v2443_v6 = vld [vmem:[%s3161_s8 + $0x70] sm:$0xff] }
  0x82   :  { %v286_v48 = vmul.f32 %v2709_v47, %v2709_v47 }
  0x84   :  { %289 = vadd.xlane.f32.xlu1 %v286_v48 }
  0x85   :  { %585 = vmatpush.bf16.msrb.mxu0 %v2422_v15  ;;  %v2438_v15 = vld [vmem:[%s3161_s8 + $0x48] sm:$0xff] }
  0x89   :  { %586 = vmatpush.bf16.msrb.mxu0 %v2421_v20 }
  0x8d   :  { %587 = vmatpush.bf16.msrb.mxu0 %v2420_v24 }
  0x91   :  { %588 = vmatpush.bf16.msrb.mxu0 %v2419_v27 }
  0xa1   :  { %v149_v51 = vpop.f32.mrf.mxu0  ;;  %v230_v52 = vpop.f32.mrf.mxu1 }
  0xa2   :  { %v150_v53 = vadd.f32 %v2511_v49, %v149_v51  ;;  %v231_v54 = vadd.f32 %v2512_v50, %v230_v52 }
  0xa4   :  { %1800 = vmatpush.msk.msra.mxu3 %vm243_vm5, %v150_v53  ;;  %1797 = vmatpush.msk.msra.mxu2 %vm243_vm5, %v231_v54 }
  0xa5   :  { %1801 = vmatmul.msk.f32.vlgmr.msra.gmra.mxu3 %vm236_vm6, %v234_v55  ;;  %1798 = vmatmul.msk.f32.vlgmr.msra.gmra.mxu2 %vm236_vm6, %v234_v55 }
  0xa6   :  { %503 = vmatpush.bf16.msrb.mxu3 %v2418_v59  ;;  %425 = vmatpush.bf16.msrb.mxu2 %v2410_v60 }
  0xa9   :  { %v151_v56 = vpop.f32.mrf.mxu0  ;;  %v232_v57 = vpop.f32.mrf.mxu1 }
  0xaa   :  { %504 = vmatpush.bf16.msrb.mxu3 %v2417_v62  ;;  %426 = vmatpush.bf16.msrb.mxu2 %v2409_v63 }
  0xad   :  { %1802 = vmatmul.msk.f32.gmra.mxu3 %vm236_vm6, %v235_v58  ;;  %1799 = vmatmul.msk.f32.gmra.mxu2 %vm236_vm6, %v235_v58 }
  0xae   :  { %505 = vmatpush.bf16.msrb.mxu3 %v2416_v1  ;;  %427 = vmatpush.bf16.msrb.mxu2 %v2408_v2 }
  0xb2   :  { %506 = vmatpush.bf16.msrb.mxu3 %v2415_v4  ;;  %428 = vmatpush.bf16.msrb.mxu2 %v2407_v5  ;;  %v348_v5 = vld [vmem:[%s3165_s12] sm:$0xff] }
  0xb6   :  { %507 = vmatpush.bf16.msrb.mxu3 %v2414_v7  ;;  %429 = vmatpush.bf16.msrb.mxu2 %v2406_v14  ;;  %v2560_v7 = vmov 0   ;;  %v2439_v14 = vld [vmem:[%s3161_s8 + $0x50] sm:$0xff] }
  0xb7   :  { %2509 = vset.pattern.permute.xlu2 %v2560_v7  ;;  %2510 = vset.pattern.permute.xlu0 %v2560_v7  ;;  %v2460_v7 = vld [vmem:[%s3162_s7 + $0xa8] sm:$0xff] }
  0xb8   :  { %353 = vperm.xlu2 %2509, %v348_v5  }
  0xba   :  { %508 = vmatpush.bf16.msrb.mxu3 %v2413_v8  ;;  %430 = vmatpush.bf16.msrb.mxu2 %v2405_v19 }
  0xbe   :  { %509 = vmatpush.bf16.msrb.mxu3 %v2412_v9  ;;  %431 = vmatpush.bf16.msrb.mxu2 %v2404_v23 }
  0xc2   :  { %510 = vmatpush.bf16.msrb.mxu3 %v2411_v13  ;;  %432 = vmatpush.bf16.msrb.mxu2 %v2403_v26  ;;  %v2440_v13 = vld [vmem:[%s3161_s8 + $0x58] sm:$0xff] }
  0xc6   :  { %734 = vmatpush.bf16.msra.mxu3 %v2436_v16  ;;  %v2437_v16 = vld [vmem:[%s3161_s8 + $0x40] sm:$0xff] }
  0xca   :  { %735 = vmatpush.bf16.msra.mxu3 %v2435_v21 }
  0xce   :  { %736 = vmatpush.bf16.msra.mxu3 %v2434_v25 }
  0xd2   :  { %737 = vmatpush.bf16.msra.mxu3 %v2433_v28 }
  0xd6   :  { %738 = vmatpush.bf16.msra.mxu3 %v2432_v32 }
  0xda   :  { %739 = vmatpush.bf16.msra.mxu3 %v2431_v34 }
  0xde   :  { %740 = vmatpush.bf16.msra.mxu3 %v2430_v37 }
  0xef   :  { %v288_v10 = vpop.xlane.xlu1 %287 }
  0xf0   :  { %v291_v12 = vmul.f32 %v288_v10, %v2699_v40  ;;  %v2442_v10 = vld [vmem:[%s3161_s8 + $0x68] sm:$0xff] }
  0xf2   :  { %v293_v18 = vadd.f32 1e-05, %v291_v12  ;;  %v2441_v12 = vld [vmem:[%s3161_s8 + $0x60] sm:$0xff] }
  0xf4   :  { %2521 = vrsqrt.f32 %v293_v18  ;;  %vm301_vm7 = vweird.f32 %v293_v18 }
  0xf7   :  { %v290_v11 = vpop.xlane.xlu1 %289 }
  0xf8   :  { %v292_v17 = vmul.f32 %v290_v11, %v2699_v40  ;;  %v2429_v40 = vld [vmem:[%s3162_s7 + $0x40] sm:$0xff]  ;;  %v349_v11 = vld [vmem:[%s3165_s12 + $0x8] sm:$0xff] }
  0xf9   :  { %741 = vmatpush.bf16.msra.mxu3 %v2429_v40  ;;  %356 = vperm.xlu2 %2509, %v349_v11  }
  0xfa   :  { %v294_v22 = vadd.f32 1e-05, %v292_v17  ;;  %v2522_v29 = vpop.eup %2521  ;;  %v2867_v17 = vld [vmem:[%s3164_s13] ss:$0 sm:$0xff] }
  0xfb   :  { %v296_v31 = vmul.f32 %v2522_v29, %v293_v18  ;;  %vm302_vm8 = vweird.f32 %v2522_v29 }
  0xfc   :  { %2523 = vrsqrt.f32 %v294_v22  ;;  %vm311_vm9 = vweird.f32 %v294_v22  ;;  %vm303_vm11 = vmor %vm301_vm7, %vm302_vm8 }
  0xfd   :  { %v297_v35 = vmul.f32 %v2522_v29, %v296_v31 }
  0xff   :  { %v298_v38 = vmul.f32 0.5, %v297_v35 }
 0x101   :  { %v299_v41 = vsub.f32 1.5, %v298_v38 }
 0x102   :  { %v2524_v30 = vpop.eup %2523 }
 0x103   :  { %v306_v33 = vmul.f32 %v2524_v30, %v294_v22  ;;  %vm312_vm10 = vweird.f32 %v2524_v30  ;;  %v300_v46 = vmul.f32 %v2522_v29, %v299_v41 }
 0x104   :  { %vm313_vm12 = vmor %vm311_vm9, %vm312_vm10 }
 0x105   :  { %v307_v36 = vmul.f32 %v2524_v30, %v306_v33  ;;  %v304_v49 = vsel %vm303_vm11, %v2522_v29, %v300_v46  ;;  %v2452_v46 = vld [vmem:[%s3163_s9 + $0x78] sm:$0xff] }
 0x106   :  { %v315_v52 = vmul.f32 %v304_v49, %v2703_v43  ;;  %v2450_v49 = vld [vmem:[%s3163_s9 + $0x68] sm:$0xff] }
 0x107   :  { %v308_v39 = vmul.f32 0.5, %v307_v36 }
 0x109   :  { %v309_v42 = vsub.f32 1.5, %v308_v39 }
 0x10b   :  { %v310_v48 = vmul.f32 %v2524_v30, %v309_v42 }
 0x10d   :  { %v314_v51 = vsel %vm313_vm12, %v2524_v30, %v310_v48  ;;  %v2451_v48 = vld [vmem:[%s3163_s9 + $0x70] sm:$0xff] }
 0x10e   :  { %v316_v56 = vmul.f32 %v314_v51, %v2709_v47 }
 0x112   :  { %v2869_v18 = vpop.permute.xlu2 %353 }
 0x113   :  { %vm359_vm14 = vcmp.eq.s32.totalorder %v2869_v18, %v2867_v17 }
 0x128   :  { %v337_v44 = vpop.f32.mrf.mxu3  ;;  %v264_v45 = vpop.f32.mrf.mxu2 }
 0x129   :  { %v338_v50 = vadd.f32 1.0, %v337_v44 }
 0x12b   :  { %v343_v54 = vmul.f32 %v338_v50, %v315_v52 }
 0x12d   :  { %v345_v59 = vadd.f32 %v343_v54, %v264_v45 }
 0x130   :  { %v340_v53 = vpop.f32.mrf.mxu3  ;;  %v267_v57 = vpop.f32.mrf.mxu2 }
 0x131   :  { %v341_v55 = vadd.f32 1.0, %v340_v53 }
 0x133   :  { %v344_v58 = vmul.f32 %v341_v55, %v316_v56 }
 0x135   :  { %v346_v60 = vadd.f32 %v344_v58, %v267_v57  ;;  %v2449_v58 = vld [vmem:[%s3163_s9 + $0x60] sm:$0xff] }
 0x137   :  { %v2825_v61 = vpack.c.bf16 %v346_v60, %v345_v59  ;;  %v2448_v59 = vld [vmem:[%s3163_s9 + $0x58] sm:$0xff]  ;;  %v2447_v60 = vld [vmem:[%s3163_s9 + $0x50] sm:$0xff] }
 0x139   :  { %433 = vmatmul.bf16.vlgmr.msrb.gmra.mxu2 %v2825_v61  ;;  %511 = vmatmul.bf16.vlgmr.msrb.gmra.mxu3 %v2825_v61 }
 0x13a   :  { %589 = vmatmul.bf16.vlgmr.msrb.gmra.mxu0 %v2825_v61 }
 0x149   :  { %742 = vmatmul.bf16.vlgmr.msra.gmra.mxu3 %v2825_v61 }
 0x153   :  { %v2877_v23 = vpop.permute.xlu2 %356 }
 0x154   :  { %vm360_vm0 = vcmp.eq.s32.totalorder %v2877_v23, %v2867_v17 }
 0x1b7   :  { %v590_v43 = vpop.f32.mrf.mxu0 }
 0x1bc   :  { %v512_v62 = vpop.f32.mrf.mxu3  ;;  %v434_v0 = vpop.f32.mrf.mxu2 }
 0x1bf   :  { %v592_v63 = vpop.f32.mrf.mxu0 }
 0x1c0   :  { %v646_v1 = vpack.c.bf16 %v592_v63, %v590_v43  ;;  %v2446_v43 = vld [vmem:[%s3163_s9 + $0x48] sm:$0xff] }
 0x1c2   :  { %657 = vmatpush.bf16.msra.mxu2 %v646_v1 }
 0x1c4   :  { %v514_v47 = vpop.f32.mrf.mxu3  ;;  %v436_v8 = vpop.f32.mrf.mxu2 }
 0x1c5   :  { %v596_v2 = vpack.c.bf16 %v514_v47, %v512_v62  ;;  %v595_v9 = vpack.c.bf16 %v436_v8, %v434_v0  ;;  %v2445_v62 = vld [vmem:[%s3163_s9 + $0x40] sm:$0xff] }
 0x1c6   :  { %892 = vmatpush.bf16.msrb.mxu2 %v2452_v46  ;;  %v2459_v8 = vld [vmem:[%s3162_s7 + $0xa0] sm:$0xff]  ;;  %v2466_v46 = vld [vmem:[%s3161_s8 + $0x98] sm:$0xff] }
 0x1c7   :  { %v602_v4 = vsel %vm597_vm13, %v596_v2, 0 }
 0x1c8   :  { %611 = vmatpush.bf16.xpose.msrb.mxu1 %v602_v4  ;;  %v2462_v4 = vld [vmem:[%s3162_s7 + $0xb8] sm:$0xff] }
 0x1ca   :  { %893 = vmatpush.bf16.msrb.mxu2 %v2451_v48  ;;  %v2465_v48 = vld [vmem:[%s3161_s8 + $0x90] sm:$0xff] }
 0x1cc   :  { %v743_v29 = vpop.f32.mrf.mxu3 }
 0x1ce   :  { %894 = vmatpush.bf16.msrb.mxu2 %v2450_v49  ;;  %v2464_v49 = vld [vmem:[%s3161_s8 + $0x88] sm:$0xff] }
 0x1cf   :  { %1899 = vmatmul.msk.bf16.vlgmr.msrb.gmra.mxu1 %vm597_vm13, %v595_v9  ;;  %v2458_v9 = vld [vmem:[%s3162_s7 + $0x98] sm:$0xff] }
 0x1d0   :  { %813 = vmatpush.bf16.msra.mxu1 %v2444_v3 }
 0x1d2   :  { %895 = vmatpush.bf16.msrb.mxu2 %v2449_v58  ;;  %v2481_v58 = vld [vmem:[%s3162_s7 + $0xc0] sm:$0xff] }
 0x1d4   :  { %814 = vmatpush.bf16.msra.mxu1 %v2443_v6  ;;  %v745_v33 = vpop.f32.mrf.mxu3  ;;  %v2461_v6 = vld [vmem:[%s3162_s7 + $0xb0] sm:$0xff] }
 0x1d5   :  { %v906_v34 = vpack.c.bf16 %v745_v33, %v743_v29 }
 0x1d6   :  { %896 = vmatpush.bf16.msrb.mxu2 %v2448_v59  ;;  %v2454_v59 = vld [vmem:[%s3166_s10 + $0x18] sm:$0xff] }
 0x1d8   :  { %815 = vmatpush.bf16.msra.mxu1 %v2442_v10  ;;  %v2457_v10 = vld [vmem:[%s3162_s7 + $0x90] sm:$0xff] }
 0x1da   :  { %897 = vmatpush.bf16.msrb.mxu2 %v2447_v60  ;;  %v2453_v60 = vld [vmem:[%s3166_s10 + $0x10] sm:$0xff] }
 0x1dc   :  { %816 = vmatpush.bf16.msra.mxu1 %v2441_v12  ;;  %v2456_v12 = vld [vmem:[%s3162_s7 + $0x88] sm:$0xff] }
 0x1de   :  { %898 = vmatpush.bf16.msrb.mxu2 %v2446_v43  ;;  %v2478_v43 = vld [vmem:[%s3163_s9 + $0xb8] sm:$0xff] }
 0x1e0   :  { %817 = vmatpush.bf16.msra.mxu1 %v2440_v13 }
 0x1e2   :  { %899 = vmatpush.bf16.msrb.mxu2 %v2445_v62  ;;  %v2477_v62 = vld [vmem:[%s3163_s9 + $0xb0] sm:$0xff] }
 0x1e4   :  { %818 = vmatpush.bf16.msra.mxu1 %v2439_v14 }
 0x1e8   :  { %819 = vmatpush.bf16.msra.mxu1 %v2438_v15  ;;  %v2455_v15 = vld [vmem:[%s3162_s7 + $0x80] sm:$0xff] }
 0x1ec   :  { %820 = vmatpush.bf16.msra.mxu1 %v2437_v16 }
 0x1ef   :  { %821 = vmatmul.bf16.vlgmr.msra.gmra.mxu1 %v2825_v61 }
 0x24c   :  { %v613_v19 = vpop.f32.mrf.mxu1 }
 0x24d   :  { %v618_v20 = vmul.f32 0.17677669, %v613_v19 }
 0x24f   :  { %v620_v21 = vsel %vm359_vm14, %v618_v20, -1e+09 }
 0x250   :  { %v623_v22 = vsel %vm622_vm15, %v620_v21, -inf }
 0x251   :  { %624 = vmax.xlane.f32.xlu0 %v623_v22 }
 0x254   :  { %v615_v24 = vpop.f32.mrf.mxu1 }
 0x255   :  { %v619_v25 = vmul.f32 0.17677669, %v615_v24 }
 0x257   :  { %v621_v26 = vsel %vm360_vm0, %v619_v25, -1e+09 }
 0x258   :  { %v626_v27 = vsel %vm622_vm15, %v621_v26, -inf }
 0x259   :  { %627 = vmax.xlane.f32.xlu1 %v626_v27  ;;  %v2427_v27 = vld [vmem:[%s3166_s10] sm:$0xff] }
 0x26c   :  { %v822_v28 = vpop.f32.mrf.mxu1 }
 0x274   :  { %v824_v30 = vpop.f32.mrf.mxu1 }
 0x275   :  { %v907_v31 = vpack.c.bf16 %v824_v30, %v822_v28 }
 0x277   :  { %v912_v32 = vsel %vm597_vm13, %v907_v31, 0 }
 0x278   :  { %921 = vmatpush.bf16.xpose.msra.mxu0 %v912_v32 }
 0x27f   :  { %2045 = vmatmul.msk.bf16.vlgmr.msra.gmra.mxu0 %vm597_vm13, %v906_v34  ;;  %v2470_v34 = vld [vmem:[%s3161_s8 + $0xb8] sm:$0xff] }
 0x280   :  { %1000 = vmatpush.bf16.msrb.mxu0 %v2454_v59  ;;  %v2504_v59 = vld [vmem:[%s3163_s9 + $0xf8] sm:$0xff] }
 0x284   :  { %1001 = vmatpush.bf16.msrb.mxu0 %v2453_v60  ;;  %v2503_v60 = vld [vmem:[%s3163_s9 + $0xf0] sm:$0xff] }
 0x288   :  { %1260 = vmatpush.bf16.msra.mxu0 %v2478_v43  ;;  %v2502_v43 = vld [vmem:[%s3163_s9 + $0xe8] sm:$0xff] }
 0x28c   :  { %1261 = vmatpush.bf16.msra.mxu0 %v2477_v62  ;;  %v2501_v62 = vld [vmem:[%s3163_s9 + $0xe0] sm:$0xff] }
 0x2c4   :  { %v625_v35 = vpop.xlane.xlu0 %624 }
 0x2c5   :  { %v629_v36 = vsub.f32 %v620_v21, %v625_v35 }
 0x2c7   :  { %v631_v37 = vmul.f32 1.442695, %v629_v36 }
 0x2c9   :  { %2525 = vpow2.f32 %v631_v37  ;;  %v2469_v37 = vld [vmem:[%s3161_s8 + $0xb0] sm:$0xff] }
 0x2cc   :  { %v628_v38 = vpop.xlane.xlu1 %627 }
 0x2cd   :  { %v630_v39 = vsub.f32 %v621_v26, %v628_v38  ;;  %v2428_v26 = vld [vmem:[%s3166_s10 + $0x8] sm:$0xff] }
 0x2ce   :  { %1029 = vmatpush.bf16.msrb.mxu1 %v2428_v26 }
 0x2cf   :  { %v2526_v40 = vpop.eup %2525  ;;  %v633_v41 = vmul.f32 1.442695, %v630_v39  ;;  %v2468_v39 = vld [vmem:[%s3161_s8 + $0xa8] sm:$0xff] }
 0x2d0   :  { %v635_v42 = vsel %vm622_vm15, %v2526_v40, 0.0 }
 0x2d1   :  { %2527 = vpow2.f32 %v633_v41  ;;  %636 = vadd.xlane.f32.xlu2 %v635_v42 }
 0x2d2   :  { %1030 = vmatpush.bf16.msrb.mxu1 %v2427_v27  ;;  %v2480_v27 = vld [vmem:[%s3166_s10 + $0x28] sm:$0xff] }
 0x2d7   :  { %v2528_v44 = vpop.eup %2527 }
 0x2d8   :  { %v638_v45 = vsel %vm622_vm15, %v2528_v44, 0.0 }
 0x2d9   :  { %639 = vadd.xlane.f32.xlu0 %v638_v45  ;;  %v2467_v45 = vld [vmem:[%s3161_s8 + $0xa0] sm:$0xff] }
 0x2fc   :  { %v923_v50 = vpop.f32.mrf.mxu0 }
 0x2fd   :  { %v928_v51 = vmul.f32 0.17677669, %v923_v50  ;;  %v2463_v50 = vld [vmem:[%s3161_s8 + $0x80] sm:$0xff] }
 0x2ff   :  { %v930_v52 = vsel %vm359_vm14, %v928_v51, -1e+09  ;;  %v2488_v51 = vld [vmem:[%s3162_s7 + $0xf8] sm:$0xff] }
 0x300   :  { %v932_v53 = vsel %vm622_vm15, %v930_v52, -inf }
 0x301   :  { %933 = vmax.xlane.f32.xlu1 %v932_v53  ;;  %v2486_v53 = vld [vmem:[%s3162_s7 + $0xe8] sm:$0xff] }
 0x304   :  { %v925_v54 = vpop.f32.mrf.mxu0 }
 0x305   :  { %v929_v55 = vmul.f32 0.17677669, %v925_v54  ;;  %v2485_v54 = vld [vmem:[%s3162_s7 + $0xe0] sm:$0xff] }
 0x307   :  { %v931_v56 = vsel %vm360_vm0, %v929_v55, -1e+09  ;;  %v2484_v55 = vld [vmem:[%s3162_s7 + $0xd8] sm:$0xff] }
 0x308   :  { %v935_v57 = vsel %vm622_vm15, %v931_v56, -inf }
 0x309   :  { %936 = vmax.xlane.f32.xlu0 %v935_v57  ;;  %v2482_v57 = vld [vmem:[%s3162_s7 + $0xc8] sm:$0xff] }
 0x344   :  { %v637_v63 = vpop.xlane.xlu2 %636 }
 0x345   :  { %2529 = vrcp.f32 %v637_v63  ;;  %v2476_v63 = vld [vmem:[%s3163_s9 + $0xa8] sm:$0xff] }
 0x346   :  { %1262 = vmatpush.bf16.msra.mxu0 %v2476_v63  ;;  %v2500_v63 = vld [vmem:[%s3163_s9 + $0xd8] sm:$0xff] }
 0x34b   :  { %v2530_v1 = vpop.eup %2529 }
 0x34c   :  { %v640_v0 = vpop.xlane.xlu0 %639  ;;  %v643_v2 = vmul.f32 %v2530_v1, %v2526_v40  ;;  %v2474_v1 = vld [vmem:[%s3163_s9 + $0x98] sm:$0xff] }
 0x34d   :  { %2531 = vrcp.f32 %v640_v0  ;;  %v2475_v0 = vld [vmem:[%s3163_s9 + $0xa0] sm:$0xff] }
 0x34e   :  { %1263 = vmatpush.bf16.msra.mxu0 %v2475_v0  ;;  %v2499_v0 = vld [vmem:[%s3163_s9 + $0xd0] sm:$0xff] }
 0x352   :  { %1264 = vmatpush.bf16.msra.mxu0 %v2474_v1  ;;  %v2498_v1 = vld [vmem:[%s3163_s9 + $0xc8] sm:$0xff] }
 0x353   :  { %v2532_v47 = vpop.eup %2531 }
 0x354   :  { %v644_v3 = vmul.f32 %v2532_v47, %v2528_v44  ;;  %v2473_v47 = vld [vmem:[%s3163_s9 + $0x90] sm:$0xff] }
 0x356   :  { %v645_v5 = vpack.c.bf16 %v644_v3, %v643_v2  ;;  %1265 = vmatpush.bf16.msra.mxu0 %v2473_v47  ;;  %v2472_v2 = vld [vmem:[%s3163_s9 + $0x88] sm:$0xff]  ;;  %v2471_v3 = vld [vmem:[%s3163_s9 + $0x80] sm:$0xff] }
 0x357   :  { %v2497_v47 = vld [vmem:[%s3163_s9 + $0xc0] sm:$0xff] }
 0x358   :  { %1900 = vmatmul.msk.bf16.vlgmr.msra.gmra.mxu2 %vm622_vm15, %v645_v5 }
 0x359   :  { %1102 = vmatpush.bf16.msra.mxu2 %v2462_v4 }
 0x35a   :  { %1266 = vmatpush.bf16.msra.mxu0 %v2472_v2 }
 0x35d   :  { %1103 = vmatpush.bf16.msra.mxu2 %v2461_v6  ;;  %v2496_v6 = vld [vmem:[%s3161_s8 + $0xf8] sm:$0xff] }
 0x35e   :  { %1267 = vmatpush.bf16.msra.mxu0 %v2471_v3 }
 0x361   :  { %1104 = vmatpush.bf16.msra.mxu2 %v2460_v7 }
 0x365   :  { %1105 = vmatpush.bf16.msra.mxu2 %v2459_v8  ;;  %v2495_v8 = vld [vmem:[%s3161_s8 + $0xf0] sm:$0xff] }
 0x368   :  { %900 = vmatmul.bf16.vlgmr.msrb.gmra.mxu2 %v2825_v61 }
 0x369   :  { %1106 = vmatpush.bf16.msra.mxu2 %v2458_v9  ;;  %v2494_v9 = vld [vmem:[%s3161_s8 + $0xe8] sm:$0xff] }
 0x36d   :  { %1107 = vmatpush.bf16.msra.mxu2 %v2457_v10  ;;  %v2493_v10 = vld [vmem:[%s3161_s8 + $0xe0] sm:$0xff] }
 0x371   :  { %1108 = vmatpush.bf16.msra.mxu2 %v2456_v12  ;;  %v2492_v12 = vld [vmem:[%s3161_s8 + $0xd8] sm:$0xff] }
 0x374   :  { %v934_v11 = vpop.xlane.xlu1 %933 }
 0x375   :  { %v938_v13 = vsub.f32 %v930_v52, %v934_v11  ;;  %1109 = vmatpush.bf16.msra.mxu2 %v2455_v15  ;;  %v2487_v52 = vld [vmem:[%s3162_s7 + $0xf0] sm:$0xff] }
 0x377   :  { %v940_v14 = vmul.f32 1.442695, %v938_v13 }
 0x378   :  { %1110 = vmatmul.bf16.vlgmr.msra.gmra.mxu2 %v2825_v61 }
 0x379   :  { %2533 = vpow2.f32 %v940_v14  ;;  %v2491_v14 = vld [vmem:[%s3161_s8 + $0xd0] sm:$0xff]  ;;  %1368 = vmatpush.bf16.msrb.mxu2 %v2480_v27 }
 0x37c   :  { %v937_v16 = vpop.xlane.xlu0 %936 }
 0x37d   :  { %v939_v19 = vsub.f32 %v931_v56, %v937_v16  ;;  %v2483_v56 = vld [vmem:[%s3162_s7 + $0xd0] sm:$0xff] }
 0x37f   :  { %v2534_v20 = vpop.eup %2533  ;;  %v942_v21 = vmul.f32 1.442695, %v939_v19 }
 0x380   :  { %v944_v22 = vsel %vm622_vm15, %v2534_v20, 0.0 }
 0x381   :  { %2535 = vpow2.f32 %v942_v21  ;;  %945 = vadd.xlane.f32.xlu1 %v944_v22  ;;  %v2489_v22 = vld [vmem:[%s3161_s8 + $0xc0] sm:$0xff] }
 0x387   :  { %v2536_v24 = vpop.eup %2535 }
 0x388   :  { %v947_v25 = vsel %vm622_vm15, %v2536_v24, 0.0 }
 0x389   :  { %948 = vadd.xlane.f32.xlu0 %v947_v25 }
 0x3db   :  { %v659_v28 = vpop.f32.mrf.mxu2 }
 0x3e3   :  { %v661_v29 = vpop.f32.mrf.mxu2 }
 0x3e4   :  { %v664_v30 = vpack.c.bf16 %v661_v29, %v659_v28 }
 0x3e6   :  { %2068 = vmatmul.msk.bf16.vlgmr.msrb.gmra.mxu1 %vm597_vm13, %v664_v30 }
 0x3eb   :  { %v901_v31 = vpop.f32.mrf.mxu2 }
 0x3f3   :  { %v903_v33 = vpop.f32.mrf.mxu2 }
 0x3f4   :  { %v946_v32 = vpop.xlane.xlu1 %945  ;;  %v955_v35 = vpack.c.bf16 %v903_v33, %v901_v31  ;;  %v2479_v31 = vld [vmem:[%s3166_s10 + $0x20] sm:$0xff] }
 0x3f5   :  { %2537 = vrcp.f32 %v946_v32  ;;  %1369 = vmatpush.bf16.msrb.mxu2 %v2479_v31 }
 0x3f6   :  { %966 = vmatpush.bf16.msrb.mxu3 %v955_v35 }
 0x3fa   :  { %1181 = vmatpush.bf16.msra.mxu3 %v2470_v34 }
 0x3fb   :  { %v2538_v38 = vpop.eup %2537  ;;  %v1111_v13 = vpop.f32.mrf.mxu2 }
 0x3fc   :  { %v949_v36 = vpop.xlane.xlu0 %948  ;;  %v952_v41 = vmul.f32 %v2538_v38, %v2534_v20  ;;  %v2490_v20 = vld [vmem:[%s3161_s8 + $0xc8] sm:$0xff] }
 0x3fd   :  { %2539 = vrcp.f32 %v949_v36 }
 0x3fe   :  { %1182 = vmatpush.bf16.msra.mxu3 %v2469_v37 }
 0x402   :  { %1183 = vmatpush.bf16.msra.mxu3 %v2468_v39 }
 0x403   :  { %v2540_v40 = vpop.eup %2539  ;;  %v1113_v21 = vpop.f32.mrf.mxu2 }
 0x404   :  { %v953_v42 = vmul.f32 %v2540_v40, %v2536_v24  ;;  %v1274_v24 = vpack.c.bf16 %v1113_v21, %v1111_v13 }
 0x406   :  { %v954_v44 = vpack.c.bf16 %v953_v42, %v952_v41  ;;  %1184 = vmatpush.bf16.msra.mxu3 %v2467_v45 }
 0x408   :  { %2046 = vmatmul.msk.bf16.vlgmr.msrb.gmra.mxu3 %vm622_vm15, %v954_v44 }
 0x40a   :  { %1185 = vmatpush.bf16.msra.mxu3 %v2466_v46 }
 0x40e   :  { %1186 = vmatpush.bf16.msra.mxu3 %v2465_v48 }
 0x412   :  { %1187 = vmatpush.bf16.msra.mxu3 %v2464_v49 }
 0x416   :  { %1188 = vmatpush.bf16.msra.mxu3 %v2463_v50 }
 0x419   :  { %1189 = vmatmul.bf16.vlgmr.msra.gmra.mxu3 %v2825_v61 }
 0x41a   :  { %1443 = vmatpush.bf16.msrb.mxu3 %v2488_v51 }
 0x41e   :  { %1444 = vmatpush.bf16.msrb.mxu3 %v2487_v52 }
 0x422   :  { %1445 = vmatpush.bf16.msrb.mxu3 %v2486_v53 }
 0x426   :  { %1446 = vmatpush.bf16.msrb.mxu3 %v2485_v54 }
 0x42a   :  { %1447 = vmatpush.bf16.msrb.mxu3 %v2484_v55 }
 0x42e   :  { %1448 = vmatpush.bf16.msrb.mxu3 %v2483_v56 }
 0x432   :  { %1449 = vmatpush.bf16.msrb.mxu3 %v2482_v57 }
 0x436   :  { %1450 = vmatpush.bf16.msrb.mxu3 %v2481_v58 }
 0x439   :  { %1451 = vmatmul.bf16.vlgmr.msrb.gmra.mxu3 %v2825_v61 }
 0x463   :  { %v3067_v25 = vpop.f32.mrf.mxu1 }
 0x46b   :  { %v1034_v28 = vpop.f32.mrf.mxu1 }
 0x48b   :  { %v968_v4 = vpop.f32.mrf.mxu3 }
 0x493   :  { %v970_v5 = vpop.f32.mrf.mxu3 }
 0x494   :  { %v973_v7 = vpack.c.bf16 %v970_v5, %v968_v4 }
 0x496   :  { %2059 = vmatmul.msk.bf16.vlgmr.msrb.gmra.mxu0 %vm597_vm13, %v973_v7 }
 0x497   :  { %1522 = vmatpush.bf16.msrb.mxu0 %v2496_v6 }
 0x49b   :  { %1523 = vmatpush.bf16.msrb.mxu0 %v2495_v8 }
 0x49c   :  { %v1190_v11 = vpop.f32.mrf.mxu3 }
 0x49f   :  { %1524 = vmatpush.bf16.msrb.mxu0 %v2494_v9 }
 0x4a3   :  { %1525 = vmatpush.bf16.msrb.mxu0 %v2493_v10 }
 0x4a4   :  { %v1192_v15 = vpop.f32.mrf.mxu3 }
 0x4a5   :  { %v1275_v16 = vpack.c.bf16 %v1192_v15, %v1190_v11 }
 0x4a6   :  { %1268 = vmatmul.bf16.vlgmr.msra.gmra.mxu0 %v2825_v61 }
 0x4a7   :  { %1526 = vmatpush.bf16.msrb.mxu0 %v2492_v12  ;;  %v1280_v19 = vsel %vm597_vm13, %v1275_v16, 0 }
 0x4a8   :  { %1289 = vmatpush.bf16.xpose.msra.mxu1 %v1280_v19 }
 0x4ab   :  { %1527 = vmatpush.bf16.msrb.mxu0 %v2491_v14 }
 0x4af   :  { %1528 = vmatpush.bf16.msrb.mxu0 %v2490_v20  ;;  %2213 = vmatmul.msk.bf16.vlgmr.msra.gmra.mxu1 %vm597_vm13, %v1274_v24 }
 0x4b3   :  { %1529 = vmatpush.bf16.msrb.mxu0 %v2489_v22 }
 0x4b6   :  { %1530 = vmatmul.bf16.vlgmr.msrb.gmra.mxu0 %v2825_v61 }
 0x4bc   :  { %v1452_v12 = vpop.f32.mrf.mxu3 }
 0x4c4   :  { %v1454_v14 = vpop.f32.mrf.mxu3 }
 0x4c5   :  { %v1615_v16 = vpack.c.bf16 %v1454_v14, %v1452_v12 }
 0x513   :  { %v3069_v26 = vpop.f32.mrf.mxu0 }
 0x514   :  { %v1033_v20 = vadd.f32 %v3067_v25, %v3069_v26 }
 0x51b   :  { %v1005_v29 = vpop.f32.mrf.mxu0 }
 0x51c   :  { %v3074_v30 = vadd.f32 %v1034_v28, %v1005_v29 }
 0x523   :  { %v1269_v32 = vpop.f32.mrf.mxu0 }
 0x52b   :  { %v1271_v33 = vpop.f32.mrf.mxu0 }
 0x52c   :  { %v1323_v34 = vpack.c.bf16 %v1271_v33, %v1269_v32  ;;  %v1291_v35 = vpop.f32.mrf.mxu1 }
 0x52d   :  { %v1296_v36 = vmul.f32 0.17677669, %v1291_v35 }
 0x52e   :  { %1334 = vmatpush.bf16.msrb.mxu1 %v1323_v34 }
 0x52f   :  { %v1298_v38 = vsel %vm359_vm14, %v1296_v36, -1e+09 }
 0x530   :  { %v1300_v39 = vsel %vm622_vm15, %v1298_v38, -inf }
 0x531   :  { %1301 = vmax.xlane.f32.xlu1 %v1300_v39 }
 0x532   :  { %1601 = vmatpush.bf16.msra.mxu1 %v2504_v59 }
 0x533   :  { %v1531_v37 = vpop.f32.mrf.mxu0 }
 0x534   :  { %v1293_v40 = vpop.f32.mrf.mxu1 }
 0x535   :  { %v1297_v41 = vmul.f32 0.17677669, %v1293_v40 }
 0x536   :  { %1602 = vmatpush.bf16.msra.mxu1 %v2503_v60 }
 0x537   :  { %v1299_v44 = vsel %vm360_vm0, %v1297_v41, -1e+09 }
 0x538   :  { %v1303_v46 = vsel %vm622_vm15, %v1299_v44, -inf }
 0x539   :  { %1304 = vmax.xlane.f32.xlu0 %v1303_v46 }
 0x53a   :  { %1603 = vmatpush.bf16.msra.mxu1 %v2502_v43 }
 0x53b   :  { %v1533_v42 = vpop.f32.mrf.mxu0 }
 0x53c   :  { %v1616_v45 = vpack.c.bf16 %v1533_v42, %v1531_v37 }
 0x53e   :  { %v1621_v48 = vsel %vm597_vm13, %v1616_v45, 0  ;;  %1604 = vmatpush.bf16.msra.mxu1 %v2501_v62 }
 0x53f   :  { %1630 = vmatpush.bf16.xpose.msra.mxu2 %v1621_v48 }
 0x542   :  { %1605 = vmatpush.bf16.msra.mxu1 %v2500_v63  ;;  %v2558_v63 = vld [vmem:[%s3154_s0 + $0x8] sm:$0xff] }
 0x546   :  { %1606 = vmatpush.bf16.msra.mxu1 %v2499_v0 }
 0x54a   :  { %1607 = vmatpush.bf16.msra.mxu1 %v2498_v1 }
 0x54e   :  { %1608 = vmatpush.bf16.msra.mxu1 %v2497_v47 }
 0x5a4   :  { %v1302_v49 = vpop.xlane.xlu1 %1301 }
 0x5a5   :  { %v1306_v50 = vsub.f32 %v1298_v38, %v1302_v49  ;;  %v2506_v49 = vld [vmem:[%s3166_s10 + $0x38] sm:$0xff] }
 0x5a6   :  { %1709 = vmatpush.bf16.msra.mxu3 %v2506_v49 }
 0x5a7   :  { %v1308_v51 = vmul.f32 1.442695, %v1306_v50  ;;  %v2505_v50 = vld [vmem:[%s3166_s10 + $0x30] sm:$0xff] }
 0x5a9   :  { %2541 = vpow2.f32 %v1308_v51 }
 0x5aa   :  { %1710 = vmatpush.bf16.msra.mxu3 %v2505_v50 }
 0x5ac   :  { %v1305_v52 = vpop.xlane.xlu0 %1304 }
 0x5ad   :  { %v1307_v53 = vsub.f32 %v1299_v44, %v1305_v52 }
 0x5af   :  { %v2542_v54 = vpop.eup %2541  ;;  %v1310_v55 = vmul.f32 1.442695, %v1307_v53 }
 0x5b0   :  { %v1312_v56 = vsel %vm622_vm15, %v2542_v54, 0.0 }
 0x5b1   :  { %2543 = vpow2.f32 %v1310_v55  ;;  %1313 = vadd.xlane.f32.xlu1 %v1312_v56 }
 0x5b7   :  { %v2544_v57 = vpop.eup %2543 }
 0x5b8   :  { %v1315_v58 = vsel %vm622_vm15, %v2544_v57, 0.0 }
 0x5b9   :  { %1316 = vadd.xlane.f32.xlu0 %v1315_v58  ;;  %v2557_v58 = vld [vmem:[%s3154_s0] sm:$0xff] }
 0x624   :  { %v1314_v2 = vpop.xlane.xlu1 %1313 }
 0x625   :  { %2545 = vrcp.f32 %v1314_v2 }
 0x62b   :  { %v2546_v4 = vpop.eup %2545 }
 0x62c   :  { %v1317_v3 = vpop.xlane.xlu0 %1316  ;;  %v1320_v6 = vmul.f32 %v2546_v4, %v2542_v54  ;;  %v2514_v54 = vld [vmem:[%s3167_s11] ss:$0 sm:$0xff] }
 0x62d   :  { %2547 = vrcp.f32 %v1317_v3 }
 0x633   :  { %v2548_v5 = vpop.eup %2547 }
 0x634   :  { %v1321_v7 = vmul.f32 %v2548_v5, %v2544_v57 }
 0x636   :  { %v1322_v8 = vpack.c.bf16 %v1321_v7, %v1320_v6 }
 0x638   :  { %2214 = vmatmul.msk.bf16.vlgmr.msrb.gmra.mxu1 %vm622_vm15, %v1322_v8 }
 0x648   :  { %1609 = vmatmul.bf16.vlgmr.msra.gmra.mxu1 %v2825_v61 }
 0x6b5   :  { %v1336_v9 = vpop.f32.mrf.mxu1 }
 0x6bd   :  { %v1338_v10 = vpop.f32.mrf.mxu1 }
 0x6be   :  { %v1341_v11 = vpack.c.bf16 %v1338_v10, %v1336_v9 }
 0x6c0   :  { %2227 = vmatmul.msk.bf16.vlgmr.msrb.gmra.mxu2 %vm597_vm13, %v1341_v11 }
 0x6c5   :  { %v1610_v13 = vpop.f32.mrf.mxu1 }
 0x6cd   :  { %v1612_v15 = vpop.f32.mrf.mxu1 }
 0x6ce   :  { %v1664_v19 = vpack.c.bf16 %v1612_v15, %v1610_v13 }
 0x6d0   :  { %2372 = vmatmul.msk.bf16.vlgmr.msra.gmra.mxu2 %vm597_vm13, %v1615_v16 }
 0x6d1   :  { %1675 = vmatpush.bf16.msrb.mxu2 %v1664_v19 }
 0x743   :  { %v1371_v21 = vpop.f32.mrf.mxu2 }
 0x744   :  { %v1376_v22 = vadd.f32 %v1371_v21, %v1033_v20 }
 0x74b   :  { %v1373_v61 = vpop.f32.mrf.mxu2 }
 0x74c   :  { %v1377_v24 = vadd.f32 %v1373_v61, %v3074_v30 }
 0x753   :  { %v1632_v27 = vpop.f32.mrf.mxu2 }
 0x754   :  { %v1637_v28 = vmul.f32 0.17677669, %v1632_v27 }
 0x756   :  { %v1639_v29 = vsel %vm359_vm14, %v1637_v28, -1e+09 }
 0x757   :  { %v1641_v31 = vsel %vm622_vm15, %v1639_v29, -inf }
 0x758   :  { %1642 = vmax.xlane.f32.xlu1 %v1641_v31 }
 0x75b   :  { %v1634_v32 = vpop.f32.mrf.mxu2 }
 0x75c   :  { %v1638_v33 = vmul.f32 0.17677669, %v1634_v32 }
 0x75e   :  { %v1640_v25 = vsel %vm360_vm0, %v1638_v33, -1e+09 }
 0x75f   :  { %v1644_v26 = vsel %vm622_vm15, %v1640_v25, -inf }
 0x760   :  { %1645 = vmax.xlane.f32.xlu2 %v1644_v26 }
 0x7cb   :  { %v1643_v34 = vpop.xlane.xlu1 %1642 }
 0x7cc   :  { %v1647_v30 = vsub.f32 %v1639_v29, %v1643_v34 }
 0x7ce   :  { %v1649_v35 = vmul.f32 1.442695, %v1647_v30 }
 0x7d0   :  { %2549 = vpow2.f32 %v1649_v35 }
 0x7d3   :  { %v1646_v36 = vpop.xlane.xlu2 %1645 }
 0x7d4   :  { %v1648_v37 = vsub.f32 %v1640_v25, %v1646_v36 }
 0x7d6   :  { %v2550_v18 = vpop.eup %2549  ;;  %v1651_v38 = vmul.f32 1.442695, %v1648_v37 }
 0x7d7   :  { %v1653_v39 = vsel %vm622_vm15, %v2550_v18, 0.0 }
 0x7d8   :  { %2551 = vpow2.f32 %v1651_v38  ;;  %1654 = vadd.xlane.f32.xlu0 %v1653_v39 }
 0x7de   :  { %v2552_v40 = vpop.eup %2551 }
 0x7df   :  { %v1656_v41 = vsel %vm622_vm15, %v2552_v40, 0.0 }
 0x7e0   :  { %1657 = vadd.xlane.f32.xlu1 %v1656_v41 }
 0x84b   :  { %v1655_v17 = vpop.xlane.xlu0 %1654 }
 0x84c   :  { %2553 = vrcp.f32 %v1655_v17 }
 0x852   :  { %v2554_v42 = vpop.eup %2553 }
 0x853   :  { %v1658_v23 = vpop.xlane.xlu1 %1657  ;;  %v1661_v45 = vmul.f32 %v2554_v42, %v2550_v18 }
 0x854   :  { %2555 = vrcp.f32 %v1658_v23 }
 0x85a   :  { %v2556_v44 = vpop.eup %2555 }
 0x85b   :  { %v1662_v46 = vmul.f32 %v2556_v44, %v2552_v40 }
 0x85d   :  { %v1663_v48 = vpack.c.bf16 %v1662_v46, %v1661_v45 }
 0x85f   :  { %2373 = vmatmul.msk.bf16.vlgmr.msrb.gmra.mxu2 %vm622_vm15, %v1663_v48 }
 0x8e2   :  { %v1677_v51 = vpop.f32.mrf.mxu2 }
 0x8ea   :  { %v1679_v52 = vpop.f32.mrf.mxu2 }
 0x8eb   :  { %v1682_v53 = vpack.c.bf16 %v1679_v52, %v1677_v51 }
 0x8ed   :  { %2386 = vmatmul.msk.bf16.vlgmr.msra.gmra.mxu3 %vm597_vm13, %v1682_v53 }
 0x970   :  { %v1712_v55 = vpop.f32.mrf.mxu3 }
 0x971   :  { %v1717_v56 = vadd.f32 %v1712_v55, %v1376_v22 }
 0x973   :  { %v1722_v57 = vadd.f32 %v2514_v54, %v1717_v56 }
 0x975   :  { %v1724_v59 = vadd.f32 %v2557_v58, %v1722_v57 }
 0x977   :  { %1726 = vst [vmem:[%s3168_s14] sm:$0xff] %v1724_v59 }
 0x978   :  { %v1714_v60 = vpop.f32.mrf.mxu3 }
 0x979   :  { %v1718_v43 = vadd.f32 %v1714_v60, %v1377_v24 }
 0x97b   :  { %v1723_v62 = vadd.f32 %v2514_v54, %v1718_v43 }
 0x97d   :  { %v1725_v0 = vadd.f32 %v2558_v63, %v1723_v62 }
 0x97f   :  { %1727 = vst [vmem:[%s3168_s14 + $0x8] sm:$0xff] %v1725_v0 }

// kernel: denoiser_forward.17
= control target key start
LH: loop header
LB: loop body
LE: loop exit
PB: predicated region body
PF: predicated region fallthrough
CT: control target
= control target key end

     0   :  { %vm53_vm0 = vcmask 130048   ;;  %vm318_vm9 = vcmask 523264   ;;  %vm335_vm14 = vcmask 20480   ;;  %s1067_s1 = inlined_call_operand.vmem [shape: f32[16,128], index: 1, kind: input, shape index: {}]   ;;  %s1068_s0 = inlined_call_operand.vmem [shape: f32[5,16], index: 0, kind: input, shape index: {}]   ;;  %s1069_s2 = inlined_call_operand.vmem [shape: bf16[128,128], index: 2, kind: input, shape index: {}]   ;;  %s1070_s8 = inlined_call_operand.vmem [shape: bf16[128,128], index: 8, kind: input, shape index: {}]   ;;  %s1071_s3 = inlined_call_operand.vmem [shape: f32[1,128], index: 3, kind: input, shape index: {}]   ;;  %s1072_s9 = inlined_call_operand.vmem [shape: f32[1,128], index: 9, kind: input, shape index: {}]   ;;  %s1073_s5 = inlined_call_operand.vmem [shape: f32[1,64], index: 5, kind: input, shape index: {}]   ;;  %s1074_s4 = inlined_call_operand.vmem [shape: bf16[128,64], index: 4, kind: input, shape index: {}]   ;;  %s1075_s7 = inlined_call_operand.vmem [shape: f32[1,3], index: 7, kind: input, shape index: {}]   ;;  %s1076_s6 = inlined_call_operand.vmem [shape: bf16[64,3], index: 6, kind: input, shape index: {}]   ;;  %s1077_s10 = inlined_call_operand.vmem [shape: bf16[128,64], index: 10, kind: input, shape index: {}]   ;;  %s1078_s11 = inlined_call_operand.vmem [shape: f32[1,64], index: 11, kind: input, shape index: {}]   ;;  %s1079_s13 = inlined_call_operand.vmem [shape: f32[1,6], index: 13, kind: input, shape index: {}]   ;;  %s1080_s14 = inlined_call_operand.vmem [shape: f32[5,3], index: 14, kind: output, shape index: {0}]   ;;  %s1081_s12 = inlined_call_operand.vmem [shape: bf16[64,6], index: 12, kind: input, shape index: {}]   ;;  %s1082_s15 = inlined_call_operand.vmem [shape: f32[5,6], index: 15, kind: output, shape index: {1}]  }
   0x1   :  { %v52_v0 = vld [vmem:[%s1067_s1 + $0x8] sm:$0xff]  ;;  %v51_v1 = vld [vmem:[%s1067_s1] sm:$0xff]  ;;  %v777_v3 = vld [vmem:[%s1069_s2 + $0x38] sm:$0xff] }
   0x2   :  { %71 = vmatpush.msra.mxu0 %v52_v0  ;;  %v50_v2 = vld [vmem:[%s1068_s0] sm:$0x1f]  ;;  %v797_v4 = vld [vmem:[%s1070_s8 + $0x38] sm:$0xff]  ;;  %146 = vmatpush.bf16.msra.mxu1 %v777_v3  ;;  %v776_v5 = vld [vmem:[%s1069_s2 + $0x30] sm:$0xff] }
   0x3   :  { %v796_v6 = vld [vmem:[%s1070_s8 + $0x30] sm:$0xff]  ;;  %v775_v7 = vld [vmem:[%s1069_s2 + $0x28] sm:$0xff]  ;;  %v774_v9 = vld [vmem:[%s1069_s2 + $0x20] sm:$0xff] }
   0x4   :  { %72 = vmatpush.msra.mxu0 %v51_v1  ;;  %v795_v8 = vld [vmem:[%s1070_s8 + $0x28] sm:$0xff]  ;;  %v794_v10 = vld [vmem:[%s1070_s8 + $0x20] sm:$0xff]  ;;  %v773_v11 = vld [vmem:[%s1069_s2 + $0x18] sm:$0xff] }
   0x5   :  { %603 = vmatmul.msk.f32.vlgmr.msra.gmra.mxu0 %vm53_vm0, %v50_v2  ;;  %v793_v12 = vld [vmem:[%s1070_s8 + $0x18] sm:$0xff]  ;;  %v772_v13 = vld [vmem:[%s1069_s2 + $0x10] sm:$0xff]  ;;  %v771_v15 = vld [vmem:[%s1069_s2 + $0x8] sm:$0xff] }
   0x6   :  { %405 = vmatpush.bf16.msrb.mxu0 %v797_v4  ;;  %147 = vmatpush.bf16.msra.mxu1 %v776_v5  ;;  %v792_v14 = vld [vmem:[%s1070_s8 + $0x10] sm:$0xff]  ;;  %v791_v16 = vld [vmem:[%s1070_s8 + $0x8] sm:$0xff]  ;;  %v770_v17 = vld [vmem:[%s1069_s2] sm:$0xff] }
   0x7   :  { %v790_v18 = vld [vmem:[%s1070_s8] sm:$0xff]  ;;  %v785_v21 = vld [vmem:[%s1074_s4 + $0x38] sm:$0xff]  ;;  %v784_v22 = vld [vmem:[%s1074_s4 + $0x30] sm:$0xff] }
   0x8   :  { %248 = vmatpush.bf16.msra.mxu2 %v785_v21  ;;  %v783_v23 = vld [vmem:[%s1074_s4 + $0x28] sm:$0xff]  ;;  %v782_v24 = vld [vmem:[%s1074_s4 + $0x20] sm:$0xff]  ;;  %v781_v25 = vld [vmem:[%s1074_s4 + $0x18] sm:$0xff] }
   0x9   :  { %v780_v26 = vld [vmem:[%s1074_s4 + $0x10] sm:$0xff]  ;;  %v779_v27 = vld [vmem:[%s1074_s4 + $0x8] sm:$0xff]  ;;  %v810_v28 = vld [vmem:[%s1071_s3] ss:$0 sm:$0xff] }
   0xa   :  { %406 = vmatpush.bf16.msrb.mxu0 %v796_v6  ;;  %148 = vmatpush.bf16.msra.mxu1 %v775_v7  ;;  %v778_v29 = vld [vmem:[%s1074_s4] sm:$0xff]  ;;  %v789_v50 = vld [vmem:[%s1076_s6 + $0x18] sm:$0xff]  ;;  %v788_v51 = vld [vmem:[%s1076_s6 + $0x10] sm:$0xff] }
   0xb   :  { %326 = vmatpush.bf16.msra.mxu3 %v789_v50  ;;  %v787_v52 = vld [vmem:[%s1076_s6 + $0x8] sm:$0xff]  ;;  %v786_v53 = vld [vmem:[%s1076_s6] sm:$0xff]  ;;  %v805_v54 = vld [vmem:[%s1077_s10 + $0x38] sm:$0xff] }
   0xc   :  { %249 = vmatpush.bf16.msra.mxu2 %v784_v22  ;;  %v811_v55 = vld [vmem:[%s1072_s9] ss:$0 sm:$0xff]  ;;  %v804_v56 = vld [vmem:[%s1077_s10 + $0x30] sm:$0xff]  ;;  %v803_v58 = vld [vmem:[%s1077_s10 + $0x28] sm:$0xff] }
   0xd   :  { %v812_v60 = vld [vmem:[%s1073_s5] ss:$0 sm:$0xff]  ;;  %v801_v1 = vld [vmem:[%s1077_s10 + $0x18] sm:$0xff]  ;;  %v800_v2 = vld [vmem:[%s1077_s10 + $0x10] sm:$0xff] }
   0xe   :  { %407 = vmatpush.bf16.msrb.mxu0 %v795_v8  ;;  %149 = vmatpush.bf16.msra.mxu1 %v774_v9  ;;  %v802_v61 = vld [vmem:[%s1077_s10 + $0x20] sm:$0xff]  ;;  %v799_v6 = vld [vmem:[%s1077_s10 + $0x8] sm:$0xff] }
   0xf   :  { %327 = vmatpush.bf16.msra.mxu3 %v788_v51  ;;  %v798_v9 = vld [vmem:[%s1077_s10] sm:$0xff] }
  0x10   :  { %250 = vmatpush.bf16.msra.mxu2 %v783_v23 }
  0x12   :  { %408 = vmatpush.bf16.msrb.mxu0 %v794_v10  ;;  %150 = vmatpush.bf16.msra.mxu1 %v773_v11 }
  0x13   :  { %328 = vmatpush.bf16.msra.mxu3 %v787_v52 }
  0x14   :  { %251 = vmatpush.bf16.msra.mxu2 %v782_v24 }
  0x16   :  { %409 = vmatpush.bf16.msrb.mxu0 %v793_v12  ;;  %151 = vmatpush.bf16.msra.mxu1 %v772_v13 }
  0x17   :  { %329 = vmatpush.bf16.msra.mxu3 %v786_v53 }
  0x18   :  { %252 = vmatpush.bf16.msra.mxu2 %v781_v25 }
  0x1a   :  { %410 = vmatpush.bf16.msrb.mxu0 %v792_v14  ;;  %152 = vmatpush.bf16.msra.mxu1 %v771_v15 }
  0x1b   :  { %507 = vmatpush.bf16.msrb.mxu3 %v805_v54 }
  0x1c   :  { %253 = vmatpush.bf16.msra.mxu2 %v780_v26 }
  0x1e   :  { %411 = vmatpush.bf16.msrb.mxu0 %v791_v16  ;;  %153 = vmatpush.bf16.msra.mxu1 %v770_v17 }
  0x1f   :  { %508 = vmatpush.bf16.msrb.mxu3 %v804_v56 }
  0x20   :  { %254 = vmatpush.bf16.msra.mxu2 %v779_v27 }
  0x22   :  { %412 = vmatpush.bf16.msrb.mxu0 %v790_v18 }
  0x23   :  { %509 = vmatpush.bf16.msrb.mxu3 %v803_v58 }
  0x24   :  { %255 = vmatpush.bf16.msra.mxu2 %v778_v29 }
  0x27   :  { %510 = vmatpush.bf16.msrb.mxu3 %v802_v61  ;;  %v815_v61 = vld [vmem:[%s1079_s13] ss:$0 sm:$0xff] }
  0x2b   :  { %511 = vmatpush.bf16.msrb.mxu3 %v801_v1 }
  0x2f   :  { %512 = vmatpush.bf16.msrb.mxu3 %v800_v2 }
  0x33   :  { %513 = vmatpush.bf16.msrb.mxu3 %v799_v6 }
  0x37   :  { %514 = vmatpush.bf16.msrb.mxu3 %v798_v9 }
  0x82   :  { %v74_v19 = vpop.f32.mrf.mxu0 }
  0x83   :  { %v77_v20 = vpack.c.bf16 %v74_v19, %v74_v19 }
  0x85   :  { %154 = vmatmul.bf16.vlgmr.msra.gmra.mxu1 %v77_v20  ;;  %413 = vmatmul.bf16.vlgmr.msrb.gmra.mxu0 %v77_v20 }
 0x102   :  { %v155_v30 = vpop.f32.mrf.mxu1  ;;  %v414_v31 = vpop.f32.mrf.mxu0 }
 0x103   :  { %v156_v32 = vadd.f32 %v810_v28, %v155_v30  ;;  %v415_v57 = vadd.f32 %v811_v55, %v414_v31 }
 0x105   :  { %v636_v33 = vmul.f32 -1.442695, %v156_v32  ;;  %v719_v59 = vmul.f32 -1.442695, %v415_v57 }
 0x107   :  { %816 = vpow2.f32 %v636_v33 }
 0x10a   :  { %v157_v34 = vpop.f32.mrf.mxu1  ;;  %v416_v35 = vpop.f32.mrf.mxu0 }
 0x10b   :  { %v813_v34 = vld [vmem:[%s1075_s7] ss:$0 sm:$0xff] }
 0x10d   :  { %v817_v36 = vpop.eup %816 }
 0x10e   :  { %v162_v37 = vadd.f32 1.0, %v817_v36 }
 0x110   :  { %818 = vrcp.f32 %v162_v37  ;;  %v174_v41 = vand.u32 2147483648, %v162_v37  ;;  %v172_v43 = vand.u32 2147483647, %v162_v37  ;;  %vm168_vm2 = vweird.f32 %v162_v37 }
 0x111   :  { %820 = vpow2.f32 %v719_v59 }
 0x112   :  { %v175_v45 = vor.u32 1.1754944e-38, %v174_v41  ;;  %vm173_vm4 = vcmp.eq.f32.partialorder %v172_v43, 8.507059e+37  ;;  %v814_v41 = vld [vmem:[%s1078_s11] ss:$0 sm:$0xff] }
 0x116   :  { %v819_v38 = vpop.eup %818 }
 0x117   :  { %v164_v39 = vmul.f32 %v819_v38, %v162_v37  ;;  %vm169_vm1 = vweird.f32 %v819_v38  ;;  %v821_v3 = vpop.eup %820  ;;  %v809_v37 = vld [vmem:[%s1081_s12 + $0x18] sm:$0xff] }
 0x118   :  { %vm170_vm3 = vmor %vm168_vm2, %vm169_vm1  ;;  %v421_v5 = vadd.f32 1.0, %v821_v3  ;;  %584 = vmatpush.bf16.msrb.mxu1 %v809_v37 }
 0x119   :  { %v165_v40 = vsub.f32 1.0, %v164_v39 }
 0x11a   :  { %v433_v27 = vand.u32 2147483648, %v421_v5  ;;  %vm427_vm11 = vweird.f32 %v421_v5  ;;  %v431_v28 = vand.u32 2147483647, %v421_v5 }
 0x11b   :  { %v166_v42 = vmul.f32 %v819_v38, %v165_v40  ;;  %v807_v40 = vld [vmem:[%s1081_s12 + $0x8] sm:$0xff] }
 0x11c   :  { %v434_v30 = vor.u32 1.1754944e-38, %v433_v27  ;;  %vm432_vm13 = vcmp.eq.f32.partialorder %v431_v28, 8.507059e+37 }
 0x11d   :  { %v167_v44 = vadd.f32 %v819_v38, %v166_v42  ;;  %v806_v42 = vld [vmem:[%s1081_s12] sm:$0xff] }
 0x11f   :  { %v171_v46 = vsel %vm170_vm3, %v819_v38, %v167_v44  ;;  %v808_v38 = vld [vmem:[%s1081_s12 + $0x10] sm:$0xff]  ;;  %vm593_vm3 = vcmask 45056  }
 0x120   :  { %v176_v47 = vsel %vm173_vm4, %v175_v45, %v171_v46  ;;  %585 = vmatpush.bf16.msrb.mxu1 %v808_v38 }
 0x121   :  { %v178_v48 = vmul.f32 %v176_v47, %v156_v32 }
 0x123   :  { %v179_v49 = vpack.c.bf16 %v178_v48, %v178_v48 }
 0x124   :  { %586 = vmatpush.bf16.msrb.mxu1 %v807_v40 }
 0x125   :  { %256 = vmatmul.bf16.vlgmr.msra.gmra.mxu2 %v179_v49 }
 0x128   :  { %587 = vmatpush.bf16.msrb.mxu1 %v806_v42 }
 0x1a8   :  { %v257_v62 = vpop.f32.mrf.mxu2 }
 0x1a9   :  { %v258_v63 = vadd.f32 %v812_v60, %v257_v62 }
 0x1ab   :  { %v669_v0 = vmul.f32 -1.442695, %v258_v63 }
 0x1ad   :  { %822 = vpow2.f32 %v669_v0 }
 0x1ae   :  { %824 = vrcp.f32 %v421_v5 }
 0x1b0   :  { %v259_v4 = vpop.f32.mrf.mxu2 }
 0x1b3   :  { %v823_v7 = vpop.eup %822 }
 0x1b4   :  { %v264_v8 = vadd.f32 1.0, %v823_v7  ;;  %v825_v10 = vpop.eup %824 }
 0x1b5   :  { %v423_v13 = vmul.f32 %v825_v10, %v421_v5  ;;  %vm428_vm10 = vweird.f32 %v825_v10 }
 0x1b6   :  { %826 = vrcp.f32 %v264_v8  ;;  %v276_v15 = vand.u32 2147483648, %v264_v8  ;;  %v274_v17 = vand.u32 2147483647, %v264_v8  ;;  %vm270_vm6 = vweird.f32 %v264_v8  ;;  %vm429_vm12 = vmor %vm427_vm11, %vm428_vm10 }
 0x1b7   :  { %v424_v18 = vsub.f32 1.0, %v423_v13 }
 0x1b8   :  { %v277_v20 = vor.u32 1.1754944e-38, %v276_v15  ;;  %vm275_vm8 = vcmp.eq.f32.partialorder %v274_v17, 8.507059e+37 }
 0x1b9   :  { %v425_v23 = vmul.f32 %v825_v10, %v424_v18 }
 0x1bb   :  { %v426_v26 = vadd.f32 %v825_v10, %v425_v23 }
 0x1bc   :  { %v827_v11 = vpop.eup %826 }
 0x1bd   :  { %v266_v12 = vmul.f32 %v827_v11, %v264_v8  ;;  %vm271_vm5 = vweird.f32 %v827_v11  ;;  %v430_v29 = vsel %vm429_vm12, %v825_v10, %v426_v26 }
 0x1be   :  { %vm272_vm7 = vmor %vm270_vm6, %vm271_vm5  ;;  %v435_v31 = vsel %vm432_vm13, %v434_v30, %v430_v29 }
 0x1bf   :  { %v267_v14 = vsub.f32 1.0, %v266_v12  ;;  %v437_v32 = vmul.f32 %v435_v31, %v415_v57 }
 0x1c1   :  { %v268_v16 = vmul.f32 %v827_v11, %v267_v14  ;;  %v438_v33 = vpack.c.bf16 %v437_v32, %v437_v32 }
 0x1c3   :  { %v269_v19 = vadd.f32 %v827_v11, %v268_v16 }
 0x1c5   :  { %v273_v21 = vsel %vm272_vm7, %v827_v11, %v269_v19 }
 0x1c6   :  { %v278_v22 = vsel %vm275_vm8, %v277_v20, %v273_v21 }
 0x1c7   :  { %v280_v24 = vmul.f32 %v278_v22, %v258_v63 }
 0x1c9   :  { %v281_v25 = vpack.c.bf16 %v280_v24, %v280_v24 }
 0x1cb   :  { %686 = vmatmul.msk.bf16.vlgmr.msra.gmra.mxu3 %vm318_vm9, %v281_v25 }
 0x1db   :  { %515 = vmatmul.bf16.vlgmr.msrb.gmra.mxu3 %v438_v33 }
 0x24e   :  { %v331_v35 = vpop.f32.mrf.mxu3 }
 0x24f   :  { %v332_v36 = vadd.f32 %v813_v34, %v331_v35 }
 0x251   :  { %336 = vst.msk [vmem:[%s1080_s14] sm:$0x1f] %vm335_vm14, %v332_v36 }
 0x256   :  { %v333_v39 = vpop.f32.mrf.mxu3 }
 0x25e   :  { %v516_v43 = vpop.f32.mrf.mxu3 }
 0x25f   :  { %v517_v44 = vadd.f32 %v814_v41, %v516_v43 }
 0x261   :  { %v752_v45 = vmul.f32 -1.442695, %v517_v44 }
 0x263   :  { %828 = vpow2.f32 %v752_v45 }
 0x266   :  { %v518_v46 = vpop.f32.mrf.mxu3 }
 0x269   :  { %v829_v47 = vpop.eup %828 }
 0x26a   :  { %v523_v48 = vadd.f32 1.0, %v829_v47 }
 0x26c   :  { %830 = vrcp.f32 %v523_v48  ;;  %v535_v52 = vand.u32 2147483648, %v523_v48  ;;  %v533_v54 = vand.u32 2147483647, %v523_v48  ;;  %vm529_vm0 = vweird.f32 %v523_v48 }
 0x26e   :  { %v536_v56 = vor.u32 1.1754944e-38, %v535_v52  ;;  %vm534_vm2 = vcmp.eq.f32.partialorder %v533_v54, 8.507059e+37 }
 0x272   :  { %v831_v49 = vpop.eup %830 }
 0x273   :  { %v525_v50 = vmul.f32 %v831_v49, %v523_v48  ;;  %vm530_vm15 = vweird.f32 %v831_v49 }
 0x274   :  { %vm531_vm1 = vmor %vm529_vm0, %vm530_vm15 }
 0x275   :  { %v526_v51 = vsub.f32 1.0, %v525_v50 }
 0x277   :  { %v527_v53 = vmul.f32 %v831_v49, %v526_v51 }
 0x279   :  { %v528_v55 = vadd.f32 %v831_v49, %v527_v53 }
 0x27b   :  { %v532_v57 = vsel %vm531_vm1, %v831_v49, %v528_v55 }
 0x27c   :  { %v537_v58 = vsel %vm534_vm2, %v536_v56, %v532_v57 }
 0x27d   :  { %v539_v59 = vmul.f32 %v537_v58, %v517_v44 }
 0x27f   :  { %v540_v60 = vpack.c.bf16 %v539_v59, %v539_v59 }
 0x281   :  { %769 = vmatmul.msk.bf16.vlgmr.msrb.gmra.mxu1 %vm318_vm9, %v540_v60 }
 0x2fe   :  { %v589_v62 = vpop.f32.mrf.mxu1 }
 0x2ff   :  { %v590_v63 = vadd.f32 %v815_v61, %v589_v62 }
 0x301   :  { %594 = vst.msk [vmem:[%s1082_s15] sm:$0x1f] %vm593_vm3, %v590_v63 }
 0x306   :  { %v591_v0 = vpop.f32.mrf.mxu1 }

</bundles_post_ra>
